<compile_context>
chip_gen: v6e
topology: v6e:2x2x1
jax: 0.10.0
libtpu: 0.0.40
codegen_flags: <defaults>
</compile_context>

<pallas_src>
import functools

import jax
import jax.numpy as jnp
from jax.experimental import pallas as pl
from jax.experimental.pallas import tpu as pltpu


# ----------------------------------------------------------------------------
# helpers
# ----------------------------------------------------------------------------
def get_padding(kernel_size, dilation=1):
    return int((kernel_size * dilation - dilation) / 2)


_T_TILE = 1024              # lane tile for long sequences (multiple of 128)
_ACT_DTYPE = jnp.bfloat16   # inter-layer activation storage dtype


def _mish(x):
    """mish(x) = x * tanh(softplus(x)) via the closed form
    tanh(log(1+u)) = u(u+2) / (u(u+2)+2), u = exp(x):
    1 exp + 1 approx reciprocal (+1 Newton step) instead of 3 transcendentals."""
    u = jnp.exp(jnp.minimum(x, 20.0))      # clamp: avoids inf/inf for large x
    t = u * (u + 2.0)
    den = t + 2.0
    r = pl.reciprocal(den, approx=True)
    r = r * (2.0 - den * r)                # one Newton step -> ~f32 accuracy
    return x * t * r


# ----------------------------------------------------------------------------
# Pallas kernels
# ----------------------------------------------------------------------------
def _conv1d_kernel(x_ref, w_ref, b_ref, o_ref, *, K, dilation, T_TILE, tiled,
                   mish_in, out_act, out_scale):
    """One (batch, time-tile) block of a dilated Conv1d as a single MXU matmul.

    x_ref: (1, Cin, Tpad_full)  padded time strip, resident per batch element
    w_ref: (Cout, Cin*K)        lane-dense im2col weight (bf16)
    b_ref: (Cout, 1)            f32 bias
    o_ref: (1, Cout, T_TILE)
    """
    halo = (K - 1) * dilation
    if tiled:
        t0 = pl.multiple_of(pl.program_id(1) * T_TILE, 128)
    else:
        t0 = 0
    xw = x_ref[0, :, pl.ds(t0, T_TILE + halo)].astype(jnp.float32)
    if mish_in:
        xw = _mish(xw)                     # mish(0)==0 -> exact on zero padding
    xw = xw.astype(jnp.bfloat16)

    # im2col: stack the K shifted views on the sublane (channel) axis so the
    # whole tap loop becomes ONE deep matmul (contraction = Cin*K).
    slab = jnp.concatenate(
        [xw[:, k * dilation:k * dilation + T_TILE] for k in range(K)], axis=0)

    acc = jnp.dot(w_ref[...], slab, preferred_element_type=jnp.float32)
    acc = acc + b_ref[...]                 # (Cout,1) broadcasts over lanes
    if out_act == "mish":
        acc = _mish(acc)
    elif out_act == "tanh":
        acc = jnp.tanh(acc)
    if out_scale != 1.0:
        acc = acc * out_scale
    o_ref[0] = acc.astype(o_ref.dtype)


def _mish_avg_kernel(*refs, n, inv_n):
    """out = (sum_i mish(x_i)) * inv_n, fused elementwise."""
    o_ref = refs[n]
    acc = _mish(refs[0][0].astype(jnp.float32))
    for i in range(1, n):
        acc = acc + _mish(refs[i][0].astype(jnp.float32))
    o_ref[0] = (acc * inv_n).astype(o_ref.dtype)


# ----------------------------------------------------------------------------
# Pallas wrappers
# ----------------------------------------------------------------------------
def _time_tiling(Tout):
    if Tout > _T_TILE:
        return _T_TILE, -(-Tout // _T_TILE), True
    return Tout, 1, False


def _conv1d_padded(xpad, w2, b, *, K, dilation, mish_in, out_act, out_scale,
                   out_dtype):
    B, Cin, Tpad = xpad.shape
    Cout = w2.shape[0]
    halo = (K - 1) * dilation
    Tout = Tpad - halo
    T_TILE, nT, tiled = _time_tiling(Tout)

    # pad so every tile's (T_TILE + halo) window stays in bounds (zeros -> exact)
    Tpad_full = nT * T_TILE + halo
    if Tpad_full > Tpad:
        xpad = jnp.pad(xpad, ((0, 0), (0, 0), (0, Tpad_full - Tpad)))

    kern = functools.partial(
        _conv1d_kernel, K=K, dilation=dilation, T_TILE=T_TILE, tiled=tiled,
        mish_in=mish_in, out_act=out_act, out_scale=out_scale)
    return pl.pallas_call(
        kern,
        out_shape=jax.ShapeDtypeStruct((B, Cout, Tout), out_dtype),
        grid=(B, nT),
        in_specs=[
            pl.BlockSpec((1, Cin, Tpad_full), lambda bi, ti: (bi, 0, 0)),
            pl.BlockSpec((Cout, Cin * K), lambda bi, ti: (0, 0)),
            pl.BlockSpec((Cout, 1), lambda bi, ti: (0, 0)),
        ],
        out_specs=pl.BlockSpec((1, Cout, T_TILE), lambda bi, ti: (bi, 0, ti)),
        compiler_params=pltpu.CompilerParams(
            dimension_semantics=("parallel", "parallel")),
    )(xpad, w2, b.reshape(Cout, 1).astype(jnp.float32))


def conv1d(x, p, *, dilation=1, padding=0, mish_in=False, out_act=None,
           out_scale=1.0, out_dtype=_ACT_DTYPE):
    """Conv1d (PyTorch semantics). p["w"]: (Cout,Cin,K), p["b"]: (Cout,)."""
    w, b = p["w"], p["b"]
    Cout, Cin, K = w.shape
    xpad = jnp.pad(x, ((0, 0), (0, 0), (padding, padding)))
    # lane-dense im2col weight: column index k*Cin + ci matches the kernel slab.
    w2 = jnp.transpose(w, (0, 2, 1)).reshape(Cout, K * Cin).astype(jnp.bfloat16)
    return _conv1d_padded(xpad, w2, b, K=K, dilation=dilation, mish_in=mish_in,
                          out_act=out_act, out_scale=out_scale,
                          out_dtype=out_dtype)


def conv_transpose1d(x, p, *, stride, padding, mish_in=False,
                     out_dtype=_ACT_DTYPE):
    """ConvTranspose1d (PyTorch semantics) via polyphase decomposition.

    p["w"]: (Cin, Cout, K) (PyTorch layout), p["b"]: (Cout,).
    All `stride` phase sub-filters run in ONE conv kernel call (stacked on the
    output-channel axis); the phase outputs are time-interleaved afterwards.
    """
    w, b = p["w"], p["b"]
    Cin, Cout, K = w.shape
    B, _, T = x.shape
    s = stride
    Lmax = -(-K // s)                          # taps per phase (ceil)
    W = jnp.transpose(w, (1, 0, 2))            # (Cout, Cin, K)

    # Phase ph uses taps k = ph, ph+s, ...  Arrange each phase as an ordinary
    # correlation filter of length Lmax (zero taps prepended for short phases)
    # so all phases share one input padding of (Lmax-1) on each side.
    phase_ws = []
    for ph in range(s):
        L = (-(-(K - ph) // s)) if ph < K else 0
        taps = []
        for m in range(Lmax):
            mm = m - (Lmax - L)
            if mm < 0:
                taps.append(jnp.zeros((Cout, Cin), W.dtype))
            else:
                taps.append(W[:, :, ph + (L - 1 - mm) * s])
        phase_ws.append(jnp.stack(taps, axis=-1))        # (Cout, Cin, Lmax)
    Wstack = jnp.concatenate(phase_ws, axis=0)           # (s*Cout, Cin, Lmax)
    bstack = jnp.tile(b, s)                              # (s*Cout,)

    A = T - 1 + Lmax                                     # per-phase output len
    xpad = jnp.pad(x, ((0, 0), (0, 0), (Lmax - 1, Lmax - 1)))
    w2 = jnp.transpose(Wstack, (0, 2, 1)).reshape(s * Cout, Lmax * Cin)
    w2 = w2.astype(jnp.bfloat16)
    z = _conv1d_padded(xpad, w2, bstack, K=Lmax, dilation=1, mish_in=mish_in,
                       out_act=None, out_scale=1.0, out_dtype=out_dtype)
    # interleave phases along time and trim the conv-transpose padding
    y = z.reshape(B, s, Cout, A).transpose(0, 2, 3, 1).reshape(B, Cout, A * s)
    Tout = (T - 1) * s - 2 * padding + K
    return y[:, :, padding:padding + Tout]


def mish_avg_pallas(xs, out_dtype=_ACT_DTYPE):
    """sum_i mish(x_i) / len(xs), fused in a single elementwise kernel."""
    n = len(xs)
    B, C, T = xs[0].shape
    T_TILE, nT, _ = _time_tiling(T)
    kern = functools.partial(_mish_avg_kernel, n=n, inv_n=1.0 / n)
    spec = pl.BlockSpec((1, C, T_TILE), lambda bi, ti: (bi, 0, ti))
    return pl.pallas_call(
        kern,
        out_shape=jax.ShapeDtypeStruct((B, C, T), out_dtype),
        grid=(B, nT),
        in_specs=[spec] * n,
        out_specs=spec,
        compiler_params=pltpu.CompilerParams(
            dimension_semantics=("parallel", "parallel")),
    )(*xs)


# ----------------------------------------------------------------------------
# Parameter construction (deterministic, synthetic)
# ----------------------------------------------------------------------------
def _init_conv(key, cout, cin, K, scale=0.05):
    kw, kb = jax.random.split(key)
    return {"w": scale * jax.random.normal(kw, (cout, cin, K), jnp.float32),
            "b": scale * jax.random.normal(kb, (cout,), jnp.float32)}


def _init_convT(key, cin, cout, K, scale=0.05):
    kw, kb = jax.random.split(key)
    return {"w": scale * jax.random.normal(kw, (cin, cout, K), jnp.float32),
            "b": scale * jax.random.normal(kb, (cout,), jnp.float32)}


def init_generator(key, config):
    mc = config["model"]
    C0 = mc["upsample_initial_channel"]
    nup = len(mc["upsample_rate"])
    params = {}

    key, kf = jax.random.split(key)
    params["first_conv"] = _init_conv(kf, C0, 80, 7)

    params["upsampler"] = []
    params["mrf"] = []
    for k in range(nup):
        cin = C0 // (2 ** k)
        cout = C0 // (2 ** (k + 1))
        key, ku = jax.random.split(key)
        params["upsampler"].append(
            _init_convT(ku, cin, cout, mc["upsample_kernel_size"][k]))

        resblocks = []
        for ksz, dils in zip(mc["resblock_kernel_sizes"],
                             mc["resblock_dilation_sizes"]):
            branches = []
            for _d in dils:
                key, k1, k2 = jax.random.split(key, 3)
                branches.append({"c1": _init_conv(k1, cout, cout, ksz),
                                 "c2": _init_conv(k2, cout, cout, ksz)})
            resblocks.append(branches)
        params["mrf"].append(resblocks)

    key, kl = jax.random.split(key)
    params["final_conv"] = _init_conv(kl, 1, C0 // (2 ** nup), 7)
    return params


# ----------------------------------------------------------------------------
# Forward passes (mirror the PyTorch modules)
# ----------------------------------------------------------------------------
def resblock_forward(x, branches, ksz, dils, mish_input):
    """sum_j mish(conv2_j(mish(conv1_j(x)))) / n, with mish & 1/n fused into
    the conv kernels. `mish_input` fuses a mish(.) applied to x itself."""
    n = len(branches)
    acc = None
    for d, br in zip(dils, branches):
        h = conv1d(x, br["c1"], dilation=d, padding=get_padding(ksz, d),
                   mish_in=mish_input, out_act="mish")
        h = conv1d(h, br["c2"], dilation=1, padding=get_padding(ksz, 1),
                   out_act="mish", out_scale=1.0 / n)
        acc = h if acc is None else acc + h
    return acc


def mrf_forward(x, mrf_params, mc):
    raws = []
    cur = x
    mish_input = False                 # MRF input is the raw upsampler output
    for branches, ksz, dils in zip(mrf_params, mc["resblock_kernel_sizes"],
                                   mc["resblock_dilation_sizes"]):
        cur = resblock_forward(cur, branches, ksz, dils, mish_input)
        raws.append(cur)
        mish_input = True              # inter-resblock mish fused into next conv1
    return mish_avg_pallas(raws)       # sum_i mish(raw_i) / n


def generator_forward(params, x, config):
    mc = config["model"]
    # first_conv (kernel=7, pad=3)
    x = conv1d(x, params["first_conv"], padding=3)
    # upsample stages: mish -> ConvTranspose1d -> MRF  (mish fused into the
    # polyphase transposed-conv kernel's prologue)
    # TODO(synk): resblock_type == "MISR" path not implemented (config uses MRF).
    for k in range(len(params["upsampler"])):
        K = mc["upsample_kernel_size"][k]
        s = mc["upsample_rate"][k]
        x = conv_transpose1d(x, params["upsampler"][k], stride=s,
                             padding=(K - s) // 2, mish_in=True)
        x = mrf_forward(x, params["mrf"][k], mc)
    # final conv + tanh (istft_use == False branch)
    # TODO(synk): istft_use==True branch (ReflectionPad1d + exp/sin + ISTFT) is
    # not implemented; the reference ISTFT module is not provided.
    x = conv1d(x, params["final_conv"], padding=3, out_act="tanh",
               out_dtype=jnp.float32)
    return x


# ----------------------------------------------------------------------------
# main
# ----------------------------------------------------------------------------
if __name__ == "__main__":
    config = {
        "model": {
            "upsample_rate": [2, 2],
            "upsample_kernel_size": [4, 4],
            "upsample_initial_channel": 32,
            "resblock_type": "MRF",
            "resblock_kernel_sizes": [3, 5],
            "resblock_dilation_sizes": [[1, 3], [1, 3]],
            "istft_use": False,
        }
    }

    key = jax.random.PRNGKey(0)
    key, kp, kx = jax.random.split(key, 3)
    params = init_generator(kp, config)

    B, T = 2, 16
    x = jax.random.normal(kx, (B, 80, T), jnp.float32)   # mel input (B, C=80, T)

    fwd = jax.jit(lambda p, xx: generator_forward(p, xx, config))
    y = fwd(params, x)
    y = jax.block_until_ready(y)

    expected_T = T * 2 * 2   # product of upsample rates
    assert y.shape == (B, 1, expected_T), y.shape
    assert bool(jnp.all(jnp.isfinite(y)))
    assert bool(jnp.all(jnp.abs(y) <= 1.0))   # tanh output range
    print("KERNEL_OK")
</pallas_src>

<mosaic_0001>
module attributes {stable_mosaic.version = 11 : i64} {
  func.func @_conv1d_kernel(%arg0: i32, %arg1: i32, %arg2: memref<1x80x22xf32, #tpu.memory_space<vmem>>, %arg3: memref<32x560xbf16, #tpu.memory_space<vmem>>, %arg4: memref<32x1xf32, #tpu.memory_space<vmem>>, %arg5: memref<1x32x16xbf16, #tpu.memory_space<vmem>>) attributes {dimension_semantics = [#tpu.dimension_semantics<parallel>, #tpu.dimension_semantics<parallel>], iteration_bounds = array<i64: 2, 1>, scalar_prefetch = 0 : i64, scratch_operands = 0 : i64, tpu.core_type = #tpu.core_type<tc>, window_params = [{transform_indices = @transform_0, window_bounds = array<i64: 1, 80, 22>}, {pipeline_mode = #tpu.pipeline_mode<synchronous>, transform_indices = @transform_1, window_bounds = array<i64: 32, 560>}, {pipeline_mode = #tpu.pipeline_mode<synchronous>, transform_indices = @transform_2, window_bounds = array<i64: 32, 1>}, {transform_indices = @transform_3, window_bounds = array<i64: 1, 32, 16>}]} {
    %c0 = arith.constant 0 : index
    %c0_0 = arith.constant 0 : index
    %c0_1 = arith.constant 0 : index
    %0 = vector.load %arg2[%c0, %c0_0, %c0_1] : memref<1x80x22xf32, #tpu.memory_space<vmem>>, vector<1x80x22xf32>
    %1 = vector.shape_cast %0 : vector<1x80x22xf32> to vector<80x22xf32>
    %2 = arith.truncf %1 : vector<80x22xf32> to vector<80x22xbf16>
    %3 = vector.extract_strided_slice %2 {offsets = [0, 0], sizes = [80, 16], strides = [1, 1]} : vector<80x22xbf16> to vector<80x16xbf16>
    %4 = vector.extract_strided_slice %2 {offsets = [0, 1], sizes = [80, 16], strides = [1, 1]} : vector<80x22xbf16> to vector<80x16xbf16>
    %5 = vector.extract_strided_slice %2 {offsets = [0, 2], sizes = [80, 16], strides = [1, 1]} : vector<80x22xbf16> to vector<80x16xbf16>
    %6 = vector.extract_strided_slice %2 {offsets = [0, 3], sizes = [80, 16], strides = [1, 1]} : vector<80x22xbf16> to vector<80x16xbf16>
    %7 = vector.extract_strided_slice %2 {offsets = [0, 4], sizes = [80, 16], strides = [1, 1]} : vector<80x22xbf16> to vector<80x16xbf16>
    %8 = vector.extract_strided_slice %2 {offsets = [0, 5], sizes = [80, 16], strides = [1, 1]} : vector<80x22xbf16> to vector<80x16xbf16>
    %9 = vector.extract_strided_slice %2 {offsets = [0, 6], sizes = [80, 16], strides = [1, 1]} : vector<80x22xbf16> to vector<80x16xbf16>
    %10 = tpu.concatenate %3, %4, %5, %6, %7, %8, %9 in 0 : vector<80x16xbf16>, vector<80x16xbf16>, vector<80x16xbf16>, vector<80x16xbf16>, vector<80x16xbf16>, vector<80x16xbf16>, vector<80x16xbf16> -> vector<560x16xbf16>
    %c0_2 = arith.constant 0 : index
    %c0_3 = arith.constant 0 : index
    %11 = vector.load %arg3[%c0_2, %c0_3] : memref<32x560xbf16, #tpu.memory_space<vmem>>, vector<32x560xbf16>
    %cst = arith.constant dense<0.000000e+00> : vector<32x16xf32>
    %12 = tpu.matmul %11, %10, %cst {dimension_numbers = #tpu.dot_dimension_numbers<[1], [0], [0], [1], [0, 0, 1, 1], [], []>} : vector<32x560xbf16>, vector<560x16xbf16>, vector<32x16xf32> -> vector<32x16xf32>
    %c0_4 = arith.constant 0 : index
    %c0_5 = arith.constant 0 : index
    %13 = vector.load %arg4[%c0_4, %c0_5] : memref<32x1xf32, #tpu.memory_space<vmem>>, vector<32x1xf32>
    %14 = vector.broadcast %13 : vector<32x1xf32> to vector<32x16xf32>
    %15 = arith.addf %12, %14 : vector<32x16xf32>
    %16 = arith.truncf %15 : vector<32x16xf32> to vector<32x16xbf16>
    %c0_6 = arith.constant 0 : index
    %c0_7 = arith.constant 0 : index
    %c0_8 = arith.constant 0 : index
    %17 = vector.load %arg5[%c0_6, %c0_7, %c0_8] : memref<1x32x16xbf16, #tpu.memory_space<vmem>>, vector<1x32x16xbf16>
    %18 = vector.shape_cast %17 : vector<1x32x16xbf16> to vector<32x16xbf16>
    %19 = vector.shape_cast %16 : vector<32x16xbf16> to vector<1x32x16xbf16>
    tpu.vector_store %arg5[%c0_6, %c0_7, %c0_8], %19 {strides = array<i32>} : memref<1x32x16xbf16, #tpu.memory_space<vmem>>, vector<1x32x16xbf16>,
    return
  }
  func.func @transform_0(%arg0: i32, %arg1: i32) -> (i32, i32, i32) {
    %c0_i32 = arith.constant 0 : i32
    %c0_i32_0 = arith.constant 0 : i32
    %c0_i32_1 = arith.constant 0 : i32
    return %arg0, %c0_i32, %c0_i32_0 : i32, i32, i32
  }
  func.func @transform_1(%arg0: i32, %arg1: i32) -> (i32, i32) {
    %c0_i32 = arith.constant 0 : i32
    %c0_i32_0 = arith.constant 0 : i32
    %c0_i32_1 = arith.constant 0 : i32
    return %c0_i32, %c0_i32_0 : i32, i32
  }
  func.func @transform_2(%arg0: i32, %arg1: i32) -> (i32, i32) {
    %c0_i32 = arith.constant 0 : i32
    %c0_i32_0 = arith.constant 0 : i32
    %c0_i32_1 = arith.constant 0 : i32
    return %c0_i32, %c0_i32_0 : i32, i32
  }
  func.func @transform_3(%arg0: i32, %arg1: i32) -> (i32, i32, i32) {
    %c0_i32 = arith.constant 0 : i32
    %c0_i32_0 = arith.constant 0 : i32
    return %arg0, %c0_i32, %arg1 : i32, i32, i32
  }
}

module attributes {stable_mosaic.version = 11 : i64} {
  func.func @_conv1d_kernel(%arg0: i32, %arg1: i32, %arg2: memref<1x32x18xbf16, #tpu.memory_space<vmem>>, %arg3: memref<32x64xbf16, #tpu.memory_space<vmem>>, %arg4: memref<32x1xf32, #tpu.memory_space<vmem>>, %arg5: memref<1x32x17xbf16, #tpu.memory_space<vmem>>) attributes {dimension_semantics = [#tpu.dimension_semantics<parallel>, #tpu.dimension_semantics<parallel>], iteration_bounds = array<i64: 2, 1>, scalar_prefetch = 0 : i64, scratch_operands = 0 : i64, tpu.core_type = #tpu.core_type<tc>, window_params = [{transform_indices = @transform_0, window_bounds = array<i64: 1, 32, 18>}, {pipeline_mode = #tpu.pipeline_mode<synchronous>, transform_indices = @transform_1, window_bounds = array<i64: 32, 64>}, {pipeline_mode = #tpu.pipeline_mode<synchronous>, transform_indices = @transform_2, window_bounds = array<i64: 32, 1>}, {transform_indices = @transform_3, window_bounds = array<i64: 1, 32, 17>}]} {
    %c0 = arith.constant 0 : index
    %c0_0 = arith.constant 0 : index
    %c0_1 = arith.constant 0 : index
    %0 = vector.load %arg2[%c0, %c0_0, %c0_1] : memref<1x32x18xbf16, #tpu.memory_space<vmem>>, vector<1x32x18xbf16>
    %1 = vector.shape_cast %0 : vector<1x32x18xbf16> to vector<32x18xbf16>
    %2 = arith.extf %1 : vector<32x18xbf16> to vector<32x18xf32>
    %cst = arith.constant 2.000000e+01 : f32
    %3 = vector.broadcast %cst : f32 to vector<32x18xf32>
    %4 = arith.minimumf %2, %3 : vector<32x18xf32>
    %5 = math.exp %4 : vector<32x18xf32>
    %cst_2 = arith.constant 2.000000e+00 : f32
    %6 = vector.broadcast %cst_2 : f32 to vector<32x18xf32>
    %7 = arith.addf %5, %6 : vector<32x18xf32>
    %8 = arith.mulf %5, %7 : vector<32x18xf32>
    %cst_3 = arith.constant 2.000000e+00 : f32
    %9 = vector.broadcast %cst_3 : f32 to vector<32x18xf32>
    %10 = arith.addf %8, %9 : vector<32x18xf32>
    %11 = tpu.reciprocal %10 {approx = true} : vector<32x18xf32> -> vector<32x18xf32>
    %12 = arith.mulf %10, %11 : vector<32x18xf32>
    %cst_4 = arith.constant 2.000000e+00 : f32
    %13 = vector.broadcast %cst_4 : f32 to vector<32x18xf32>
    %14 = arith.subf %13, %12 : vector<32x18xf32>
    %15 = arith.mulf %11, %14 : vector<32x18xf32>
    %16 = arith.mulf %2, %8 : vector<32x18xf32>
    %17 = arith.mulf %16, %15 : vector<32x18xf32>
    %18 = arith.truncf %17 : vector<32x18xf32> to vector<32x18xbf16>
    %19 = vector.extract_strided_slice %18 {offsets = [0, 0], sizes = [32, 17], strides = [1, 1]} : vector<32x18xbf16> to vector<32x17xbf16>
    %20 = vector.extract_strided_slice %18 {offsets = [0, 1], sizes = [32, 17], strides = [1, 1]} : vector<32x18xbf16> to vector<32x17xbf16>
    %21 = tpu.concatenate %19, %20 in 0 : vector<32x17xbf16>, vector<32x17xbf16> -> vector<64x17xbf16>
    %c0_5 = arith.constant 0 : index
    %c0_6 = arith.constant 0 : index
    %22 = vector.load %arg3[%c0_5, %c0_6] : memref<32x64xbf16, #tpu.memory_space<vmem>>, vector<32x64xbf16>
    %cst_7 = arith.constant dense<0.000000e+00> : vector<32x17xf32>
    %23 = tpu.matmul %22, %21, %cst_7 {dimension_numbers = #tpu.dot_dimension_numbers<[1], [0], [0], [1], [0, 0, 1, 1], [], []>} : vector<32x64xbf16>, vector<64x17xbf16>, vector<32x17xf32> -> vector<32x17xf32>
    %c0_8 = arith.constant 0 : index
    %c0_9 = arith.constant 0 : index
    %24 = vector.load %arg4[%c0_8, %c0_9] : memref<32x1xf32, #tpu.memory_space<vmem>>, vector<32x1xf32>
    %25 = vector.broadcast %24 : vector<32x1xf32> to vector<32x17xf32>
    %26 = arith.addf %23, %25 : vector<32x17xf32>
    %27 = arith.truncf %26 : vector<32x17xf32> to vector<32x17xbf16>
    %c0_10 = arith.constant 0 : index
    %c0_11 = arith.constant 0 : index
    %c0_12 = arith.constant 0 : index
    %28 = vector.load %arg5[%c0_10, %c0_11, %c0_12] : memref<1x32x17xbf16, #tpu.memory_space<vmem>>, vector<1x32x17xbf16>
    %29 = vector.shape_cast %28 : vector<1x32x17xbf16> to vector<32x17xbf16>
    %30 = vector.shape_cast %27 : vector<32x17xbf16> to vector<1x32x17xbf16>
    tpu.vector_store %arg5[%c0_10, %c0_11, %c0_12], %30 {strides = array<i32>} : memref<1x32x17xbf16, #tpu.memory_space<vmem>>, vector<1x32x17xbf16>,
    return
  }
  func.func @transform_0(%arg0: i32, %arg1: i32) -> (i32, i32, i32) {
    %c0_i32 = arith.constant 0 : i32
    %c0_i32_0 = arith.constant 0 : i32
    %c0_i32_1 = arith.constant 0 : i32
    return %arg0, %c0_i32, %c0_i32_0 : i32, i32, i32
  }
  func.func @transform_1(%arg0: i32, %arg1: i32) -> (i32, i32) {
    %c0_i32 = arith.constant 0 : i32
    %c0_i32_0 = arith.constant 0 : i32
    %c0_i32_1 = arith.constant 0 : i32
    return %c0_i32, %c0_i32_0 : i32, i32
  }
  func.func @transform_2(%arg0: i32, %arg1: i32) -> (i32, i32) {
    %c0_i32 = arith.constant 0 : i32
    %c0_i32_0 = arith.constant 0 : i32
    %c0_i32_1 = arith.constant 0 : i32
    return %c0_i32, %c0_i32_0 : i32, i32
  }
  func.func @transform_3(%arg0: i32, %arg1: i32) -> (i32, i32, i32) {
    %c0_i32 = arith.constant 0 : i32
    %c0_i32_0 = arith.constant 0 : i32
    return %arg0, %c0_i32, %arg1 : i32, i32, i32
  }
}

module attributes {stable_mosaic.version = 11 : i64} {
  func.func @_conv1d_kernel(%arg0: i32, %arg1: i32, %arg2: memref<1x16x34xbf16, #tpu.memory_space<vmem>>, %arg3: memref<16x48xbf16, #tpu.memory_space<vmem>>, %arg4: memref<16x1xf32, #tpu.memory_space<vmem>>, %arg5: memref<1x16x32xbf16, #tpu.memory_space<vmem>>) attributes {dimension_semantics = [#tpu.dimension_semantics<parallel>, #tpu.dimension_semantics<parallel>], iteration_bounds = array<i64: 2, 1>, scalar_prefetch = 0 : i64, scratch_operands = 0 : i64, tpu.core_type = #tpu.core_type<tc>, window_params = [{transform_indices = @transform_0, window_bounds = array<i64: 1, 16, 34>}, {pipeline_mode = #tpu.pipeline_mode<synchronous>, transform_indices = @transform_1, window_bounds = array<i64: 16, 48>}, {pipeline_mode = #tpu.pipeline_mode<synchronous>, transform_indices = @transform_2, window_bounds = array<i64: 16, 1>}, {transform_indices = @transform_3, window_bounds = array<i64: 1, 16, 32>}]} {
    %c0 = arith.constant 0 : index
    %c0_0 = arith.constant 0 : index
    %c0_1 = arith.constant 0 : index
    %0 = vector.load %arg2[%c0, %c0_0, %c0_1] : memref<1x16x34xbf16, #tpu.memory_space<vmem>>, vector<1x16x34xbf16>
    %1 = vector.shape_cast %0 : vector<1x16x34xbf16> to vector<16x34xbf16>
    %2 = arith.extf %1 : vector<16x34xbf16> to vector<16x34xf32>
    %3 = arith.truncf %2 : vector<16x34xf32> to vector<16x34xbf16>
    %4 = vector.extract_strided_slice %3 {offsets = [0, 0], sizes = [16, 32], strides = [1, 1]} : vector<16x34xbf16> to vector<16x32xbf16>
    %5 = vector.extract_strided_slice %3 {offsets = [0, 1], sizes = [16, 32], strides = [1, 1]} : vector<16x34xbf16> to vector<16x32xbf16>
    %6 = vector.extract_strided_slice %3 {offsets = [0, 2], sizes = [16, 32], strides = [1, 1]} : vector<16x34xbf16> to vector<16x32xbf16>
    %7 = tpu.concatenate %4, %5, %6 in 0 : vector<16x32xbf16>, vector<16x32xbf16>, vector<16x32xbf16> -> vector<48x32xbf16>
    %c0_2 = arith.constant 0 : index
    %c0_3 = arith.constant 0 : index
    %8 = vector.load %arg3[%c0_2, %c0_3] : memref<16x48xbf16, #tpu.memory_space<vmem>>, vector<16x48xbf16>
    %cst = arith.constant dense<0.000000e+00> : vector<16x32xf32>
    %9 = tpu.matmul %8, %7, %cst {dimension_numbers = #tpu.dot_dimension_numbers<[1], [0], [0], [1], [0, 0, 1, 1], [], []>} : vector<16x48xbf16>, vector<48x32xbf16>, vector<16x32xf32> -> vector<16x32xf32>
    %c0_4 = arith.constant 0 : index
    %c0_5 = arith.constant 0 : index
    %10 = vector.load %arg4[%c0_4, %c0_5] : memref<16x1xf32, #tpu.memory_space<vmem>>, vector<16x1xf32>
    %11 = vector.broadcast %10 : vector<16x1xf32> to vector<16x32xf32>
    %12 = arith.addf %9, %11 : vector<16x32xf32>
    %cst_6 = arith.constant 2.000000e+01 : f32
    %13 = vector.broadcast %cst_6 : f32 to vector<16x32xf32>
    %14 = arith.minimumf %12, %13 : vector<16x32xf32>
    %15 = math.exp %14 : vector<16x32xf32>
    %cst_7 = arith.constant 2.000000e+00 : f32
    %16 = vector.broadcast %cst_7 : f32 to vector<16x32xf32>
    %17 = arith.addf %15, %16 : vector<16x32xf32>
    %18 = arith.mulf %15, %17 : vector<16x32xf32>
    %cst_8 = arith.constant 2.000000e+00 : f32
    %19 = vector.broadcast %cst_8 : f32 to vector<16x32xf32>
    %20 = arith.addf %18, %19 : vector<16x32xf32>
    %21 = tpu.reciprocal %20 {approx = true} : vector<16x32xf32> -> vector<16x32xf32>
    %22 = arith.mulf %20, %21 : vector<16x32xf32>
    %cst_9 = arith.constant 2.000000e+00 : f32
    %23 = vector.broadcast %cst_9 : f32 to vector<16x32xf32>
    %24 = arith.subf %23, %22 : vector<16x32xf32>
    %25 = arith.mulf %21, %24 : vector<16x32xf32>
    %26 = arith.mulf %12, %18 : vector<16x32xf32>
    %27 = arith.mulf %26, %25 : vector<16x32xf32>
    %cst_10 = arith.constant 5.000000e-01 : f32
    %28 = vector.broadcast %cst_10 : f32 to vector<16x32xf32>
    %29 = arith.mulf %27, %28 : vector<16x32xf32>
    %30 = arith.truncf %29 : vector<16x32xf32> to vector<16x32xbf16>
    %c0_11 = arith.constant 0 : index
    %c0_12 = arith.constant 0 : index
    %c0_13 = arith.constant 0 : index
    %31 = vector.load %arg5[%c0_11, %c0_12, %c0_13] : memref<1x16x32xbf16, #tpu.memory_space<vmem>>, vector<1x16x32xbf16>
    %32 = vector.shape_cast %31 : vector<1x16x32xbf16> to vector<16x32xbf16>
    %33 = vector.shape_cast %30 : vector<16x32xbf16> to vector<1x16x32xbf16>
    tpu.vector_store %arg5[%c0_11, %c0_12, %c0_13], %33 {strides = array<i32>} : memref<1x16x32xbf16, #tpu.memory_space<vmem>>, vector<1x16x32xbf16>,
    return
  }
  func.func @transform_0(%arg0: i32, %arg1: i32) -> (i32, i32, i32) {
    %c0_i32 = arith.constant 0 : i32
    %c0_i32_0 = arith.constant 0 : i32
    %c0_i32_1 = arith.constant 0 : i32
    return %arg0, %c0_i32, %c0_i32_0 : i32, i32, i32
  }
  func.func @transform_1(%arg0: i32, %arg1: i32) -> (i32, i32) {
    %c0_i32 = arith.constant 0 : i32
    %c0_i32_0 = arith.constant 0 : i32
    %c0_i32_1 = arith.constant 0 : i32
    return %c0_i32, %c0_i32_0 : i32, i32
  }
  func.func @transform_2(%arg0: i32, %arg1: i32) -> (i32, i32) {
    %c0_i32 = arith.constant 0 : i32
    %c0_i32_0 = arith.constant 0 : i32
    %c0_i32_1 = arith.constant 0 : i32
    return %c0_i32, %c0_i32_0 : i32, i32
  }
  func.func @transform_3(%arg0: i32, %arg1: i32) -> (i32, i32, i32) {
    %c0_i32 = arith.constant 0 : i32
    %c0_i32_0 = arith.constant 0 : i32
    return %arg0, %c0_i32, %arg1 : i32, i32, i32
  }
}

module attributes {stable_mosaic.version = 11 : i64} {
  func.func @_conv1d_kernel(%arg0: i32, %arg1: i32, %arg2: memref<1x16x34xbf16, #tpu.memory_space<vmem>>, %arg3: memref<16x48xbf16, #tpu.memory_space<vmem>>, %arg4: memref<16x1xf32, #tpu.memory_space<vmem>>, %arg5: memref<1x16x32xbf16, #tpu.memory_space<vmem>>) attributes {dimension_semantics = [#tpu.dimension_semantics<parallel>, #tpu.dimension_semantics<parallel>], iteration_bounds = array<i64: 2, 1>, scalar_prefetch = 0 : i64, scratch_operands = 0 : i64, tpu.core_type = #tpu.core_type<tc>, window_params = [{transform_indices = @transform_0, window_bounds = array<i64: 1, 16, 34>}, {pipeline_mode = #tpu.pipeline_mode<synchronous>, transform_indices = @transform_1, window_bounds = array<i64: 16, 48>}, {pipeline_mode = #tpu.pipeline_mode<synchronous>, transform_indices = @transform_2, window_bounds = array<i64: 16, 1>}, {transform_indices = @transform_3, window_bounds = array<i64: 1, 16, 32>}]} {
    %c0 = arith.constant 0 : index
    %c0_0 = arith.constant 0 : index
    %c0_1 = arith.constant 0 : index
    %0 = vector.load %arg2[%c0, %c0_0, %c0_1] : memref<1x16x34xbf16, #tpu.memory_space<vmem>>, vector<1x16x34xbf16>
    %1 = vector.shape_cast %0 : vector<1x16x34xbf16> to vector<16x34xbf16>
    %2 = arith.extf %1 : vector<16x34xbf16> to vector<16x34xf32>
    %3 = arith.truncf %2 : vector<16x34xf32> to vector<16x34xbf16>
    %4 = vector.extract_strided_slice %3 {offsets = [0, 0], sizes = [16, 32], strides = [1, 1]} : vector<16x34xbf16> to vector<16x32xbf16>
    %5 = vector.extract_strided_slice %3 {offsets = [0, 1], sizes = [16, 32], strides = [1, 1]} : vector<16x34xbf16> to vector<16x32xbf16>
    %6 = vector.extract_strided_slice %3 {offsets = [0, 2], sizes = [16, 32], strides = [1, 1]} : vector<16x34xbf16> to vector<16x32xbf16>
    %7 = tpu.concatenate %4, %5, %6 in 0 : vector<16x32xbf16>, vector<16x32xbf16>, vector<16x32xbf16> -> vector<48x32xbf16>
    %c0_2 = arith.constant 0 : index
    %c0_3 = arith.constant 0 : index
    %8 = vector.load %arg3[%c0_2, %c0_3] : memref<16x48xbf16, #tpu.memory_space<vmem>>, vector<16x48xbf16>
    %cst = arith.constant dense<0.000000e+00> : vector<16x32xf32>
    %9 = tpu.matmul %8, %7, %cst {dimension_numbers = #tpu.dot_dimension_numbers<[1], [0], [0], [1], [0, 0, 1, 1], [], []>} : vector<16x48xbf16>, vector<48x32xbf16>, vector<16x32xf32> -> vector<16x32xf32>
    %c0_4 = arith.constant 0 : index
    %c0_5 = arith.constant 0 : index
    %10 = vector.load %arg4[%c0_4, %c0_5] : memref<16x1xf32, #tpu.memory_space<vmem>>, vector<16x1xf32>
    %11 = vector.broadcast %10 : vector<16x1xf32> to vector<16x32xf32>
    %12 = arith.addf %9, %11 : vector<16x32xf32>
    %cst_6 = arith.constant 2.000000e+01 : f32
    %13 = vector.broadcast %cst_6 : f32 to vector<16x32xf32>
    %14 = arith.minimumf %12, %13 : vector<16x32xf32>
    %15 = math.exp %14 : vector<16x32xf32>
    %cst_7 = arith.constant 2.000000e+00 : f32
    %16 = vector.broadcast %cst_7 : f32 to vector<16x32xf32>
    %17 = arith.addf %15, %16 : vector<16x32xf32>
    %18 = arith.mulf %15, %17 : vector<16x32xf32>
    %cst_8 = arith.constant 2.000000e+00 : f32
    %19 = vector.broadcast %cst_8 : f32 to vector<16x32xf32>
    %20 = arith.addf %18, %19 : vector<16x32xf32>
    %21 = tpu.reciprocal %20 {approx = true} : vector<16x32xf32> -> vector<16x32xf32>
    %22 = arith.mulf %20, %21 : vector<16x32xf32>
    %cst_9 = arith.constant 2.000000e+00 : f32
    %23 = vector.broadcast %cst_9 : f32 to vector<16x32xf32>
    %24 = arith.subf %23, %22 : vector<16x32xf32>
    %25 = arith.mulf %21, %24 : vector<16x32xf32>
    %26 = arith.mulf %12, %18 : vector<16x32xf32>
    %27 = arith.mulf %26, %25 : vector<16x32xf32>
    %28 = arith.truncf %27 : vector<16x32xf32> to vector<16x32xbf16>
    %c0_10 = arith.constant 0 : index
    %c0_11 = arith.constant 0 : index
    %c0_12 = arith.constant 0 : index
    %29 = vector.load %arg5[%c0_10, %c0_11, %c0_12] : memref<1x16x32xbf16, #tpu.memory_space<vmem>>, vector<1x16x32xbf16>
    %30 = vector.shape_cast %29 : vector<1x16x32xbf16> to vector<16x32xbf16>
    %31 = vector.shape_cast %28 : vector<16x32xbf16> to vector<1x16x32xbf16>
    tpu.vector_store %arg5[%c0_10, %c0_11, %c0_12], %31 {strides = array<i32>} : memref<1x16x32xbf16, #tpu.memory_space<vmem>>, vector<1x16x32xbf16>,
    return
  }
  func.func @transform_0(%arg0: i32, %arg1: i32) -> (i32, i32, i32) {
    %c0_i32 = arith.constant 0 : i32
    %c0_i32_0 = arith.constant 0 : i32
    %c0_i32_1 = arith.constant 0 : i32
    return %arg0, %c0_i32, %c0_i32_0 : i32, i32, i32
  }
  func.func @transform_1(%arg0: i32, %arg1: i32) -> (i32, i32) {
    %c0_i32 = arith.constant 0 : i32
    %c0_i32_0 = arith.constant 0 : i32
    %c0_i32_1 = arith.constant 0 : i32
    return %c0_i32, %c0_i32_0 : i32, i32
  }
  func.func @transform_2(%arg0: i32, %arg1: i32) -> (i32, i32) {
    %c0_i32 = arith.constant 0 : i32
    %c0_i32_0 = arith.constant 0 : i32
    %c0_i32_1 = arith.constant 0 : i32
    return %c0_i32, %c0_i32_0 : i32, i32
  }
  func.func @transform_3(%arg0: i32, %arg1: i32) -> (i32, i32, i32) {
    %c0_i32 = arith.constant 0 : i32
    %c0_i32_0 = arith.constant 0 : i32
    return %arg0, %c0_i32, %arg1 : i32, i32, i32
  }
}

module attributes {stable_mosaic.version = 11 : i64} {
  func.func @_conv1d_kernel(%arg0: i32, %arg1: i32, %arg2: memref<1x16x38xbf16, #tpu.memory_space<vmem>>, %arg3: memref<16x48xbf16, #tpu.memory_space<vmem>>, %arg4: memref<16x1xf32, #tpu.memory_space<vmem>>, %arg5: memref<1x16x32xbf16, #tpu.memory_space<vmem>>) attributes {dimension_semantics = [#tpu.dimension_semantics<parallel>, #tpu.dimension_semantics<parallel>], iteration_bounds = array<i64: 2, 1>, scalar_prefetch = 0 : i64, scratch_operands = 0 : i64, tpu.core_type = #tpu.core_type<tc>, window_params = [{transform_indices = @transform_0, window_bounds = array<i64: 1, 16, 38>}, {pipeline_mode = #tpu.pipeline_mode<synchronous>, transform_indices = @transform_1, window_bounds = array<i64: 16, 48>}, {pipeline_mode = #tpu.pipeline_mode<synchronous>, transform_indices = @transform_2, window_bounds = array<i64: 16, 1>}, {transform_indices = @transform_3, window_bounds = array<i64: 1, 16, 32>}]} {
    %c0 = arith.constant 0 : index
    %c0_0 = arith.constant 0 : index
    %c0_1 = arith.constant 0 : index
    %0 = vector.load %arg2[%c0, %c0_0, %c0_1] : memref<1x16x38xbf16, #tpu.memory_space<vmem>>, vector<1x16x38xbf16>
    %1 = vector.shape_cast %0 : vector<1x16x38xbf16> to vector<16x38xbf16>
    %2 = arith.extf %1 : vector<16x38xbf16> to vector<16x38xf32>
    %3 = arith.truncf %2 : vector<16x38xf32> to vector<16x38xbf16>
    %4 = vector.extract_strided_slice %3 {offsets = [0, 0], sizes = [16, 32], strides = [1, 1]} : vector<16x38xbf16> to vector<16x32xbf16>
    %5 = vector.extract_strided_slice %3 {offsets = [0, 3], sizes = [16, 32], strides = [1, 1]} : vector<16x38xbf16> to vector<16x32xbf16>
    %6 = vector.extract_strided_slice %3 {offsets = [0, 6], sizes = [16, 32], strides = [1, 1]} : vector<16x38xbf16> to vector<16x32xbf16>
    %7 = tpu.concatenate %4, %5, %6 in 0 : vector<16x32xbf16>, vector<16x32xbf16>, vector<16x32xbf16> -> vector<48x32xbf16>
    %c0_2 = arith.constant 0 : index
    %c0_3 = arith.constant 0 : index
    %8 = vector.load %arg3[%c0_2, %c0_3] : memref<16x48xbf16, #tpu.memory_space<vmem>>, vector<16x48xbf16>
    %cst = arith.constant dense<0.000000e+00> : vector<16x32xf32>
    %9 = tpu.matmul %8, %7, %cst {dimension_numbers = #tpu.dot_dimension_numbers<[1], [0], [0], [1], [0, 0, 1, 1], [], []>} : vector<16x48xbf16>, vector<48x32xbf16>, vector<16x32xf32> -> vector<16x32xf32>
    %c0_4 = arith.constant 0 : index
    %c0_5 = arith.constant 0 : index
    %10 = vector.load %arg4[%c0_4, %c0_5] : memref<16x1xf32, #tpu.memory_space<vmem>>, vector<16x1xf32>
    %11 = vector.broadcast %10 : vector<16x1xf32> to vector<16x32xf32>
    %12 = arith.addf %9, %11 : vector<16x32xf32>
    %cst_6 = arith.constant 2.000000e+01 : f32
    %13 = vector.broadcast %cst_6 : f32 to vector<16x32xf32>
    %14 = arith.minimumf %12, %13 : vector<16x32xf32>
    %15 = math.exp %14 : vector<16x32xf32>
    %cst_7 = arith.constant 2.000000e+00 : f32
    %16 = vector.broadcast %cst_7 : f32 to vector<16x32xf32>
    %17 = arith.addf %15, %16 : vector<16x32xf32>
    %18 = arith.mulf %15, %17 : vector<16x32xf32>
    %cst_8 = arith.constant 2.000000e+00 : f32
    %19 = vector.broadcast %cst_8 : f32 to vector<16x32xf32>
    %20 = arith.addf %18, %19 : vector<16x32xf32>
    %21 = tpu.reciprocal %20 {approx = true} : vector<16x32xf32> -> vector<16x32xf32>
    %22 = arith.mulf %20, %21 : vector<16x32xf32>
    %cst_9 = arith.constant 2.000000e+00 : f32
    %23 = vector.broadcast %cst_9 : f32 to vector<16x32xf32>
    %24 = arith.subf %23, %22 : vector<16x32xf32>
    %25 = arith.mulf %21, %24 : vector<16x32xf32>
    %26 = arith.mulf %12, %18 : vector<16x32xf32>
    %27 = arith.mulf %26, %25 : vector<16x32xf32>
    %28 = arith.truncf %27 : vector<16x32xf32> to vector<16x32xbf16>
    %c0_10 = arith.constant 0 : index
    %c0_11 = arith.constant 0 : index
    %c0_12 = arith.constant 0 : index
    %29 = vector.load %arg5[%c0_10, %c0_11, %c0_12] : memref<1x16x32xbf16, #tpu.memory_space<vmem>>, vector<1x16x32xbf16>
    %30 = vector.shape_cast %29 : vector<1x16x32xbf16> to vector<16x32xbf16>
    %31 = vector.shape_cast %28 : vector<16x32xbf16> to vector<1x16x32xbf16>
    tpu.vector_store %arg5[%c0_10, %c0_11, %c0_12], %31 {strides = array<i32>} : memref<1x16x32xbf16, #tpu.memory_space<vmem>>, vector<1x16x32xbf16>,
    return
  }
  func.func @transform_0(%arg0: i32, %arg1: i32) -> (i32, i32, i32) {
    %c0_i32 = arith.constant 0 : i32
    %c0_i32_0 = arith.constant 0 : i32
    %c0_i32_1 = arith.constant 0 : i32
    return %arg0, %c0_i32, %c0_i32_0 : i32, i32, i32
  }
  func.func @transform_1(%arg0: i32, %arg1: i32) -> (i32, i32) {
    %c0_i32 = arith.constant 0 : i32
    %c0_i32_0 = arith.constant 0 : i32
    %c0_i32_1 = arith.constant 0 : i32
    return %c0_i32, %c0_i32_0 : i32, i32
  }
  func.func @transform_2(%arg0: i32, %arg1: i32) -> (i32, i32) {
    %c0_i32 = arith.constant 0 : i32
    %c0_i32_0 = arith.constant 0 : i32
    %c0_i32_1 = arith.constant 0 : i32
    return %c0_i32, %c0_i32_0 : i32, i32
  }
  func.func @transform_3(%arg0: i32, %arg1: i32) -> (i32, i32, i32) {
    %c0_i32 = arith.constant 0 : i32
    %c0_i32_0 = arith.constant 0 : i32
    return %arg0, %c0_i32, %arg1 : i32, i32, i32
  }
}

module attributes {stable_mosaic.version = 11 : i64} {
  func.func @_conv1d_kernel(%arg0: i32, %arg1: i32, %arg2: memref<1x16x36xbf16, #tpu.memory_space<vmem>>, %arg3: memref<16x80xbf16, #tpu.memory_space<vmem>>, %arg4: memref<16x1xf32, #tpu.memory_space<vmem>>, %arg5: memref<1x16x32xbf16, #tpu.memory_space<vmem>>) attributes {dimension_semantics = [#tpu.dimension_semantics<parallel>, #tpu.dimension_semantics<parallel>], iteration_bounds = array<i64: 2, 1>, scalar_prefetch = 0 : i64, scratch_operands = 0 : i64, tpu.core_type = #tpu.core_type<tc>, window_params = [{transform_indices = @transform_0, window_bounds = array<i64: 1, 16, 36>}, {pipeline_mode = #tpu.pipeline_mode<synchronous>, transform_indices = @transform_1, window_bounds = array<i64: 16, 80>}, {pipeline_mode = #tpu.pipeline_mode<synchronous>, transform_indices = @transform_2, window_bounds = array<i64: 16, 1>}, {transform_indices = @transform_3, window_bounds = array<i64: 1, 16, 32>}]} {
    %c0 = arith.constant 0 : index
    %c0_0 = arith.constant 0 : index
    %c0_1 = arith.constant 0 : index
    %0 = vector.load %arg2[%c0, %c0_0, %c0_1] : memref<1x16x36xbf16, #tpu.memory_space<vmem>>, vector<1x16x36xbf16>
    %1 = vector.shape_cast %0 : vector<1x16x36xbf16> to vector<16x36xbf16>
    %2 = arith.extf %1 : vector<16x36xbf16> to vector<16x36xf32>
    %3 = arith.truncf %2 : vector<16x36xf32> to vector<16x36xbf16>
    %4 = vector.extract_strided_slice %3 {offsets = [0, 0], sizes = [16, 32], strides = [1, 1]} : vector<16x36xbf16> to vector<16x32xbf16>
    %5 = vector.extract_strided_slice %3 {offsets = [0, 1], sizes = [16, 32], strides = [1, 1]} : vector<16x36xbf16> to vector<16x32xbf16>
    %6 = vector.extract_strided_slice %3 {offsets = [0, 2], sizes = [16, 32], strides = [1, 1]} : vector<16x36xbf16> to vector<16x32xbf16>
    %7 = vector.extract_strided_slice %3 {offsets = [0, 3], sizes = [16, 32], strides = [1, 1]} : vector<16x36xbf16> to vector<16x32xbf16>
    %8 = vector.extract_strided_slice %3 {offsets = [0, 4], sizes = [16, 32], strides = [1, 1]} : vector<16x36xbf16> to vector<16x32xbf16>
    %9 = tpu.concatenate %4, %5, %6, %7, %8 in 0 : vector<16x32xbf16>, vector<16x32xbf16>, vector<16x32xbf16>, vector<16x32xbf16>, vector<16x32xbf16> -> vector<80x32xbf16>
    %c0_2 = arith.constant 0 : index
    %c0_3 = arith.constant 0 : index
    %10 = vector.load %arg3[%c0_2, %c0_3] : memref<16x80xbf16, #tpu.memory_space<vmem>>, vector<16x80xbf16>
    %cst = arith.constant dense<0.000000e+00> : vector<16x32xf32>
    %11 = tpu.matmul %10, %9, %cst {dimension_numbers = #tpu.dot_dimension_numbers<[1], [0], [0], [1], [0, 0, 1, 1], [], []>} : vector<16x80xbf16>, vector<80x32xbf16>, vector<16x32xf32> -> vector<16x32xf32>
    %c0_4 = arith.constant 0 : index
    %c0_5 = arith.constant 0 : index
    %12 = vector.load %arg4[%c0_4, %c0_5] : memref<16x1xf32, #tpu.memory_space<vmem>>, vector<16x1xf32>
    %13 = vector.broadcast %12 : vector<16x1xf32> to vector<16x32xf32>
    %14 = arith.addf %11, %13 : vector<16x32xf32>
    %cst_6 = arith.constant 2.000000e+01 : f32
    %15 = vector.broadcast %cst_6 : f32 to vector<16x32xf32>
    %16 = arith.minimumf %14, %15 : vector<16x32xf32>
    %17 = math.exp %16 : vector<16x32xf32>
    %cst_7 = arith.constant 2.000000e+00 : f32
    %18 = vector.broadcast %cst_7 : f32 to vector<16x32xf32>
    %19 = arith.addf %17, %18 : vector<16x32xf32>
    %20 = arith.mulf %17, %19 : vector<16x32xf32>
    %cst_8 = arith.constant 2.000000e+00 : f32
    %21 = vector.broadcast %cst_8 : f32 to vector<16x32xf32>
    %22 = arith.addf %20, %21 : vector<16x32xf32>
    %23 = tpu.reciprocal %22 {approx = true} : vector<16x32xf32> -> vector<16x32xf32>
    %24 = arith.mulf %22, %23 : vector<16x32xf32>
    %cst_9 = arith.constant 2.000000e+00 : f32
    %25 = vector.broadcast %cst_9 : f32 to vector<16x32xf32>
    %26 = arith.subf %25, %24 : vector<16x32xf32>
    %27 = arith.mulf %23, %26 : vector<16x32xf32>
    %28 = arith.mulf %14, %20 : vector<16x32xf32>
    %29 = arith.mulf %28, %27 : vector<16x32xf32>
    %cst_10 = arith.constant 5.000000e-01 : f32
    %30 = vector.broadcast %cst_10 : f32 to vector<16x32xf32>
    %31 = arith.mulf %29, %30 : vector<16x32xf32>
    %32 = arith.truncf %31 : vector<16x32xf32> to vector<16x32xbf16>
    %c0_11 = arith.constant 0 : index
    %c0_12 = arith.constant 0 : index
    %c0_13 = arith.constant 0 : index
    %33 = vector.load %arg5[%c0_11, %c0_12, %c0_13] : memref<1x16x32xbf16, #tpu.memory_space<vmem>>, vector<1x16x32xbf16>
    %34 = vector.shape_cast %33 : vector<1x16x32xbf16> to vector<16x32xbf16>
    %35 = vector.shape_cast %32 : vector<16x32xbf16> to vector<1x16x32xbf16>
    tpu.vector_store %arg5[%c0_11, %c0_12, %c0_13], %35 {strides = array<i32>} : memref<1x16x32xbf16, #tpu.memory_space<vmem>>, vector<1x16x32xbf16>,
    return
  }
  func.func @transform_0(%arg0: i32, %arg1: i32) -> (i32, i32, i32) {
    %c0_i32 = arith.constant 0 : i32
    %c0_i32_0 = arith.constant 0 : i32
    %c0_i32_1 = arith.constant 0 : i32
    return %arg0, %c0_i32, %c0_i32_0 : i32, i32, i32
  }
  func.func @transform_1(%arg0: i32, %arg1: i32) -> (i32, i32) {
    %c0_i32 = arith.constant 0 : i32
    %c0_i32_0 = arith.constant 0 : i32
    %c0_i32_1 = arith.constant 0 : i32
    return %c0_i32, %c0_i32_0 : i32, i32
  }
  func.func @transform_2(%arg0: i32, %arg1: i32) -> (i32, i32) {
    %c0_i32 = arith.constant 0 : i32
    %c0_i32_0 = arith.constant 0 : i32
    %c0_i32_1 = arith.constant 0 : i32
    return %c0_i32, %c0_i32_0 : i32, i32
  }
  func.func @transform_3(%arg0: i32, %arg1: i32) -> (i32, i32, i32) {
    %c0_i32 = arith.constant 0 : i32
    %c0_i32_0 = arith.constant 0 : i32
    return %arg0, %c0_i32, %arg1 : i32, i32, i32
  }
}

module attributes {stable_mosaic.version = 11 : i64} {
  func.func @_conv1d_kernel(%arg0: i32, %arg1: i32, %arg2: memref<1x16x36xbf16, #tpu.memory_space<vmem>>, %arg3: memref<16x80xbf16, #tpu.memory_space<vmem>>, %arg4: memref<16x1xf32, #tpu.memory_space<vmem>>, %arg5: memref<1x16x32xbf16, #tpu.memory_space<vmem>>) attributes {dimension_semantics = [#tpu.dimension_semantics<parallel>, #tpu.dimension_semantics<parallel>], iteration_bounds = array<i64: 2, 1>, scalar_prefetch = 0 : i64, scratch_operands = 0 : i64, tpu.core_type = #tpu.core_type<tc>, window_params = [{transform_indices = @transform_0, window_bounds = array<i64: 1, 16, 36>}, {pipeline_mode = #tpu.pipeline_mode<synchronous>, transform_indices = @transform_1, window_bounds = array<i64: 16, 80>}, {pipeline_mode = #tpu.pipeline_mode<synchronous>, transform_indices = @transform_2, window_bounds = array<i64: 16, 1>}, {transform_indices = @transform_3, window_bounds = array<i64: 1, 16, 32>}]} {
    %c0 = arith.constant 0 : index
    %c0_0 = arith.constant 0 : index
    %c0_1 = arith.constant 0 : index
    %0 = vector.load %arg2[%c0, %c0_0, %c0_1] : memref<1x16x36xbf16, #tpu.memory_space<vmem>>, vector<1x16x36xbf16>
    %1 = vector.shape_cast %0 : vector<1x16x36xbf16> to vector<16x36xbf16>
    %2 = arith.extf %1 : vector<16x36xbf16> to vector<16x36xf32>
    %cst = arith.constant 2.000000e+01 : f32
    %3 = vector.broadcast %cst : f32 to vector<16x36xf32>
    %4 = arith.minimumf %2, %3 : vector<16x36xf32>
    %5 = math.exp %4 : vector<16x36xf32>
    %cst_2 = arith.constant 2.000000e+00 : f32
    %6 = vector.broadcast %cst_2 : f32 to vector<16x36xf32>
    %7 = arith.addf %5, %6 : vector<16x36xf32>
    %8 = arith.mulf %5, %7 : vector<16x36xf32>
    %cst_3 = arith.constant 2.000000e+00 : f32
    %9 = vector.broadcast %cst_3 : f32 to vector<16x36xf32>
    %10 = arith.addf %8, %9 : vector<16x36xf32>
    %11 = tpu.reciprocal %10 {approx = true} : vector<16x36xf32> -> vector<16x36xf32>
    %12 = arith.mulf %10, %11 : vector<16x36xf32>
    %cst_4 = arith.constant 2.000000e+00 : f32
    %13 = vector.broadcast %cst_4 : f32 to vector<16x36xf32>
    %14 = arith.subf %13, %12 : vector<16x36xf32>
    %15 = arith.mulf %11, %14 : vector<16x36xf32>
    %16 = arith.mulf %2, %8 : vector<16x36xf32>
    %17 = arith.mulf %16, %15 : vector<16x36xf32>
    %18 = arith.truncf %17 : vector<16x36xf32> to vector<16x36xbf16>
    %19 = vector.extract_strided_slice %18 {offsets = [0, 0], sizes = [16, 32], strides = [1, 1]} : vector<16x36xbf16> to vector<16x32xbf16>
    %20 = vector.extract_strided_slice %18 {offsets = [0, 1], sizes = [16, 32], strides = [1, 1]} : vector<16x36xbf16> to vector<16x32xbf16>
    %21 = vector.extract_strided_slice %18 {offsets = [0, 2], sizes = [16, 32], strides = [1, 1]} : vector<16x36xbf16> to vector<16x32xbf16>
    %22 = vector.extract_strided_slice %18 {offsets = [0, 3], sizes = [16, 32], strides = [1, 1]} : vector<16x36xbf16> to vector<16x32xbf16>
    %23 = vector.extract_strided_slice %18 {offsets = [0, 4], sizes = [16, 32], strides = [1, 1]} : vector<16x36xbf16> to vector<16x32xbf16>
    %24 = tpu.concatenate %19, %20, %21, %22, %23 in 0 : vector<16x32xbf16>, vector<16x32xbf16>, vector<16x32xbf16>, vector<16x32xbf16>, vector<16x32xbf16> -> vector<80x32xbf16>
    %c0_5 = arith.constant 0 : index
    %c0_6 = arith.constant 0 : index
    %25 = vector.load %arg3[%c0_5, %c0_6] : memref<16x80xbf16, #tpu.memory_space<vmem>>, vector<16x80xbf16>
    %cst_7 = arith.constant dense<0.000000e+00> : vector<16x32xf32>
    %26 = tpu.matmul %25, %24, %cst_7 {dimension_numbers = #tpu.dot_dimension_numbers<[1], [0], [0], [1], [0, 0, 1, 1], [], []>} : vector<16x80xbf16>, vector<80x32xbf16>, vector<16x32xf32> -> vector<16x32xf32>
    %c0_8 = arith.constant 0 : index
    %c0_9 = arith.constant 0 : index
    %27 = vector.load %arg4[%c0_8, %c0_9] : memref<16x1xf32, #tpu.memory_space<vmem>>, vector<16x1xf32>
    %28 = vector.broadcast %27 : vector<16x1xf32> to vector<16x32xf32>
    %29 = arith.addf %26, %28 : vector<16x32xf32>
    %cst_10 = arith.constant 2.000000e+01 : f32
    %30 = vector.broadcast %cst_10 : f32 to vector<16x32xf32>
    %31 = arith.minimumf %29, %30 : vector<16x32xf32>
    %32 = math.exp %31 : vector<16x32xf32>
    %cst_11 = arith.constant 2.000000e+00 : f32
    %33 = vector.broadcast %cst_11 : f32 to vector<16x32xf32>
    %34 = arith.addf %32, %33 : vector<16x32xf32>
    %35 = arith.mulf %32, %34 : vector<16x32xf32>
    %cst_12 = arith.constant 2.000000e+00 : f32
    %36 = vector.broadcast %cst_12 : f32 to vector<16x32xf32>
    %37 = arith.addf %35, %36 : vector<16x32xf32>
    %38 = tpu.reciprocal %37 {approx = true} : vector<16x32xf32> -> vector<16x32xf32>
    %39 = arith.mulf %37, %38 : vector<16x32xf32>
    %cst_13 = arith.constant 2.000000e+00 : f32
    %40 = vector.broadcast %cst_13 : f32 to vector<16x32xf32>
    %41 = arith.subf %40, %39 : vector<16x32xf32>
    %42 = arith.mulf %38, %41 : vector<16x32xf32>
    %43 = arith.mulf %29, %35 : vector<16x32xf32>
    %44 = arith.mulf %43, %42 : vector<16x32xf32>
    %45 = arith.truncf %44 : vector<16x32xf32> to vector<16x32xbf16>
    %c0_14 = arith.constant 0 : index
    %c0_15 = arith.constant 0 : index
    %c0_16 = arith.constant 0 : index
    %46 = vector.load %arg5[%c0_14, %c0_15, %c0_16] : memref<1x16x32xbf16, #tpu.memory_space<vmem>>, vector<1x16x32xbf16>
    %47 = vector.shape_cast %46 : vector<1x16x32xbf16> to vector<16x32xbf16>
    %48 = vector.shape_cast %45 : vector<16x32xbf16> to vector<1x16x32xbf16>
    tpu.vector_store %arg5[%c0_14, %c0_15, %c0_16], %48 {strides = array<i32>} : memref<1x16x32xbf16, #tpu.memory_space<vmem>>, vector<1x16x32xbf16>,
    return
  }
  func.func @transform_0(%arg0: i32, %arg1: i32) -> (i32, i32, i32) {
    %c0_i32 = arith.constant 0 : i32
    %c0_i32_0 = arith.constant 0 : i32
    %c0_i32_1 = arith.constant 0 : i32
    return %arg0, %c0_i32, %c0_i32_0 : i32, i32, i32
  }
  func.func @transform_1(%arg0: i32, %arg1: i32) -> (i32, i32) {
    %c0_i32 = arith.constant 0 : i32
    %c0_i32_0 = arith.constant 0 : i32
    %c0_i32_1 = arith.constant 0 : i32
    return %c0_i32, %c0_i32_0 : i32, i32
  }
  func.func @transform_2(%arg0: i32, %arg1: i32) -> (i32, i32) {
    %c0_i32 = arith.constant 0 : i32
    %c0_i32_0 = arith.constant 0 : i32
    %c0_i32_1 = arith.constant 0 : i32
    return %c0_i32, %c0_i32_0 : i32, i32
  }
  func.func @transform_3(%arg0: i32, %arg1: i32) -> (i32, i32, i32) {
    %c0_i32 = arith.constant 0 : i32
    %c0_i32_0 = arith.constant 0 : i32
    return %arg0, %c0_i32, %arg1 : i32, i32, i32
  }
}

module attributes {stable_mosaic.version = 11 : i64} {
  func.func @_conv1d_kernel(%arg0: i32, %arg1: i32, %arg2: memref<1x16x44xbf16, #tpu.memory_space<vmem>>, %arg3: memref<16x80xbf16, #tpu.memory_space<vmem>>, %arg4: memref<16x1xf32, #tpu.memory_space<vmem>>, %arg5: memref<1x16x32xbf16, #tpu.memory_space<vmem>>) attributes {dimension_semantics = [#tpu.dimension_semantics<parallel>, #tpu.dimension_semantics<parallel>], iteration_bounds = array<i64: 2, 1>, scalar_prefetch = 0 : i64, scratch_operands = 0 : i64, tpu.core_type = #tpu.core_type<tc>, window_params = [{transform_indices = @transform_0, window_bounds = array<i64: 1, 16, 44>}, {pipeline_mode = #tpu.pipeline_mode<synchronous>, transform_indices = @transform_1, window_bounds = array<i64: 16, 80>}, {pipeline_mode = #tpu.pipeline_mode<synchronous>, transform_indices = @transform_2, window_bounds = array<i64: 16, 1>}, {transform_indices = @transform_3, window_bounds = array<i64: 1, 16, 32>}]} {
    %c0 = arith.constant 0 : index
    %c0_0 = arith.constant 0 : index
    %c0_1 = arith.constant 0 : index
    %0 = vector.load %arg2[%c0, %c0_0, %c0_1] : memref<1x16x44xbf16, #tpu.memory_space<vmem>>, vector<1x16x44xbf16>
    %1 = vector.shape_cast %0 : vector<1x16x44xbf16> to vector<16x44xbf16>
    %2 = arith.extf %1 : vector<16x44xbf16> to vector<16x44xf32>
    %cst = arith.constant 2.000000e+01 : f32
    %3 = vector.broadcast %cst : f32 to vector<16x44xf32>
    %4 = arith.minimumf %2, %3 : vector<16x44xf32>
    %5 = math.exp %4 : vector<16x44xf32>
    %cst_2 = arith.constant 2.000000e+00 : f32
    %6 = vector.broadcast %cst_2 : f32 to vector<16x44xf32>
    %7 = arith.addf %5, %6 : vector<16x44xf32>
    %8 = arith.mulf %5, %7 : vector<16x44xf32>
    %cst_3 = arith.constant 2.000000e+00 : f32
    %9 = vector.broadcast %cst_3 : f32 to vector<16x44xf32>
    %10 = arith.addf %8, %9 : vector<16x44xf32>
    %11 = tpu.reciprocal %10 {approx = true} : vector<16x44xf32> -> vector<16x44xf32>
    %12 = arith.mulf %10, %11 : vector<16x44xf32>
    %cst_4 = arith.constant 2.000000e+00 : f32
    %13 = vector.broadcast %cst_4 : f32 to vector<16x44xf32>
    %14 = arith.subf %13, %12 : vector<16x44xf32>
    %15 = arith.mulf %11, %14 : vector<16x44xf32>
    %16 = arith.mulf %2, %8 : vector<16x44xf32>
    %17 = arith.mulf %16, %15 : vector<16x44xf32>
    %18 = arith.truncf %17 : vector<16x44xf32> to vector<16x44xbf16>
    %19 = vector.extract_strided_slice %18 {offsets = [0, 0], sizes = [16, 32], strides = [1, 1]} : vector<16x44xbf16> to vector<16x32xbf16>
    %20 = vector.extract_strided_slice %18 {offsets = [0, 3], sizes = [16, 32], strides = [1, 1]} : vector<16x44xbf16> to vector<16x32xbf16>
    %21 = vector.extract_strided_slice %18 {offsets = [0, 6], sizes = [16, 32], strides = [1, 1]} : vector<16x44xbf16> to vector<16x32xbf16>
    %22 = vector.extract_strided_slice %18 {offsets = [0, 9], sizes = [16, 32], strides = [1, 1]} : vector<16x44xbf16> to vector<16x32xbf16>
    %23 = vector.extract_strided_slice %18 {offsets = [0, 12], sizes = [16, 32], strides = [1, 1]} : vector<16x44xbf16> to vector<16x32xbf16>
    %24 = tpu.concatenate %19, %20, %21, %22, %23 in 0 : vector<16x32xbf16>, vector<16x32xbf16>, vector<16x32xbf16>, vector<16x32xbf16>, vector<16x32xbf16> -> vector<80x32xbf16>
    %c0_5 = arith.constant 0 : index
    %c0_6 = arith.constant 0 : index
    %25 = vector.load %arg3[%c0_5, %c0_6] : memref<16x80xbf16, #tpu.memory_space<vmem>>, vector<16x80xbf16>
    %cst_7 = arith.constant dense<0.000000e+00> : vector<16x32xf32>
    %26 = tpu.matmul %25, %24, %cst_7 {dimension_numbers = #tpu.dot_dimension_numbers<[1], [0], [0], [1], [0, 0, 1, 1], [], []>} : vector<16x80xbf16>, vector<80x32xbf16>, vector<16x32xf32> -> vector<16x32xf32>
    %c0_8 = arith.constant 0 : index
    %c0_9 = arith.constant 0 : index
    %27 = vector.load %arg4[%c0_8, %c0_9] : memref<16x1xf32, #tpu.memory_space<vmem>>, vector<16x1xf32>
    %28 = vector.broadcast %27 : vector<16x1xf32> to vector<16x32xf32>
    %29 = arith.addf %26, %28 : vector<16x32xf32>
    %cst_10 = arith.constant 2.000000e+01 : f32
    %30 = vector.broadcast %cst_10 : f32 to vector<16x32xf32>
    %31 = arith.minimumf %29, %30 : vector<16x32xf32>
    %32 = math.exp %31 : vector<16x32xf32>
    %cst_11 = arith.constant 2.000000e+00 : f32
    %33 = vector.broadcast %cst_11 : f32 to vector<16x32xf32>
    %34 = arith.addf %32, %33 : vector<16x32xf32>
    %35 = arith.mulf %32, %34 : vector<16x32xf32>
    %cst_12 = arith.constant 2.000000e+00 : f32
    %36 = vector.broadcast %cst_12 : f32 to vector<16x32xf32>
    %37 = arith.addf %35, %36 : vector<16x32xf32>
    %38 = tpu.reciprocal %37 {approx = true} : vector<16x32xf32> -> vector<16x32xf32>
    %39 = arith.mulf %37, %38 : vector<16x32xf32>
    %cst_13 = arith.constant 2.000000e+00 : f32
    %40 = vector.broadcast %cst_13 : f32 to vector<16x32xf32>
    %41 = arith.subf %40, %39 : vector<16x32xf32>
    %42 = arith.mulf %38, %41 : vector<16x32xf32>
    %43 = arith.mulf %29, %35 : vector<16x32xf32>
    %44 = arith.mulf %43, %42 : vector<16x32xf32>
    %45 = arith.truncf %44 : vector<16x32xf32> to vector<16x32xbf16>
    %c0_14 = arith.constant 0 : index
    %c0_15 = arith.constant 0 : index
    %c0_16 = arith.constant 0 : index
    %46 = vector.load %arg5[%c0_14, %c0_15, %c0_16] : memref<1x16x32xbf16, #tpu.memory_space<vmem>>, vector<1x16x32xbf16>
    %47 = vector.shape_cast %46 : vector<1x16x32xbf16> to vector<16x32xbf16>
    %48 = vector.shape_cast %45 : vector<16x32xbf16> to vector<1x16x32xbf16>
    tpu.vector_store %arg5[%c0_14, %c0_15, %c0_16], %48 {strides = array<i32>} : memref<1x16x32xbf16, #tpu.memory_space<vmem>>, vector<1x16x32xbf16>,
    return
  }
  func.func @transform_0(%arg0: i32, %arg1: i32) -> (i32, i32, i32) {
    %c0_i32 = arith.constant 0 : i32
    %c0_i32_0 = arith.constant 0 : i32
    %c0_i32_1 = arith.constant 0 : i32
    return %arg0, %c0_i32, %c0_i32_0 : i32, i32, i32
  }
  func.func @transform_1(%arg0: i32, %arg1: i32) -> (i32, i32) {
    %c0_i32 = arith.constant 0 : i32
    %c0_i32_0 = arith.constant 0 : i32
    %c0_i32_1 = arith.constant 0 : i32
    return %c0_i32, %c0_i32_0 : i32, i32
  }
  func.func @transform_2(%arg0: i32, %arg1: i32) -> (i32, i32) {
    %c0_i32 = arith.constant 0 : i32
    %c0_i32_0 = arith.constant 0 : i32
    %c0_i32_1 = arith.constant 0 : i32
    return %c0_i32, %c0_i32_0 : i32, i32
  }
  func.func @transform_3(%arg0: i32, %arg1: i32) -> (i32, i32, i32) {
    %c0_i32 = arith.constant 0 : i32
    %c0_i32_0 = arith.constant 0 : i32
    return %arg0, %c0_i32, %arg1 : i32, i32, i32
  }
}

module attributes {stable_mosaic.version = 11 : i64} {
  func.func @_mish_avg_kernel(%arg0: i32, %arg1: i32, %arg2: memref<1x16x32xbf16, #tpu.memory_space<vmem>>, %arg3: memref<1x16x32xbf16, #tpu.memory_space<vmem>>, %arg4: memref<1x16x32xbf16, #tpu.memory_space<vmem>>) attributes {dimension_semantics = [#tpu.dimension_semantics<parallel>, #tpu.dimension_semantics<parallel>], iteration_bounds = array<i64: 2, 1>, scalar_prefetch = 0 : i64, scratch_operands = 0 : i64, tpu.core_type = #tpu.core_type<tc>, window_params = [{transform_indices = @transform_0, window_bounds = array<i64: 1, 16, 32>}, {transform_indices = @transform_1, window_bounds = array<i64: 1, 16, 32>}, {transform_indices = @transform_2, window_bounds = array<i64: 1, 16, 32>}]} {
    %c0 = arith.constant 0 : index
    %c0_0 = arith.constant 0 : index
    %c0_1 = arith.constant 0 : index
    %0 = vector.load %arg2[%c0, %c0_0, %c0_1] : memref<1x16x32xbf16, #tpu.memory_space<vmem>>, vector<1x16x32xbf16>
    %1 = vector.shape_cast %0 : vector<1x16x32xbf16> to vector<16x32xbf16>
    %2 = arith.extf %1 : vector<16x32xbf16> to vector<16x32xf32>
    %cst = arith.constant 2.000000e+01 : f32
    %3 = vector.broadcast %cst : f32 to vector<16x32xf32>
    %4 = arith.minimumf %2, %3 : vector<16x32xf32>
    %5 = math.exp %4 : vector<16x32xf32>
    %cst_2 = arith.constant 2.000000e+00 : f32
    %6 = vector.broadcast %cst_2 : f32 to vector<16x32xf32>
    %7 = arith.addf %5, %6 : vector<16x32xf32>
    %8 = arith.mulf %5, %7 : vector<16x32xf32>
    %cst_3 = arith.constant 2.000000e+00 : f32
    %9 = vector.broadcast %cst_3 : f32 to vector<16x32xf32>
    %10 = arith.addf %8, %9 : vector<16x32xf32>
    %11 = tpu.reciprocal %10 {approx = true} : vector<16x32xf32> -> vector<16x32xf32>
    %12 = arith.mulf %10, %11 : vector<16x32xf32>
    %cst_4 = arith.constant 2.000000e+00 : f32
    %13 = vector.broadcast %cst_4 : f32 to vector<16x32xf32>
    %14 = arith.subf %13, %12 : vector<16x32xf32>
    %15 = arith.mulf %11, %14 : vector<16x32xf32>
    %16 = arith.mulf %2, %8 : vector<16x32xf32>
    %17 = arith.mulf %16, %15 : vector<16x32xf32>
    %c0_5 = arith.constant 0 : index
    %c0_6 = arith.constant 0 : index
    %c0_7 = arith.constant 0 : index
    %18 = vector.load %arg3[%c0_5, %c0_6, %c0_7] : memref<1x16x32xbf16, #tpu.memory_space<vmem>>, vector<1x16x32xbf16>
    %19 = vector.shape_cast %18 : vector<1x16x32xbf16> to vector<16x32xbf16>
    %20 = arith.extf %19 : vector<16x32xbf16> to vector<16x32xf32>
    %cst_8 = arith.constant 2.000000e+01 : f32
    %21 = vector.broadcast %cst_8 : f32 to vector<16x32xf32>
    %22 = arith.minimumf %20, %21 : vector<16x32xf32>
    %23 = math.exp %22 : vector<16x32xf32>
    %cst_9 = arith.constant 2.000000e+00 : f32
    %24 = vector.broadcast %cst_9 : f32 to vector<16x32xf32>
    %25 = arith.addf %23, %24 : vector<16x32xf32>
    %26 = arith.mulf %23, %25 : vector<16x32xf32>
    %cst_10 = arith.constant 2.000000e+00 : f32
    %27 = vector.broadcast %cst_10 : f32 to vector<16x32xf32>
    %28 = arith.addf %26, %27 : vector<16x32xf32>
    %29 = tpu.reciprocal %28 {approx = true} : vector<16x32xf32> -> vector<16x32xf32>
    %30 = arith.mulf %28, %29 : vector<16x32xf32>
    %cst_11 = arith.constant 2.000000e+00 : f32
    %31 = vector.broadcast %cst_11 : f32 to vector<16x32xf32>
    %32 = arith.subf %31, %30 : vector<16x32xf32>
    %33 = arith.mulf %29, %32 : vector<16x32xf32>
    %34 = arith.mulf %20, %26 : vector<16x32xf32>
    %35 = arith.mulf %34, %33 : vector<16x32xf32>
    %36 = arith.addf %17, %35 : vector<16x32xf32>
    %cst_12 = arith.constant 5.000000e-01 : f32
    %37 = vector.broadcast %cst_12 : f32 to vector<16x32xf32>
    %38 = arith.mulf %36, %37 : vector<16x32xf32>
    %39 = arith.truncf %38 : vector<16x32xf32> to vector<16x32xbf16>
    %c0_13 = arith.constant 0 : index
    %c0_14 = arith.constant 0 : index
    %c0_15 = arith.constant 0 : index
    %40 = vector.load %arg4[%c0_13, %c0_14, %c0_15] : memref<1x16x32xbf16, #tpu.memory_space<vmem>>, vector<1x16x32xbf16>
    %41 = vector.shape_cast %40 : vector<1x16x32xbf16> to vector<16x32xbf16>
    %42 = vector.shape_cast %39 : vector<16x32xbf16> to vector<1x16x32xbf16>
    tpu.vector_store %arg4[%c0_13, %c0_14, %c0_15], %42 {strides = array<i32>} : memref<1x16x32xbf16, #tpu.memory_space<vmem>>, vector<1x16x32xbf16>,
    return
  }
  func.func @transform_0(%arg0: i32, %arg1: i32) -> (i32, i32, i32) {
    %c0_i32 = arith.constant 0 : i32
    %c0_i32_0 = arith.constant 0 : i32
    return %arg0, %c0_i32, %arg1 : i32, i32, i32
  }
  func.func @transform_1(%arg0: i32, %arg1: i32) -> (i32, i32, i32) {
    %c0_i32 = arith.constant 0 : i32
    %c0_i32_0 = arith.constant 0 : i32
    return %arg0, %c0_i32, %arg1 : i32, i32, i32
  }
  func.func @transform_2(%arg0: i32, %arg1: i32) -> (i32, i32, i32) {
    %c0_i32 = arith.constant 0 : i32
    %c0_i32_0 = arith.constant 0 : i32
    return %arg0, %c0_i32, %arg1 : i32, i32, i32
  }
}

module attributes {stable_mosaic.version = 11 : i64} {
  func.func @_conv1d_kernel(%arg0: i32, %arg1: i32, %arg2: memref<1x16x34xbf16, #tpu.memory_space<vmem>>, %arg3: memref<16x32xbf16, #tpu.memory_space<vmem>>, %arg4: memref<16x1xf32, #tpu.memory_space<vmem>>, %arg5: memref<1x16x33xbf16, #tpu.memory_space<vmem>>) attributes {dimension_semantics = [#tpu.dimension_semantics<parallel>, #tpu.dimension_semantics<parallel>], iteration_bounds = array<i64: 2, 1>, scalar_prefetch = 0 : i64, scratch_operands = 0 : i64, tpu.core_type = #tpu.core_type<tc>, window_params = [{transform_indices = @transform_0, window_bounds = array<i64: 1, 16, 34>}, {pipeline_mode = #tpu.pipeline_mode<synchronous>, transform_indices = @transform_1, window_bounds = array<i64: 16, 32>}, {pipeline_mode = #tpu.pipeline_mode<synchronous>, transform_indices = @transform_2, window_bounds = array<i64: 16, 1>}, {transform_indices = @transform_3, window_bounds = array<i64: 1, 16, 33>}]} {
    %c0 = arith.constant 0 : index
    %c0_0 = arith.constant 0 : index
    %c0_1 = arith.constant 0 : index
    %0 = vector.load %arg2[%c0, %c0_0, %c0_1] : memref<1x16x34xbf16, #tpu.memory_space<vmem>>, vector<1x16x34xbf16>
    %1 = vector.shape_cast %0 : vector<1x16x34xbf16> to vector<16x34xbf16>
    %2 = arith.extf %1 : vector<16x34xbf16> to vector<16x34xf32>
    %cst = arith.constant 2.000000e+01 : f32
    %3 = vector.broadcast %cst : f32 to vector<16x34xf32>
    %4 = arith.minimumf %2, %3 : vector<16x34xf32>
    %5 = math.exp %4 : vector<16x34xf32>
    %cst_2 = arith.constant 2.000000e+00 : f32
    %6 = vector.broadcast %cst_2 : f32 to vector<16x34xf32>
    %7 = arith.addf %5, %6 : vector<16x34xf32>
    %8 = arith.mulf %5, %7 : vector<16x34xf32>
    %cst_3 = arith.constant 2.000000e+00 : f32
    %9 = vector.broadcast %cst_3 : f32 to vector<16x34xf32>
    %10 = arith.addf %8, %9 : vector<16x34xf32>
    %11 = tpu.reciprocal %10 {approx = true} : vector<16x34xf32> -> vector<16x34xf32>
    %12 = arith.mulf %10, %11 : vector<16x34xf32>
    %cst_4 = arith.constant 2.000000e+00 : f32
    %13 = vector.broadcast %cst_4 : f32 to vector<16x34xf32>
    %14 = arith.subf %13, %12 : vector<16x34xf32>
    %15 = arith.mulf %11, %14 : vector<16x34xf32>
    %16 = arith.mulf %2, %8 : vector<16x34xf32>
    %17 = arith.mulf %16, %15 : vector<16x34xf32>
    %18 = arith.truncf %17 : vector<16x34xf32> to vector<16x34xbf16>
    %19 = vector.extract_strided_slice %18 {offsets = [0, 0], sizes = [16, 33], strides = [1, 1]} : vector<16x34xbf16> to vector<16x33xbf16>
    %20 = vector.extract_strided_slice %18 {offsets = [0, 1], sizes = [16, 33], strides = [1, 1]} : vector<16x34xbf16> to vector<16x33xbf16>
    %21 = tpu.concatenate %19, %20 in 0 : vector<16x33xbf16>, vector<16x33xbf16> -> vector<32x33xbf16>
    %c0_5 = arith.constant 0 : index
    %c0_6 = arith.constant 0 : index
    %22 = vector.load %arg3[%c0_5, %c0_6] : memref<16x32xbf16, #tpu.memory_space<vmem>>, vector<16x32xbf16>
    %cst_7 = arith.constant dense<0.000000e+00> : vector<16x33xf32>
    %23 = tpu.matmul %22, %21, %cst_7 {dimension_numbers = #tpu.dot_dimension_numbers<[1], [0], [0], [1], [0, 0, 1, 1], [], []>} : vector<16x32xbf16>, vector<32x33xbf16>, vector<16x33xf32> -> vector<16x33xf32>
    %c0_8 = arith.constant 0 : index
    %c0_9 = arith.constant 0 : index
    %24 = vector.load %arg4[%c0_8, %c0_9] : memref<16x1xf32, #tpu.memory_space<vmem>>, vector<16x1xf32>
    %25 = vector.broadcast %24 : vector<16x1xf32> to vector<16x33xf32>
    %26 = arith.addf %23, %25 : vector<16x33xf32>
    %27 = arith.truncf %26 : vector<16x33xf32> to vector<16x33xbf16>
    %c0_10 = arith.constant 0 : index
    %c0_11 = arith.constant 0 : index
    %c0_12 = arith.constant 0 : index
    %28 = vector.load %arg5[%c0_10, %c0_11, %c0_12] : memref<1x16x33xbf16, #tpu.memory_space<vmem>>, vector<1x16x33xbf16>
    %29 = vector.shape_cast %28 : vector<1x16x33xbf16> to vector<16x33xbf16>
    %30 = vector.shape_cast %27 : vector<16x33xbf16> to vector<1x16x33xbf16>
    tpu.vector_store %arg5[%c0_10, %c0_11, %c0_12], %30 {strides = array<i32>} : memref<1x16x33xbf16, #tpu.memory_space<vmem>>, vector<1x16x33xbf16>,
    return
  }
  func.func @transform_0(%arg0: i32, %arg1: i32) -> (i32, i32, i32) {
    %c0_i32 = arith.constant 0 : i32
    %c0_i32_0 = arith.constant 0 : i32
    %c0_i32_1 = arith.constant 0 : i32
    return %arg0, %c0_i32, %c0_i32_0 : i32, i32, i32
  }
  func.func @transform_1(%arg0: i32, %arg1: i32) -> (i32, i32) {
    %c0_i32 = arith.constant 0 : i32
    %c0_i32_0 = arith.constant 0 : i32
    %c0_i32_1 = arith.constant 0 : i32
    return %c0_i32, %c0_i32_0 : i32, i32
  }
  func.func @transform_2(%arg0: i32, %arg1: i32) -> (i32, i32) {
    %c0_i32 = arith.constant 0 : i32
    %c0_i32_0 = arith.constant 0 : i32
    %c0_i32_1 = arith.constant 0 : i32
    return %c0_i32, %c0_i32_0 : i32, i32
  }
  func.func @transform_3(%arg0: i32, %arg1: i32) -> (i32, i32, i32) {
    %c0_i32 = arith.constant 0 : i32
    %c0_i32_0 = arith.constant 0 : i32
    return %arg0, %c0_i32, %arg1 : i32, i32, i32
  }
}

module attributes {stable_mosaic.version = 11 : i64} {
  func.func @_conv1d_kernel(%arg0: i32, %arg1: i32, %arg2: memref<1x8x66xbf16, #tpu.memory_space<vmem>>, %arg3: memref<8x24xbf16, #tpu.memory_space<vmem>>, %arg4: memref<8x1xf32, #tpu.memory_space<vmem>>, %arg5: memref<1x8x64xbf16, #tpu.memory_space<vmem>>) attributes {dimension_semantics = [#tpu.dimension_semantics<parallel>, #tpu.dimension_semantics<parallel>], iteration_bounds = array<i64: 2, 1>, scalar_prefetch = 0 : i64, scratch_operands = 0 : i64, tpu.core_type = #tpu.core_type<tc>, window_params = [{transform_indices = @transform_0, window_bounds = array<i64: 1, 8, 66>}, {pipeline_mode = #tpu.pipeline_mode<synchronous>, transform_indices = @transform_1, window_bounds = array<i64: 8, 24>}, {pipeline_mode = #tpu.pipeline_mode<synchronous>, transform_indices = @transform_2, window_bounds = array<i64: 8, 1>}, {transform_indices = @transform_3, window_bounds = array<i64: 1, 8, 64>}]} {
    %c0 = arith.constant 0 : index
    %c0_0 = arith.constant 0 : index
    %c0_1 = arith.constant 0 : index
    %0 = vector.load %arg2[%c0, %c0_0, %c0_1] : memref<1x8x66xbf16, #tpu.memory_space<vmem>>, vector<1x8x66xbf16>
    %1 = vector.shape_cast %0 : vector<1x8x66xbf16> to vector<8x66xbf16>
    %2 = arith.extf %1 : vector<8x66xbf16> to vector<8x66xf32>
    %3 = arith.truncf %2 : vector<8x66xf32> to vector<8x66xbf16>
    %4 = vector.extract_strided_slice %3 {offsets = [0, 0], sizes = [8, 64], strides = [1, 1]} : vector<8x66xbf16> to vector<8x64xbf16>
    %5 = vector.extract_strided_slice %3 {offsets = [0, 1], sizes = [8, 64], strides = [1, 1]} : vector<8x66xbf16> to vector<8x64xbf16>
    %6 = vector.extract_strided_slice %3 {offsets = [0, 2], sizes = [8, 64], strides = [1, 1]} : vector<8x66xbf16> to vector<8x64xbf16>
    %7 = tpu.concatenate %4, %5, %6 in 0 : vector<8x64xbf16>, vector<8x64xbf16>, vector<8x64xbf16> -> vector<24x64xbf16>
    %c0_2 = arith.constant 0 : index
    %c0_3 = arith.constant 0 : index
    %8 = vector.load %arg3[%c0_2, %c0_3] : memref<8x24xbf16, #tpu.memory_space<vmem>>, vector<8x24xbf16>
    %cst = arith.constant dense<0.000000e+00> : vector<8x64xf32>
    %9 = tpu.matmul %8, %7, %cst {dimension_numbers = #tpu.dot_dimension_numbers<[1], [0], [0], [1], [0, 0, 1, 1], [], []>} : vector<8x24xbf16>, vector<24x64xbf16>, vector<8x64xf32> -> vector<8x64xf32>
    %c0_4 = arith.constant 0 : index
    %c0_5 = arith.constant 0 : index
    %10 = vector.load %arg4[%c0_4, %c0_5] : memref<8x1xf32, #tpu.memory_space<vmem>>, vector<8x1xf32>
    %11 = vector.broadcast %10 : vector<8x1xf32> to vector<8x64xf32>
    %12 = arith.addf %9, %11 : vector<8x64xf32>
    %cst_6 = arith.constant 2.000000e+01 : f32
    %13 = vector.broadcast %cst_6 : f32 to vector<8x64xf32>
    %14 = arith.minimumf %12, %13 : vector<8x64xf32>
    %15 = math.exp %14 : vector<8x64xf32>
    %cst_7 = arith.constant 2.000000e+00 : f32
    %16 = vector.broadcast %cst_7 : f32 to vector<8x64xf32>
    %17 = arith.addf %15, %16 : vector<8x64xf32>
    %18 = arith.mulf %15, %17 : vector<8x64xf32>
    %cst_8 = arith.constant 2.000000e+00 : f32
    %19 = vector.broadcast %cst_8 : f32 to vector<8x64xf32>
    %20 = arith.addf %18, %19 : vector<8x64xf32>
    %21 = tpu.reciprocal %20 {approx = true} : vector<8x64xf32> -> vector<8x64xf32>
    %22 = arith.mulf %20, %21 : vector<8x64xf32>
    %cst_9 = arith.constant 2.000000e+00 : f32
    %23 = vector.broadcast %cst_9 : f32 to vector<8x64xf32>
    %24 = arith.subf %23, %22 : vector<8x64xf32>
    %25 = arith.mulf %21, %24 : vector<8x64xf32>
    %26 = arith.mulf %12, %18 : vector<8x64xf32>
    %27 = arith.mulf %26, %25 : vector<8x64xf32>
    %28 = arith.truncf %27 : vector<8x64xf32> to vector<8x64xbf16>
    %c0_10 = arith.constant 0 : index
    %c0_11 = arith.constant 0 : index
    %c0_12 = arith.constant 0 : index
    %29 = vector.load %arg5[%c0_10, %c0_11, %c0_12] : memref<1x8x64xbf16, #tpu.memory_space<vmem>>, vector<1x8x64xbf16>
    %30 = vector.shape_cast %29 : vector<1x8x64xbf16> to vector<8x64xbf16>
    %31 = vector.shape_cast %28 : vector<8x64xbf16> to vector<1x8x64xbf16>
    tpu.vector_store %arg5[%c0_10, %c0_11, %c0_12], %31 {strides = array<i32>} : memref<1x8x64xbf16, #tpu.memory_space<vmem>>, vector<1x8x64xbf16>,
    return
  }
  func.func @transform_0(%arg0: i32, %arg1: i32) -> (i32, i32, i32) {
    %c0_i32 = arith.constant 0 : i32
    %c0_i32_0 = arith.constant 0 : i32
    %c0_i32_1 = arith.constant 0 : i32
    return %arg0, %c0_i32, %c0_i32_0 : i32, i32, i32
  }
  func.func @transform_1(%arg0: i32, %arg1: i32) -> (i32, i32) {
    %c0_i32 = arith.constant 0 : i32
    %c0_i32_0 = arith.constant 0 : i32
    %c0_i32_1 = arith.constant 0 : i32
    return %c0_i32, %c0_i32_0 : i32, i32
  }
  func.func @transform_2(%arg0: i32, %arg1: i32) -> (i32, i32) {
    %c0_i32 = arith.constant 0 : i32
    %c0_i32_0 = arith.constant 0 : i32
    %c0_i32_1 = arith.constant 0 : i32
    return %c0_i32, %c0_i32_0 : i32, i32
  }
  func.func @transform_3(%arg0: i32, %arg1: i32) -> (i32, i32, i32) {
    %c0_i32 = arith.constant 0 : i32
    %c0_i32_0 = arith.constant 0 : i32
    return %arg0, %c0_i32, %arg1 : i32, i32, i32
  }
}

module attributes {stable_mosaic.version = 11 : i64} {
  func.func @_conv1d_kernel(%arg0: i32, %arg1: i32, %arg2: memref<1x8x66xbf16, #tpu.memory_space<vmem>>, %arg3: memref<8x24xbf16, #tpu.memory_space<vmem>>, %arg4: memref<8x1xf32, #tpu.memory_space<vmem>>, %arg5: memref<1x8x64xbf16, #tpu.memory_space<vmem>>) attributes {dimension_semantics = [#tpu.dimension_semantics<parallel>, #tpu.dimension_semantics<parallel>], iteration_bounds = array<i64: 2, 1>, scalar_prefetch = 0 : i64, scratch_operands = 0 : i64, tpu.core_type = #tpu.core_type<tc>, window_params = [{transform_indices = @transform_0, window_bounds = array<i64: 1, 8, 66>}, {pipeline_mode = #tpu.pipeline_mode<synchronous>, transform_indices = @transform_1, window_bounds = array<i64: 8, 24>}, {pipeline_mode = #tpu.pipeline_mode<synchronous>, transform_indices = @transform_2, window_bounds = array<i64: 8, 1>}, {transform_indices = @transform_3, window_bounds = array<i64: 1, 8, 64>}]} {
    %c0 = arith.constant 0 : index
    %c0_0 = arith.constant 0 : index
    %c0_1 = arith.constant 0 : index
    %0 = vector.load %arg2[%c0, %c0_0, %c0_1] : memref<1x8x66xbf16, #tpu.memory_space<vmem>>, vector<1x8x66xbf16>
    %1 = vector.shape_cast %0 : vector<1x8x66xbf16> to vector<8x66xbf16>
    %2 = arith.extf %1 : vector<8x66xbf16> to vector<8x66xf32>
    %3 = arith.truncf %2 : vector<8x66xf32> to vector<8x66xbf16>
    %4 = vector.extract_strided_slice %3 {offsets = [0, 0], sizes = [8, 64], strides = [1, 1]} : vector<8x66xbf16> to vector<8x64xbf16>
    %5 = vector.extract_strided_slice %3 {offsets = [0, 1], sizes = [8, 64], strides = [1, 1]} : vector<8x66xbf16> to vector<8x64xbf16>
    %6 = vector.extract_strided_slice %3 {offsets = [0, 2], sizes = [8, 64], strides = [1, 1]} : vector<8x66xbf16> to vector<8x64xbf16>
    %7 = tpu.concatenate %4, %5, %6 in 0 : vector<8x64xbf16>, vector<8x64xbf16>, vector<8x64xbf16> -> vector<24x64xbf16>
    %c0_2 = arith.constant 0 : index
    %c0_3 = arith.constant 0 : index
    %8 = vector.load %arg3[%c0_2, %c0_3] : memref<8x24xbf16, #tpu.memory_space<vmem>>, vector<8x24xbf16>
    %cst = arith.constant dense<0.000000e+00> : vector<8x64xf32>
    %9 = tpu.matmul %8, %7, %cst {dimension_numbers = #tpu.dot_dimension_numbers<[1], [0], [0], [1], [0, 0, 1, 1], [], []>} : vector<8x24xbf16>, vector<24x64xbf16>, vector<8x64xf32> -> vector<8x64xf32>
    %c0_4 = arith.constant 0 : index
    %c0_5 = arith.constant 0 : index
    %10 = vector.load %arg4[%c0_4, %c0_5] : memref<8x1xf32, #tpu.memory_space<vmem>>, vector<8x1xf32>
    %11 = vector.broadcast %10 : vector<8x1xf32> to vector<8x64xf32>
    %12 = arith.addf %9, %11 : vector<8x64xf32>
    %cst_6 = arith.constant 2.000000e+01 : f32
    %13 = vector.broadcast %cst_6 : f32 to vector<8x64xf32>
    %14 = arith.minimumf %12, %13 : vector<8x64xf32>
    %15 = math.exp %14 : vector<8x64xf32>
    %cst_7 = arith.constant 2.000000e+00 : f32
    %16 = vector.broadcast %cst_7 : f32 to vector<8x64xf32>
    %17 = arith.addf %15, %16 : vector<8x64xf32>
    %18 = arith.mulf %15, %17 : vector<8x64xf32>
    %cst_8 = arith.constant 2.000000e+00 : f32
    %19 = vector.broadcast %cst_8 : f32 to vector<8x64xf32>
    %20 = arith.addf %18, %19 : vector<8x64xf32>
    %21 = tpu.reciprocal %20 {approx = true} : vector<8x64xf32> -> vector<8x64xf32>
    %22 = arith.mulf %20, %21 : vector<8x64xf32>
    %cst_9 = arith.constant 2.000000e+00 : f32
    %23 = vector.broadcast %cst_9 : f32 to vector<8x64xf32>
    %24 = arith.subf %23, %22 : vector<8x64xf32>
    %25 = arith.mulf %21, %24 : vector<8x64xf32>
    %26 = arith.mulf %12, %18 : vector<8x64xf32>
    %27 = arith.mulf %26, %25 : vector<8x64xf32>
    %cst_10 = arith.constant 5.000000e-01 : f32
    %28 = vector.broadcast %cst_10 : f32 to vector<8x64xf32>
    %29 = arith.mulf %27, %28 : vector<8x64xf32>
    %30 = arith.truncf %29 : vector<8x64xf32> to vector<8x64xbf16>
    %c0_11 = arith.constant 0 : index
    %c0_12 = arith.constant 0 : index
    %c0_13 = arith.constant 0 : index
    %31 = vector.load %arg5[%c0_11, %c0_12, %c0_13] : memref<1x8x64xbf16, #tpu.memory_space<vmem>>, vector<1x8x64xbf16>
    %32 = vector.shape_cast %31 : vector<1x8x64xbf16> to vector<8x64xbf16>
    %33 = vector.shape_cast %30 : vector<8x64xbf16> to vector<1x8x64xbf16>
    tpu.vector_store %arg5[%c0_11, %c0_12, %c0_13], %33 {strides = array<i32>} : memref<1x8x64xbf16, #tpu.memory_space<vmem>>, vector<1x8x64xbf16>,
    return
  }
  func.func @transform_0(%arg0: i32, %arg1: i32) -> (i32, i32, i32) {
    %c0_i32 = arith.constant 0 : i32
    %c0_i32_0 = arith.constant 0 : i32
    %c0_i32_1 = arith.constant 0 : i32
    return %arg0, %c0_i32, %c0_i32_0 : i32, i32, i32
  }
  func.func @transform_1(%arg0: i32, %arg1: i32) -> (i32, i32) {
    %c0_i32 = arith.constant 0 : i32
    %c0_i32_0 = arith.constant 0 : i32
    %c0_i32_1 = arith.constant 0 : i32
    return %c0_i32, %c0_i32_0 : i32, i32
  }
  func.func @transform_2(%arg0: i32, %arg1: i32) -> (i32, i32) {
    %c0_i32 = arith.constant 0 : i32
    %c0_i32_0 = arith.constant 0 : i32
    %c0_i32_1 = arith.constant 0 : i32
    return %c0_i32, %c0_i32_0 : i32, i32
  }
  func.func @transform_3(%arg0: i32, %arg1: i32) -> (i32, i32, i32) {
    %c0_i32 = arith.constant 0 : i32
    %c0_i32_0 = arith.constant 0 : i32
    return %arg0, %c0_i32, %arg1 : i32, i32, i32
  }
}

module attributes {stable_mosaic.version = 11 : i64} {
  func.func @_conv1d_kernel(%arg0: i32, %arg1: i32, %arg2: memref<1x8x70xbf16, #tpu.memory_space<vmem>>, %arg3: memref<8x24xbf16, #tpu.memory_space<vmem>>, %arg4: memref<8x1xf32, #tpu.memory_space<vmem>>, %arg5: memref<1x8x64xbf16, #tpu.memory_space<vmem>>) attributes {dimension_semantics = [#tpu.dimension_semantics<parallel>, #tpu.dimension_semantics<parallel>], iteration_bounds = array<i64: 2, 1>, scalar_prefetch = 0 : i64, scratch_operands = 0 : i64, tpu.core_type = #tpu.core_type<tc>, window_params = [{transform_indices = @transform_0, window_bounds = array<i64: 1, 8, 70>}, {pipeline_mode = #tpu.pipeline_mode<synchronous>, transform_indices = @transform_1, window_bounds = array<i64: 8, 24>}, {pipeline_mode = #tpu.pipeline_mode<synchronous>, transform_indices = @transform_2, window_bounds = array<i64: 8, 1>}, {transform_indices = @transform_3, window_bounds = array<i64: 1, 8, 64>}]} {
    %c0 = arith.constant 0 : index
    %c0_0 = arith.constant 0 : index
    %c0_1 = arith.constant 0 : index
    %0 = vector.load %arg2[%c0, %c0_0, %c0_1] : memref<1x8x70xbf16, #tpu.memory_space<vmem>>, vector<1x8x70xbf16>
    %1 = vector.shape_cast %0 : vector<1x8x70xbf16> to vector<8x70xbf16>
    %2 = arith.extf %1 : vector<8x70xbf16> to vector<8x70xf32>
    %3 = arith.truncf %2 : vector<8x70xf32> to vector<8x70xbf16>
    %4 = vector.extract_strided_slice %3 {offsets = [0, 0], sizes = [8, 64], strides = [1, 1]} : vector<8x70xbf16> to vector<8x64xbf16>
    %5 = vector.extract_strided_slice %3 {offsets = [0, 3], sizes = [8, 64], strides = [1, 1]} : vector<8x70xbf16> to vector<8x64xbf16>
    %6 = vector.extract_strided_slice %3 {offsets = [0, 6], sizes = [8, 64], strides = [1, 1]} : vector<8x70xbf16> to vector<8x64xbf16>
    %7 = tpu.concatenate %4, %5, %6 in 0 : vector<8x64xbf16>, vector<8x64xbf16>, vector<8x64xbf16> -> vector<24x64xbf16>
    %c0_2 = arith.constant 0 : index
    %c0_3 = arith.constant 0 : index
    %8 = vector.load %arg3[%c0_2, %c0_3] : memref<8x24xbf16, #tpu.memory_space<vmem>>, vector<8x24xbf16>
    %cst = arith.constant dense<0.000000e+00> : vector<8x64xf32>
    %9 = tpu.matmul %8, %7, %cst {dimension_numbers = #tpu.dot_dimension_numbers<[1], [0], [0], [1], [0, 0, 1, 1], [], []>} : vector<8x24xbf16>, vector<24x64xbf16>, vector<8x64xf32> -> vector<8x64xf32>
    %c0_4 = arith.constant 0 : index
    %c0_5 = arith.constant 0 : index
    %10 = vector.load %arg4[%c0_4, %c0_5] : memref<8x1xf32, #tpu.memory_space<vmem>>, vector<8x1xf32>
    %11 = vector.broadcast %10 : vector<8x1xf32> to vector<8x64xf32>
    %12 = arith.addf %9, %11 : vector<8x64xf32>
    %cst_6 = arith.constant 2.000000e+01 : f32
    %13 = vector.broadcast %cst_6 : f32 to vector<8x64xf32>
    %14 = arith.minimumf %12, %13 : vector<8x64xf32>
    %15 = math.exp %14 : vector<8x64xf32>
    %cst_7 = arith.constant 2.000000e+00 : f32
    %16 = vector.broadcast %cst_7 : f32 to vector<8x64xf32>
    %17 = arith.addf %15, %16 : vector<8x64xf32>
    %18 = arith.mulf %15, %17 : vector<8x64xf32>
    %cst_8 = arith.constant 2.000000e+00 : f32
    %19 = vector.broadcast %cst_8 : f32 to vector<8x64xf32>
    %20 = arith.addf %18, %19 : vector<8x64xf32>
    %21 = tpu.reciprocal %20 {approx = true} : vector<8x64xf32> -> vector<8x64xf32>
    %22 = arith.mulf %20, %21 : vector<8x64xf32>
    %cst_9 = arith.constant 2.000000e+00 : f32
    %23 = vector.broadcast %cst_9 : f32 to vector<8x64xf32>
    %24 = arith.subf %23, %22 : vector<8x64xf32>
    %25 = arith.mulf %21, %24 : vector<8x64xf32>
    %26 = arith.mulf %12, %18 : vector<8x64xf32>
    %27 = arith.mulf %26, %25 : vector<8x64xf32>
    %28 = arith.truncf %27 : vector<8x64xf32> to vector<8x64xbf16>
    %c0_10 = arith.constant 0 : index
    %c0_11 = arith.constant 0 : index
    %c0_12 = arith.constant 0 : index
    %29 = vector.load %arg5[%c0_10, %c0_11, %c0_12] : memref<1x8x64xbf16, #tpu.memory_space<vmem>>, vector<1x8x64xbf16>
    %30 = vector.shape_cast %29 : vector<1x8x64xbf16> to vector<8x64xbf16>
    %31 = vector.shape_cast %28 : vector<8x64xbf16> to vector<1x8x64xbf16>
    tpu.vector_store %arg5[%c0_10, %c0_11, %c0_12], %31 {strides = array<i32>} : memref<1x8x64xbf16, #tpu.memory_space<vmem>>, vector<1x8x64xbf16>,
    return
  }
  func.func @transform_0(%arg0: i32, %arg1: i32) -> (i32, i32, i32) {
    %c0_i32 = arith.constant 0 : i32
    %c0_i32_0 = arith.constant 0 : i32
    %c0_i32_1 = arith.constant 0 : i32
    return %arg0, %c0_i32, %c0_i32_0 : i32, i32, i32
  }
  func.func @transform_1(%arg0: i32, %arg1: i32) -> (i32, i32) {
    %c0_i32 = arith.constant 0 : i32
    %c0_i32_0 = arith.constant 0 : i32
    %c0_i32_1 = arith.constant 0 : i32
    return %c0_i32, %c0_i32_0 : i32, i32
  }
  func.func @transform_2(%arg0: i32, %arg1: i32) -> (i32, i32) {
    %c0_i32 = arith.constant 0 : i32
    %c0_i32_0 = arith.constant 0 : i32
    %c0_i32_1 = arith.constant 0 : i32
    return %c0_i32, %c0_i32_0 : i32, i32
  }
  func.func @transform_3(%arg0: i32, %arg1: i32) -> (i32, i32, i32) {
    %c0_i32 = arith.constant 0 : i32
    %c0_i32_0 = arith.constant 0 : i32
    return %arg0, %c0_i32, %arg1 : i32, i32, i32
  }
}

module attributes {stable_mosaic.version = 11 : i64} {
  func.func @_conv1d_kernel(%arg0: i32, %arg1: i32, %arg2: memref<1x8x68xbf16, #tpu.memory_space<vmem>>, %arg3: memref<8x40xbf16, #tpu.memory_space<vmem>>, %arg4: memref<8x1xf32, #tpu.memory_space<vmem>>, %arg5: memref<1x8x64xbf16, #tpu.memory_space<vmem>>) attributes {dimension_semantics = [#tpu.dimension_semantics<parallel>, #tpu.dimension_semantics<parallel>], iteration_bounds = array<i64: 2, 1>, scalar_prefetch = 0 : i64, scratch_operands = 0 : i64, tpu.core_type = #tpu.core_type<tc>, window_params = [{transform_indices = @transform_0, window_bounds = array<i64: 1, 8, 68>}, {pipeline_mode = #tpu.pipeline_mode<synchronous>, transform_indices = @transform_1, window_bounds = array<i64: 8, 40>}, {pipeline_mode = #tpu.pipeline_mode<synchronous>, transform_indices = @transform_2, window_bounds = array<i64: 8, 1>}, {transform_indices = @transform_3, window_bounds = array<i64: 1, 8, 64>}]} {
    %c0 = arith.constant 0 : index
    %c0_0 = arith.constant 0 : index
    %c0_1 = arith.constant 0 : index
    %0 = vector.load %arg2[%c0, %c0_0, %c0_1] : memref<1x8x68xbf16, #tpu.memory_space<vmem>>, vector<1x8x68xbf16>
    %1 = vector.shape_cast %0 : vector<1x8x68xbf16> to vector<8x68xbf16>
    %2 = arith.extf %1 : vector<8x68xbf16> to vector<8x68xf32>
    %cst = arith.constant 2.000000e+01 : f32
    %3 = vector.broadcast %cst : f32 to vector<8x68xf32>
    %4 = arith.minimumf %2, %3 : vector<8x68xf32>
    %5 = math.exp %4 : vector<8x68xf32>
    %cst_2 = arith.constant 2.000000e+00 : f32
    %6 = vector.broadcast %cst_2 : f32 to vector<8x68xf32>
    %7 = arith.addf %5, %6 : vector<8x68xf32>
    %8 = arith.mulf %5, %7 : vector<8x68xf32>
    %cst_3 = arith.constant 2.000000e+00 : f32
    %9 = vector.broadcast %cst_3 : f32 to vector<8x68xf32>
    %10 = arith.addf %8, %9 : vector<8x68xf32>
    %11 = tpu.reciprocal %10 {approx = true} : vector<8x68xf32> -> vector<8x68xf32>
    %12 = arith.mulf %10, %11 : vector<8x68xf32>
    %cst_4 = arith.constant 2.000000e+00 : f32
    %13 = vector.broadcast %cst_4 : f32 to vector<8x68xf32>
    %14 = arith.subf %13, %12 : vector<8x68xf32>
    %15 = arith.mulf %11, %14 : vector<8x68xf32>
    %16 = arith.mulf %2, %8 : vector<8x68xf32>
    %17 = arith.mulf %16, %15 : vector<8x68xf32>
    %18 = arith.truncf %17 : vector<8x68xf32> to vector<8x68xbf16>
    %19 = vector.extract_strided_slice %18 {offsets = [0, 0], sizes = [8, 64], strides = [1, 1]} : vector<8x68xbf16> to vector<8x64xbf16>
    %20 = vector.extract_strided_slice %18 {offsets = [0, 1], sizes = [8, 64], strides = [1, 1]} : vector<8x68xbf16> to vector<8x64xbf16>
    %21 = vector.extract_strided_slice %18 {offsets = [0, 2], sizes = [8, 64], strides = [1, 1]} : vector<8x68xbf16> to vector<8x64xbf16>
    %22 = vector.extract_strided_slice %18 {offsets = [0, 3], sizes = [8, 64], strides = [1, 1]} : vector<8x68xbf16> to vector<8x64xbf16>
    %23 = vector.extract_strided_slice %18 {offsets = [0, 4], sizes = [8, 64], strides = [1, 1]} : vector<8x68xbf16> to vector<8x64xbf16>
    %24 = tpu.concatenate %19, %20, %21, %22, %23 in 0 : vector<8x64xbf16>, vector<8x64xbf16>, vector<8x64xbf16>, vector<8x64xbf16>, vector<8x64xbf16> -> vector<40x64xbf16>
    %c0_5 = arith.constant 0 : index
    %c0_6 = arith.constant 0 : index
    %25 = vector.load %arg3[%c0_5, %c0_6] : memref<8x40xbf16, #tpu.memory_space<vmem>>, vector<8x40xbf16>
    %cst_7 = arith.constant dense<0.000000e+00> : vector<8x64xf32>
    %26 = tpu.matmul %25, %24, %cst_7 {dimension_numbers = #tpu.dot_dimension_numbers<[1], [0], [0], [1], [0, 0, 1, 1], [], []>} : vector<8x40xbf16>, vector<40x64xbf16>, vector<8x64xf32> -> vector<8x64xf32>
    %c0_8 = arith.constant 0 : index
    %c0_9 = arith.constant 0 : index
    %27 = vector.load %arg4[%c0_8, %c0_9] : memref<8x1xf32, #tpu.memory_space<vmem>>, vector<8x1xf32>
    %28 = vector.broadcast %27 : vector<8x1xf32> to vector<8x64xf32>
    %29 = arith.addf %26, %28 : vector<8x64xf32>
    %cst_10 = arith.constant 2.000000e+01 : f32
    %30 = vector.broadcast %cst_10 : f32 to vector<8x64xf32>
    %31 = arith.minimumf %29, %30 : vector<8x64xf32>
    %32 = math.exp %31 : vector<8x64xf32>
    %cst_11 = arith.constant 2.000000e+00 : f32
    %33 = vector.broadcast %cst_11 : f32 to vector<8x64xf32>
    %34 = arith.addf %32, %33 : vector<8x64xf32>
    %35 = arith.mulf %32, %34 : vector<8x64xf32>
    %cst_12 = arith.constant 2.000000e+00 : f32
    %36 = vector.broadcast %cst_12 : f32 to vector<8x64xf32>
    %37 = arith.addf %35, %36 : vector<8x64xf32>
    %38 = tpu.reciprocal %37 {approx = true} : vector<8x64xf32> -> vector<8x64xf32>
    %39 = arith.mulf %37, %38 : vector<8x64xf32>
    %cst_13 = arith.constant 2.000000e+00 : f32
    %40 = vector.broadcast %cst_13 : f32 to vector<8x64xf32>
    %41 = arith.subf %40, %39 : vector<8x64xf32>
    %42 = arith.mulf %38, %41 : vector<8x64xf32>
    %43 = arith.mulf %29, %35 : vector<8x64xf32>
    %44 = arith.mulf %43, %42 : vector<8x64xf32>
    %45 = arith.truncf %44 : vector<8x64xf32> to vector<8x64xbf16>
    %c0_14 = arith.constant 0 : index
    %c0_15 = arith.constant 0 : index
    %c0_16 = arith.constant 0 : index
    %46 = vector.load %arg5[%c0_14, %c0_15, %c0_16] : memref<1x8x64xbf16, #tpu.memory_space<vmem>>, vector<1x8x64xbf16>
    %47 = vector.shape_cast %46 : vector<1x8x64xbf16> to vector<8x64xbf16>
    %48 = vector.shape_cast %45 : vector<8x64xbf16> to vector<1x8x64xbf16>
    tpu.vector_store %arg5[%c0_14, %c0_15, %c0_16], %48 {strides = array<i32>} : memref<1x8x64xbf16, #tpu.memory_space<vmem>>, vector<1x8x64xbf16>,
    return
  }
  func.func @transform_0(%arg0: i32, %arg1: i32) -> (i32, i32, i32) {
    %c0_i32 = arith.constant 0 : i32
    %c0_i32_0 = arith.constant 0 : i32
    %c0_i32_1 = arith.constant 0 : i32
    return %arg0, %c0_i32, %c0_i32_0 : i32, i32, i32
  }
  func.func @transform_1(%arg0: i32, %arg1: i32) -> (i32, i32) {
    %c0_i32 = arith.constant 0 : i32
    %c0_i32_0 = arith.constant 0 : i32
    %c0_i32_1 = arith.constant 0 : i32
    return %c0_i32, %c0_i32_0 : i32, i32
  }
  func.func @transform_2(%arg0: i32, %arg1: i32) -> (i32, i32) {
    %c0_i32 = arith.constant 0 : i32
    %c0_i32_0 = arith.constant 0 : i32
    %c0_i32_1 = arith.constant 0 : i32
    return %c0_i32, %c0_i32_0 : i32, i32
  }
  func.func @transform_3(%arg0: i32, %arg1: i32) -> (i32, i32, i32) {
    %c0_i32 = arith.constant 0 : i32
    %c0_i32_0 = arith.constant 0 : i32
    return %arg0, %c0_i32, %arg1 : i32, i32, i32
  }
}

module attributes {stable_mosaic.version = 11 : i64} {
  func.func @_conv1d_kernel(%arg0: i32, %arg1: i32, %arg2: memref<1x8x68xbf16, #tpu.memory_space<vmem>>, %arg3: memref<8x40xbf16, #tpu.memory_space<vmem>>, %arg4: memref<8x1xf32, #tpu.memory_space<vmem>>, %arg5: memref<1x8x64xbf16, #tpu.memory_space<vmem>>) attributes {dimension_semantics = [#tpu.dimension_semantics<parallel>, #tpu.dimension_semantics<parallel>], iteration_bounds = array<i64: 2, 1>, scalar_prefetch = 0 : i64, scratch_operands = 0 : i64, tpu.core_type = #tpu.core_type<tc>, window_params = [{transform_indices = @transform_0, window_bounds = array<i64: 1, 8, 68>}, {pipeline_mode = #tpu.pipeline_mode<synchronous>, transform_indices = @transform_1, window_bounds = array<i64: 8, 40>}, {pipeline_mode = #tpu.pipeline_mode<synchronous>, transform_indices = @transform_2, window_bounds = array<i64: 8, 1>}, {transform_indices = @transform_3, window_bounds = array<i64: 1, 8, 64>}]} {
    %c0 = arith.constant 0 : index
    %c0_0 = arith.constant 0 : index
    %c0_1 = arith.constant 0 : index
    %0 = vector.load %arg2[%c0, %c0_0, %c0_1] : memref<1x8x68xbf16, #tpu.memory_space<vmem>>, vector<1x8x68xbf16>
    %1 = vector.shape_cast %0 : vector<1x8x68xbf16> to vector<8x68xbf16>
    %2 = arith.extf %1 : vector<8x68xbf16> to vector<8x68xf32>
    %3 = arith.truncf %2 : vector<8x68xf32> to vector<8x68xbf16>
    %4 = vector.extract_strided_slice %3 {offsets = [0, 0], sizes = [8, 64], strides = [1, 1]} : vector<8x68xbf16> to vector<8x64xbf16>
    %5 = vector.extract_strided_slice %3 {offsets = [0, 1], sizes = [8, 64], strides = [1, 1]} : vector<8x68xbf16> to vector<8x64xbf16>
    %6 = vector.extract_strided_slice %3 {offsets = [0, 2], sizes = [8, 64], strides = [1, 1]} : vector<8x68xbf16> to vector<8x64xbf16>
    %7 = vector.extract_strided_slice %3 {offsets = [0, 3], sizes = [8, 64], strides = [1, 1]} : vector<8x68xbf16> to vector<8x64xbf16>
    %8 = vector.extract_strided_slice %3 {offsets = [0, 4], sizes = [8, 64], strides = [1, 1]} : vector<8x68xbf16> to vector<8x64xbf16>
    %9 = tpu.concatenate %4, %5, %6, %7, %8 in 0 : vector<8x64xbf16>, vector<8x64xbf16>, vector<8x64xbf16>, vector<8x64xbf16>, vector<8x64xbf16> -> vector<40x64xbf16>
    %c0_2 = arith.constant 0 : index
    %c0_3 = arith.constant 0 : index
    %10 = vector.load %arg3[%c0_2, %c0_3] : memref<8x40xbf16, #tpu.memory_space<vmem>>, vector<8x40xbf16>
    %cst = arith.constant dense<0.000000e+00> : vector<8x64xf32>
    %11 = tpu.matmul %10, %9, %cst {dimension_numbers = #tpu.dot_dimension_numbers<[1], [0], [0], [1], [0, 0, 1, 1], [], []>} : vector<8x40xbf16>, vector<40x64xbf16>, vector<8x64xf32> -> vector<8x64xf32>
    %c0_4 = arith.constant 0 : index
    %c0_5 = arith.constant 0 : index
    %12 = vector.load %arg4[%c0_4, %c0_5] : memref<8x1xf32, #tpu.memory_space<vmem>>, vector<8x1xf32>
    %13 = vector.broadcast %12 : vector<8x1xf32> to vector<8x64xf32>
    %14 = arith.addf %11, %13 : vector<8x64xf32>
    %cst_6 = arith.constant 2.000000e+01 : f32
    %15 = vector.broadcast %cst_6 : f32 to vector<8x64xf32>
    %16 = arith.minimumf %14, %15 : vector<8x64xf32>
    %17 = math.exp %16 : vector<8x64xf32>
    %cst_7 = arith.constant 2.000000e+00 : f32
    %18 = vector.broadcast %cst_7 : f32 to vector<8x64xf32>
    %19 = arith.addf %17, %18 : vector<8x64xf32>
    %20 = arith.mulf %17, %19 : vector<8x64xf32>
    %cst_8 = arith.constant 2.000000e+00 : f32
    %21 = vector.broadcast %cst_8 : f32 to vector<8x64xf32>
    %22 = arith.addf %20, %21 : vector<8x64xf32>
    %23 = tpu.reciprocal %22 {approx = true} : vector<8x64xf32> -> vector<8x64xf32>
    %24 = arith.mulf %22, %23 : vector<8x64xf32>
    %cst_9 = arith.constant 2.000000e+00 : f32
    %25 = vector.broadcast %cst_9 : f32 to vector<8x64xf32>
    %26 = arith.subf %25, %24 : vector<8x64xf32>
    %27 = arith.mulf %23, %26 : vector<8x64xf32>
    %28 = arith.mulf %14, %20 : vector<8x64xf32>
    %29 = arith.mulf %28, %27 : vector<8x64xf32>
    %cst_10 = arith.constant 5.000000e-01 : f32
    %30 = vector.broadcast %cst_10 : f32 to vector<8x64xf32>
    %31 = arith.mulf %29, %30 : vector<8x64xf32>
    %32 = arith.truncf %31 : vector<8x64xf32> to vector<8x64xbf16>
    %c0_11 = arith.constant 0 : index
    %c0_12 = arith.constant 0 : index
    %c0_13 = arith.constant 0 : index
    %33 = vector.load %arg5[%c0_11, %c0_12, %c0_13] : memref<1x8x64xbf16, #tpu.memory_space<vmem>>, vector<1x8x64xbf16>
    %34 = vector.shape_cast %33 : vector<1x8x64xbf16> to vector<8x64xbf16>
    %35 = vector.shape_cast %32 : vector<8x64xbf16> to vector<1x8x64xbf16>
    tpu.vector_store %arg5[%c0_11, %c0_12, %c0_13], %35 {strides = array<i32>} : memref<1x8x64xbf16, #tpu.memory_space<vmem>>, vector<1x8x64xbf16>,
    return
  }
  func.func @transform_0(%arg0: i32, %arg1: i32) -> (i32, i32, i32) {
    %c0_i32 = arith.constant 0 : i32
    %c0_i32_0 = arith.constant 0 : i32
    %c0_i32_1 = arith.constant 0 : i32
    return %arg0, %c0_i32, %c0_i32_0 : i32, i32, i32
  }
  func.func @transform_1(%arg0: i32, %arg1: i32) -> (i32, i32) {
    %c0_i32 = arith.constant 0 : i32
    %c0_i32_0 = arith.constant 0 : i32
    %c0_i32_1 = arith.constant 0 : i32
    return %c0_i32, %c0_i32_0 : i32, i32
  }
  func.func @transform_2(%arg0: i32, %arg1: i32) -> (i32, i32) {
    %c0_i32 = arith.constant 0 : i32
    %c0_i32_0 = arith.constant 0 : i32
    %c0_i32_1 = arith.constant 0 : i32
    return %c0_i32, %c0_i32_0 : i32, i32
  }
  func.func @transform_3(%arg0: i32, %arg1: i32) -> (i32, i32, i32) {
    %c0_i32 = arith.constant 0 : i32
    %c0_i32_0 = arith.constant 0 : i32
    return %arg0, %c0_i32, %arg1 : i32, i32, i32
  }
}

module attributes {stable_mosaic.version = 11 : i64} {
  func.func @_conv1d_kernel(%arg0: i32, %arg1: i32, %arg2: memref<1x8x76xbf16, #tpu.memory_space<vmem>>, %arg3: memref<8x40xbf16, #tpu.memory_space<vmem>>, %arg4: memref<8x1xf32, #tpu.memory_space<vmem>>, %arg5: memref<1x8x64xbf16, #tpu.memory_space<vmem>>) attributes {dimension_semantics = [#tpu.dimension_semantics<parallel>, #tpu.dimension_semantics<parallel>], iteration_bounds = array<i64: 2, 1>, scalar_prefetch = 0 : i64, scratch_operands = 0 : i64, tpu.core_type = #tpu.core_type<tc>, window_params = [{transform_indices = @transform_0, window_bounds = array<i64: 1, 8, 76>}, {pipeline_mode = #tpu.pipeline_mode<synchronous>, transform_indices = @transform_1, window_bounds = array<i64: 8, 40>}, {pipeline_mode = #tpu.pipeline_mode<synchronous>, transform_indices = @transform_2, window_bounds = array<i64: 8, 1>}, {transform_indices = @transform_3, window_bounds = array<i64: 1, 8, 64>}]} {
    %c0 = arith.constant 0 : index
    %c0_0 = arith.constant 0 : index
    %c0_1 = arith.constant 0 : index
    %0 = vector.load %arg2[%c0, %c0_0, %c0_1] : memref<1x8x76xbf16, #tpu.memory_space<vmem>>, vector<1x8x76xbf16>
    %1 = vector.shape_cast %0 : vector<1x8x76xbf16> to vector<8x76xbf16>
    %2 = arith.extf %1 : vector<8x76xbf16> to vector<8x76xf32>
    %cst = arith.constant 2.000000e+01 : f32
    %3 = vector.broadcast %cst : f32 to vector<8x76xf32>
    %4 = arith.minimumf %2, %3 : vector<8x76xf32>
    %5 = math.exp %4 : vector<8x76xf32>
    %cst_2 = arith.constant 2.000000e+00 : f32
    %6 = vector.broadcast %cst_2 : f32 to vector<8x76xf32>
    %7 = arith.addf %5, %6 : vector<8x76xf32>
    %8 = arith.mulf %5, %7 : vector<8x76xf32>
    %cst_3 = arith.constant 2.000000e+00 : f32
    %9 = vector.broadcast %cst_3 : f32 to vector<8x76xf32>
    %10 = arith.addf %8, %9 : vector<8x76xf32>
    %11 = tpu.reciprocal %10 {approx = true} : vector<8x76xf32> -> vector<8x76xf32>
    %12 = arith.mulf %10, %11 : vector<8x76xf32>
    %cst_4 = arith.constant 2.000000e+00 : f32
    %13 = vector.broadcast %cst_4 : f32 to vector<8x76xf32>
    %14 = arith.subf %13, %12 : vector<8x76xf32>
    %15 = arith.mulf %11, %14 : vector<8x76xf32>
    %16 = arith.mulf %2, %8 : vector<8x76xf32>
    %17 = arith.mulf %16, %15 : vector<8x76xf32>
    %18 = arith.truncf %17 : vector<8x76xf32> to vector<8x76xbf16>
    %19 = vector.extract_strided_slice %18 {offsets = [0, 0], sizes = [8, 64], strides = [1, 1]} : vector<8x76xbf16> to vector<8x64xbf16>
    %20 = vector.extract_strided_slice %18 {offsets = [0, 3], sizes = [8, 64], strides = [1, 1]} : vector<8x76xbf16> to vector<8x64xbf16>
    %21 = vector.extract_strided_slice %18 {offsets = [0, 6], sizes = [8, 64], strides = [1, 1]} : vector<8x76xbf16> to vector<8x64xbf16>
    %22 = vector.extract_strided_slice %18 {offsets = [0, 9], sizes = [8, 64], strides = [1, 1]} : vector<8x76xbf16> to vector<8x64xbf16>
    %23 = vector.extract_strided_slice %18 {offsets = [0, 12], sizes = [8, 64], strides = [1, 1]} : vector<8x76xbf16> to vector<8x64xbf16>
    %24 = tpu.concatenate %19, %20, %21, %22, %23 in 0 : vector<8x64xbf16>, vector<8x64xbf16>, vector<8x64xbf16>, vector<8x64xbf16>, vector<8x64xbf16> -> vector<40x64xbf16>
    %c0_5 = arith.constant 0 : index
    %c0_6 = arith.constant 0 : index
    %25 = vector.load %arg3[%c0_5, %c0_6] : memref<8x40xbf16, #tpu.memory_space<vmem>>, vector<8x40xbf16>
    %cst_7 = arith.constant dense<0.000000e+00> : vector<8x64xf32>
    %26 = tpu.matmul %25, %24, %cst_7 {dimension_numbers = #tpu.dot_dimension_numbers<[1], [0], [0], [1], [0, 0, 1, 1], [], []>} : vector<8x40xbf16>, vector<40x64xbf16>, vector<8x64xf32> -> vector<8x64xf32>
    %c0_8 = arith.constant 0 : index
    %c0_9 = arith.constant 0 : index
    %27 = vector.load %arg4[%c0_8, %c0_9] : memref<8x1xf32, #tpu.memory_space<vmem>>, vector<8x1xf32>
    %28 = vector.broadcast %27 : vector<8x1xf32> to vector<8x64xf32>
    %29 = arith.addf %26, %28 : vector<8x64xf32>
    %cst_10 = arith.constant 2.000000e+01 : f32
    %30 = vector.broadcast %cst_10 : f32 to vector<8x64xf32>
    %31 = arith.minimumf %29, %30 : vector<8x64xf32>
    %32 = math.exp %31 : vector<8x64xf32>
    %cst_11 = arith.constant 2.000000e+00 : f32
    %33 = vector.broadcast %cst_11 : f32 to vector<8x64xf32>
    %34 = arith.addf %32, %33 : vector<8x64xf32>
    %35 = arith.mulf %32, %34 : vector<8x64xf32>
    %cst_12 = arith.constant 2.000000e+00 : f32
    %36 = vector.broadcast %cst_12 : f32 to vector<8x64xf32>
    %37 = arith.addf %35, %36 : vector<8x64xf32>
    %38 = tpu.reciprocal %37 {approx = true} : vector<8x64xf32> -> vector<8x64xf32>
    %39 = arith.mulf %37, %38 : vector<8x64xf32>
    %cst_13 = arith.constant 2.000000e+00 : f32
    %40 = vector.broadcast %cst_13 : f32 to vector<8x64xf32>
    %41 = arith.subf %40, %39 : vector<8x64xf32>
    %42 = arith.mulf %38, %41 : vector<8x64xf32>
    %43 = arith.mulf %29, %35 : vector<8x64xf32>
    %44 = arith.mulf %43, %42 : vector<8x64xf32>
    %45 = arith.truncf %44 : vector<8x64xf32> to vector<8x64xbf16>
    %c0_14 = arith.constant 0 : index
    %c0_15 = arith.constant 0 : index
    %c0_16 = arith.constant 0 : index
    %46 = vector.load %arg5[%c0_14, %c0_15, %c0_16] : memref<1x8x64xbf16, #tpu.memory_space<vmem>>, vector<1x8x64xbf16>
    %47 = vector.shape_cast %46 : vector<1x8x64xbf16> to vector<8x64xbf16>
    %48 = vector.shape_cast %45 : vector<8x64xbf16> to vector<1x8x64xbf16>
    tpu.vector_store %arg5[%c0_14, %c0_15, %c0_16], %48 {strides = array<i32>} : memref<1x8x64xbf16, #tpu.memory_space<vmem>>, vector<1x8x64xbf16>,
    return
  }
  func.func @transform_0(%arg0: i32, %arg1: i32) -> (i32, i32, i32) {
    %c0_i32 = arith.constant 0 : i32
    %c0_i32_0 = arith.constant 0 : i32
    %c0_i32_1 = arith.constant 0 : i32
    return %arg0, %c0_i32, %c0_i32_0 : i32, i32, i32
  }
  func.func @transform_1(%arg0: i32, %arg1: i32) -> (i32, i32) {
    %c0_i32 = arith.constant 0 : i32
    %c0_i32_0 = arith.constant 0 : i32
    %c0_i32_1 = arith.constant 0 : i32
    return %c0_i32, %c0_i32_0 : i32, i32
  }
  func.func @transform_2(%arg0: i32, %arg1: i32) -> (i32, i32) {
    %c0_i32 = arith.constant 0 : i32
    %c0_i32_0 = arith.constant 0 : i32
    %c0_i32_1 = arith.constant 0 : i32
    return %c0_i32, %c0_i32_0 : i32, i32
  }
  func.func @transform_3(%arg0: i32, %arg1: i32) -> (i32, i32, i32) {
    %c0_i32 = arith.constant 0 : i32
    %c0_i32_0 = arith.constant 0 : i32
    return %arg0, %c0_i32, %arg1 : i32, i32, i32
  }
}

module attributes {stable_mosaic.version = 11 : i64} {
  func.func @_mish_avg_kernel(%arg0: i32, %arg1: i32, %arg2: memref<1x8x64xbf16, #tpu.memory_space<vmem>>, %arg3: memref<1x8x64xbf16, #tpu.memory_space<vmem>>, %arg4: memref<1x8x64xbf16, #tpu.memory_space<vmem>>) attributes {dimension_semantics = [#tpu.dimension_semantics<parallel>, #tpu.dimension_semantics<parallel>], iteration_bounds = array<i64: 2, 1>, scalar_prefetch = 0 : i64, scratch_operands = 0 : i64, tpu.core_type = #tpu.core_type<tc>, window_params = [{transform_indices = @transform_0, window_bounds = array<i64: 1, 8, 64>}, {transform_indices = @transform_1, window_bounds = array<i64: 1, 8, 64>}, {transform_indices = @transform_2, window_bounds = array<i64: 1, 8, 64>}]} {
    %c0 = arith.constant 0 : index
    %c0_0 = arith.constant 0 : index
    %c0_1 = arith.constant 0 : index
    %0 = vector.load %arg2[%c0, %c0_0, %c0_1] : memref<1x8x64xbf16, #tpu.memory_space<vmem>>, vector<1x8x64xbf16>
    %1 = vector.shape_cast %0 : vector<1x8x64xbf16> to vector<8x64xbf16>
    %2 = arith.extf %1 : vector<8x64xbf16> to vector<8x64xf32>
    %cst = arith.constant 2.000000e+01 : f32
    %3 = vector.broadcast %cst : f32 to vector<8x64xf32>
    %4 = arith.minimumf %2, %3 : vector<8x64xf32>
    %5 = math.exp %4 : vector<8x64xf32>
    %cst_2 = arith.constant 2.000000e+00 : f32
    %6 = vector.broadcast %cst_2 : f32 to vector<8x64xf32>
    %7 = arith.addf %5, %6 : vector<8x64xf32>
    %8 = arith.mulf %5, %7 : vector<8x64xf32>
    %cst_3 = arith.constant 2.000000e+00 : f32
    %9 = vector.broadcast %cst_3 : f32 to vector<8x64xf32>
    %10 = arith.addf %8, %9 : vector<8x64xf32>
    %11 = tpu.reciprocal %10 {approx = true} : vector<8x64xf32> -> vector<8x64xf32>
    %12 = arith.mulf %10, %11 : vector<8x64xf32>
    %cst_4 = arith.constant 2.000000e+00 : f32
    %13 = vector.broadcast %cst_4 : f32 to vector<8x64xf32>
    %14 = arith.subf %13, %12 : vector<8x64xf32>
    %15 = arith.mulf %11, %14 : vector<8x64xf32>
    %16 = arith.mulf %2, %8 : vector<8x64xf32>
    %17 = arith.mulf %16, %15 : vector<8x64xf32>
    %c0_5 = arith.constant 0 : index
    %c0_6 = arith.constant 0 : index
    %c0_7 = arith.constant 0 : index
    %18 = vector.load %arg3[%c0_5, %c0_6, %c0_7] : memref<1x8x64xbf16, #tpu.memory_space<vmem>>, vector<1x8x64xbf16>
    %19 = vector.shape_cast %18 : vector<1x8x64xbf16> to vector<8x64xbf16>
    %20 = arith.extf %19 : vector<8x64xbf16> to vector<8x64xf32>
    %cst_8 = arith.constant 2.000000e+01 : f32
    %21 = vector.broadcast %cst_8 : f32 to vector<8x64xf32>
    %22 = arith.minimumf %20, %21 : vector<8x64xf32>
    %23 = math.exp %22 : vector<8x64xf32>
    %cst_9 = arith.constant 2.000000e+00 : f32
    %24 = vector.broadcast %cst_9 : f32 to vector<8x64xf32>
    %25 = arith.addf %23, %24 : vector<8x64xf32>
    %26 = arith.mulf %23, %25 : vector<8x64xf32>
    %cst_10 = arith.constant 2.000000e+00 : f32
    %27 = vector.broadcast %cst_10 : f32 to vector<8x64xf32>
    %28 = arith.addf %26, %27 : vector<8x64xf32>
    %29 = tpu.reciprocal %28 {approx = true} : vector<8x64xf32> -> vector<8x64xf32>
    %30 = arith.mulf %28, %29 : vector<8x64xf32>
    %cst_11 = arith.constant 2.000000e+00 : f32
    %31 = vector.broadcast %cst_11 : f32 to vector<8x64xf32>
    %32 = arith.subf %31, %30 : vector<8x64xf32>
    %33 = arith.mulf %29, %32 : vector<8x64xf32>
    %34 = arith.mulf %20, %26 : vector<8x64xf32>
    %35 = arith.mulf %34, %33 : vector<8x64xf32>
    %36 = arith.addf %17, %35 : vector<8x64xf32>
    %cst_12 = arith.constant 5.000000e-01 : f32
    %37 = vector.broadcast %cst_12 : f32 to vector<8x64xf32>
    %38 = arith.mulf %36, %37 : vector<8x64xf32>
    %39 = arith.truncf %38 : vector<8x64xf32> to vector<8x64xbf16>
    %c0_13 = arith.constant 0 : index
    %c0_14 = arith.constant 0 : index
    %c0_15 = arith.constant 0 : index
    %40 = vector.load %arg4[%c0_13, %c0_14, %c0_15] : memref<1x8x64xbf16, #tpu.memory_space<vmem>>, vector<1x8x64xbf16>
    %41 = vector.shape_cast %40 : vector<1x8x64xbf16> to vector<8x64xbf16>
    %42 = vector.shape_cast %39 : vector<8x64xbf16> to vector<1x8x64xbf16>
    tpu.vector_store %arg4[%c0_13, %c0_14, %c0_15], %42 {strides = array<i32>} : memref<1x8x64xbf16, #tpu.memory_space<vmem>>, vector<1x8x64xbf16>,
    return
  }
  func.func @transform_0(%arg0: i32, %arg1: i32) -> (i32, i32, i32) {
    %c0_i32 = arith.constant 0 : i32
    %c0_i32_0 = arith.constant 0 : i32
    return %arg0, %c0_i32, %arg1 : i32, i32, i32
  }
  func.func @transform_1(%arg0: i32, %arg1: i32) -> (i32, i32, i32) {
    %c0_i32 = arith.constant 0 : i32
    %c0_i32_0 = arith.constant 0 : i32
    return %arg0, %c0_i32, %arg1 : i32, i32, i32
  }
  func.func @transform_2(%arg0: i32, %arg1: i32) -> (i32, i32, i32) {
    %c0_i32 = arith.constant 0 : i32
    %c0_i32_0 = arith.constant 0 : i32
    return %arg0, %c0_i32, %arg1 : i32, i32, i32
  }
}

module attributes {stable_mosaic.version = 11 : i64} {
  func.func @_conv1d_kernel(%arg0: i32, %arg1: i32, %arg2: memref<1x8x70xbf16, #tpu.memory_space<vmem>>, %arg3: memref<1x56xbf16, #tpu.memory_space<vmem>>, %arg4: memref<1x1xf32, #tpu.memory_space<vmem>>, %arg5: memref<1x1x64xf32, #tpu.memory_space<vmem>>) attributes {dimension_semantics = [#tpu.dimension_semantics<parallel>, #tpu.dimension_semantics<parallel>], iteration_bounds = array<i64: 2, 1>, scalar_prefetch = 0 : i64, scratch_operands = 0 : i64, tpu.core_type = #tpu.core_type<tc>, window_params = [{transform_indices = @transform_0, window_bounds = array<i64: 1, 8, 70>}, {pipeline_mode = #tpu.pipeline_mode<synchronous>, transform_indices = @transform_1, window_bounds = array<i64: 1, 56>}, {pipeline_mode = #tpu.pipeline_mode<synchronous>, transform_indices = @transform_2, window_bounds = array<i64: 1, 1>}, {transform_indices = @transform_3, window_bounds = array<i64: 1, 1, 64>}]} {
    %c0 = arith.constant 0 : index
    %c0_0 = arith.constant 0 : index
    %c0_1 = arith.constant 0 : index
    %0 = vector.load %arg2[%c0, %c0_0, %c0_1] : memref<1x8x70xbf16, #tpu.memory_space<vmem>>, vector<1x8x70xbf16>
    %1 = vector.shape_cast %0 : vector<1x8x70xbf16> to vector<8x70xbf16>
    %2 = arith.extf %1 : vector<8x70xbf16> to vector<8x70xf32>
    %3 = arith.truncf %2 : vector<8x70xf32> to vector<8x70xbf16>
    %4 = vector.extract_strided_slice %3 {offsets = [0, 0], sizes = [8, 64], strides = [1, 1]} : vector<8x70xbf16> to vector<8x64xbf16>
    %5 = vector.extract_strided_slice %3 {offsets = [0, 1], sizes = [8, 64], strides = [1, 1]} : vector<8x70xbf16> to vector<8x64xbf16>
    %6 = vector.extract_strided_slice %3 {offsets = [0, 2], sizes = [8, 64], strides = [1, 1]} : vector<8x70xbf16> to vector<8x64xbf16>
    %7 = vector.extract_strided_slice %3 {offsets = [0, 3], sizes = [8, 64], strides = [1, 1]} : vector<8x70xbf16> to vector<8x64xbf16>
    %8 = vector.extract_strided_slice %3 {offsets = [0, 4], sizes = [8, 64], strides = [1, 1]} : vector<8x70xbf16> to vector<8x64xbf16>
    %9 = vector.extract_strided_slice %3 {offsets = [0, 5], sizes = [8, 64], strides = [1, 1]} : vector<8x70xbf16> to vector<8x64xbf16>
    %10 = vector.extract_strided_slice %3 {offsets = [0, 6], sizes = [8, 64], strides = [1, 1]} : vector<8x70xbf16> to vector<8x64xbf16>
    %11 = tpu.concatenate %4, %5, %6, %7, %8, %9, %10 in 0 : vector<8x64xbf16>, vector<8x64xbf16>, vector<8x64xbf16>, vector<8x64xbf16>, vector<8x64xbf16>, vector<8x64xbf16>, vector<8x64xbf16> -> vector<56x64xbf16>
    %c0_2 = arith.constant 0 : index
    %c0_3 = arith.constant 0 : index
    %12 = vector.load %arg3[%c0_2, %c0_3] : memref<1x56xbf16, #tpu.memory_space<vmem>>, vector<1x56xbf16>
    %cst = arith.constant dense<0.000000e+00> : vector<1x64xf32>
    %13 = tpu.matmul %12, %11, %cst {dimension_numbers = #tpu.dot_dimension_numbers<[1], [0], [0], [1], [0, 0, 1, 1], [], []>} : vector<1x56xbf16>, vector<56x64xbf16>, vector<1x64xf32> -> vector<1x64xf32>
    %c0_4 = arith.constant 0 : index
    %c0_5 = arith.constant 0 : index
    %14 = vector.load %arg4[%c0_4, %c0_5] : memref<1x1xf32, #tpu.memory_space<vmem>>, vector<1x1xf32>
    %15 = vector.broadcast %14 : vector<1x1xf32> to vector<1x64xf32>
    %16 = arith.addf %13, %15 : vector<1x64xf32>
    %17 = math.tanh %16 : vector<1x64xf32>
    %c0_6 = arith.constant 0 : index
    %c0_7 = arith.constant 0 : index
    %c0_8 = arith.constant 0 : index
    %18 = vector.load %arg5[%c0_6, %c0_7, %c0_8] : memref<1x1x64xf32, #tpu.memory_space<vmem>>, vector<1x1x64xf32>
    %19 = vector.shape_cast %18 : vector<1x1x64xf32> to vector<1x64xf32>
    %20 = vector.shape_cast %17 : vector<1x64xf32> to vector<1x1x64xf32>
    tpu.vector_store %arg5[%c0_6, %c0_7, %c0_8], %20 {strides = array<i32>} : memref<1x1x64xf32, #tpu.memory_space<vmem>>, vector<1x1x64xf32>,
    return
  }
  func.func @transform_0(%arg0: i32, %arg1: i32) -> (i32, i32, i32) {
    %c0_i32 = arith.constant 0 : i32
    %c0_i32_0 = arith.constant 0 : i32
    %c0_i32_1 = arith.constant 0 : i32
    return %arg0, %c0_i32, %c0_i32_0 : i32, i32, i32
  }
  func.func @transform_1(%arg0: i32, %arg1: i32) -> (i32, i32) {
    %c0_i32 = arith.constant 0 : i32
    %c0_i32_0 = arith.constant 0 : i32
    %c0_i32_1 = arith.constant 0 : i32
    return %c0_i32, %c0_i32_0 : i32, i32
  }
  func.func @transform_2(%arg0: i32, %arg1: i32) -> (i32, i32) {
    %c0_i32 = arith.constant 0 : i32
    %c0_i32_0 = arith.constant 0 : i32
    %c0_i32_1 = arith.constant 0 : i32
    return %c0_i32, %c0_i32_0 : i32, i32
  }
  func.func @transform_3(%arg0: i32, %arg1: i32) -> (i32, i32, i32) {
    %c0_i32 = arith.constant 0 : i32
    %c0_i32_0 = arith.constant 0 : i32
    return %arg0, %c0_i32, %arg1 : i32, i32, i32
  }
}

</mosaic_0001>

<bundles_post_ra>
// kernel: tile.13
= control target key start
LH: loop header
LB: loop body
LE: loop exit
PB: predicated region body
PF: predicated region fallthrough
CT: control target
= control target key end

     0   :  { %s22_s0 = inlined_call_operand.vmem [shape: f32[16], index: 0, kind: input, shape index: {}]   ;;  %s23_s1 = inlined_call_operand.vmem [shape: f32[2,16], index: 1, kind: output, shape index: {}]  }
   0x1   :  { %v4_v0 = vld [vmem:[%s22_s0] ss:$0 sm:$0xff] }
   0x2   :  { %5 = vst [vmem:[%s23_s1] sm:$0x3] %v4_v0 }

// kernel: tile.0
= control target key start
LH: loop header
LB: loop body
LE: loop exit
PB: predicated region body
PF: predicated region fallthrough
CT: control target
= control target key end

     0   :  { %s131_s8 = smov 125   ;;  %s132_s9 = smov 126   ;;  %vm8_vm0 = vcmask 7168   ;;  %s222_s0 = inlined_call_operand.vmem [shape: f32[2,16], index: 0, kind: input, shape index: {}]   ;;  %s223_s1 = inlined_call_operand.vmem [shape: f32[32,1], index: 1, kind: output, shape index: {}]  }
   0x1   :  { %v5_v0 = vld [vmem:[%s222_s0] sm:$0x3]  ;;  %s130_s0 = smov 127   ;;  %s133_s10 = smov 124  }
   0x2   :  { %6 = vst [vmem:[#allocation0] sm:$0x3] %v5_v0  ;;  %s134_s11 = smov 123   ;;  %s135_s12 = smov 122  }
   0x3   :  { %s136_s13 = smov 121   ;;  %s137_s14 = smov 120  }
   0x4   :  { %s138_s17 = smov 119   ;;  %s139_s18 = smov 118  }
   0x5   :  { %s140_s19 = smov 117   ;;  %s141_s20 = smov 116  }
   0x6   :  { %s142_s21 = smov 115   ;;  %s143_s22 = smov 114  }
   0x7   :  { %s144_s23 = smov 113  }
   0x9   :  { %v10_v1 = vld [vmem:[#allocation0] sm:$0x3]  }
   0xa   :  { %v22_v2 = vld [vmem:[#allocation0] sm:$0x3]   ;;  %11 = vrot.lane.b32.xlu0 %v10_v1, %s130_s0 }
   0xb   :  { %23 = vrot.lane.b32.xlu1 %v22_v2, %s131_s8  ;;  %v16_v3 = vld [vmem:[#allocation0] sm:$0x3]  }
   0xc   :  { %v28_v4 = vld [vmem:[#allocation0] sm:$0x3]  }
   0xd   :  { %v34_v5 = vld [vmem:[#allocation0] sm:$0x3]  }
   0xe   :  { %17 = vrot.lane.b32.xlu0 %v16_v3, %s132_s9  ;;  %v40_v6 = vld [vmem:[#allocation0] sm:$0x3]  }
   0xf   :  { %29 = vrot.lane.b32.xlu1 %v28_v4, %s133_s10  ;;  %v46_v7 = vld [vmem:[#allocation0] sm:$0x3]  }
  0x10   :  { %v52_v8 = vld [vmem:[#allocation0] sm:$0x3]  }
  0x11   :  { %v58_v9 = vld [vmem:[#allocation0] sm:$0x3]  }
  0x12   :  { %35 = vrot.lane.b32.xlu0 %v34_v5, %s134_s11  ;;  %v64_v10 = vld [vmem:[#allocation0] sm:$0x3]  }
  0x13   :  { %41 = vrot.lane.b32.xlu1 %v40_v6, %s135_s12  ;;  %v7_v11 = vld [vmem:[#allocation0] sm:$0x3]  }
  0x14   :  { %9 = vst.msk [vmem:[%s223_s1] ss:$16 sm:$0x3] %vm8_vm0, %v7_v11   ;;  %v70_v12 = vld [vmem:[#allocation0] sm:$0x3]  }
  0x15   :  { %v76_v13 = vld [vmem:[#allocation0] sm:$0x3]  }
  0x16   :  { %47 = vrot.lane.b32.xlu0 %v46_v7, %s136_s13  ;;  %v82_v14 = vld [vmem:[#allocation0] sm:$0x3]  }
  0x17   :  { %53 = vrot.lane.b32.xlu1 %v52_v8, %s137_s14  ;;  %v88_v15 = vld [vmem:[#allocation0] sm:$0x3]  }
  0x18   :  { %v94_v16 = vld [vmem:[#allocation0] sm:$0x3]  }
  0x1a   :  { %59 = vrot.lane.b32.xlu0 %v58_v9, %s138_s17 }
  0x1b   :  { %65 = vrot.lane.b32.xlu1 %v64_v10, %s139_s18 }
  0x1e   :  { %71 = vrot.lane.b32.xlu0 %v70_v12, %s140_s19 }
  0x1f   :  { %77 = vrot.lane.b32.xlu1 %v76_v13, %s141_s20 }
  0x22   :  { %83 = vrot.lane.b32.xlu0 %v82_v14, %s142_s21 }
  0x23   :  { %89 = vrot.lane.b32.xlu1 %v88_v15, %s143_s22 }
  0x26   :  { %95 = vrot.lane.b32.xlu0 %v94_v16, %s144_s23 }
  0x7c   :  { %v12_v17 = vpop.permute.xlu0 %11  }
  0x7d   :  { %v24_v18 = vpop.permute.xlu1 %23   ;;  %100 = vst.msk [vmem:[%s223_s1 + $0x1] ss:$16 sm:$0x3] %vm8_vm0, %v12_v17  }
  0x7e   :  { %102 = vst.msk [vmem:[%s223_s1 + $0x3] ss:$16 sm:$0x3] %vm8_vm0, %v24_v18  }
  0x80   :  { %v18_v19 = vpop.permute.xlu0 %17  }
  0x81   :  { %v30_v20 = vpop.permute.xlu1 %29   ;;  %101 = vst.msk [vmem:[%s223_s1 + $0x2] ss:$16 sm:$0x3] %vm8_vm0, %v18_v19  }
  0x82   :  { %103 = vst.msk [vmem:[%s223_s1 + $0x4] ss:$16 sm:$0x3] %vm8_vm0, %v30_v20  }
  0x84   :  { %v36_v21 = vpop.permute.xlu0 %35  }
  0x85   :  { %v42_v22 = vpop.permute.xlu1 %41   ;;  %104 = vst.msk [vmem:[%s223_s1 + $0x5] ss:$16 sm:$0x3] %vm8_vm0, %v36_v21  }
  0x86   :  { %105 = vst.msk [vmem:[%s223_s1 + $0x6] ss:$16 sm:$0x3] %vm8_vm0, %v42_v22  }
  0x88   :  { %v48_v23 = vpop.permute.xlu0 %47  }
  0x89   :  { %v54_v24 = vpop.permute.xlu1 %53   ;;  %106 = vst.msk [vmem:[%s223_s1 + $0x7] ss:$16 sm:$0x3] %vm8_vm0, %v48_v23  }
  0x8a   :  { %107 = vst.msk [vmem:[%s223_s1 + $0x8] ss:$16 sm:$0x3] %vm8_vm0, %v54_v24  }
  0x8c   :  { %v60_v25 = vpop.permute.xlu0 %59  }
  0x8d   :  { %v66_v26 = vpop.permute.xlu1 %65   ;;  %108 = vst.msk [vmem:[%s223_s1 + $0x9] ss:$16 sm:$0x3] %vm8_vm0, %v60_v25  }
  0x8e   :  { %109 = vst.msk [vmem:[%s223_s1 + $0xa] ss:$16 sm:$0x3] %vm8_vm0, %v66_v26  }
  0x90   :  { %v72_v27 = vpop.permute.xlu0 %71  }
  0x91   :  { %v78_v28 = vpop.permute.xlu1 %77   ;;  %110 = vst.msk [vmem:[%s223_s1 + $0xb] ss:$16 sm:$0x3] %vm8_vm0, %v72_v27  }
  0x92   :  { %111 = vst.msk [vmem:[%s223_s1 + $0xc] ss:$16 sm:$0x3] %vm8_vm0, %v78_v28  }
  0x94   :  { %v84_v29 = vpop.permute.xlu0 %83  }
  0x95   :  { %v90_v30 = vpop.permute.xlu1 %89   ;;  %112 = vst.msk [vmem:[%s223_s1 + $0xd] ss:$16 sm:$0x3] %vm8_vm0, %v84_v29  }
  0x96   :  { %113 = vst.msk [vmem:[%s223_s1 + $0xe] ss:$16 sm:$0x3] %vm8_vm0, %v90_v30  }
  0x98   :  { %v96_v31 = vpop.permute.xlu0 %95  }
  0x99   :  { %114 = vst.msk [vmem:[%s223_s1 + $0xf] ss:$16 sm:$0x3] %vm8_vm0, %v96_v31  }

// kernel: _lambda_.22
= control target key start
LH: loop header
LB: loop body
LE: loop exit
PB: predicated region body
PF: predicated region fallthrough
CT: control target
= control target key end

     0   :  { %s841_s12 = smov 0   ;;  %s843_s13 = smov 0   ;;  %s979_s0 = inlined_call_operand.vmem [shape: f32[2,80,22], index: 0, kind: input, shape index: {}]   ;;  %s980_s1 = inlined_call_operand.vmem [shape: bf16[32,560], index: 1, kind: input, shape index: {}]   ;;  %s981_s2 = inlined_call_operand.vmem [shape: f32[32,1], index: 2, kind: input, shape index: {}]   ;;  %s982_s3 = inlined_call_operand.vmem [shape: bf16[2,32,16], index: 3, kind: output, shape index: {}]  }
   0x1   :  { %s845_s14 = smov 0  }
   0x2 LB: > { %s25_s15 = sadd.s32 1, %s808_s13  ;;  %p644_p0 = scmp.ge.s32.totalorder %s812_s14, 1  ;;  %s812_s14 = sphi %s845_s14, %s13_s14   ;;  %s808_s13 = sphi %s843_s13, %s984_s13   ;;  %s804_s12 = sphi %s841_s12, %s983_s12  }
   0x3   : > { %p27_p1 = scmp.ge.s32.totalorder %s25_s15, 2  ;;  %p151_p2 = scmp.lt.s32.totalorder %s812_s14, 3 }
   0x5   : > { %s986_s15 = smov (%p27_p1, %s25_s15), 0  ;;  %p152_p3 = pnand %p644_p0, %p151_p2 }
   0x6   : > { %p178_p4 = scmp.lt.s32.totalorder (!%p152_p3), %s804_s12, 1  ;;  %s814_s20 = smov (!%p152_p3), 126  }
   0x7   : > { %155 = sbr.rel (%p152_p3) target bundleno = 406 (0x196), region = 32  ;;  %s815_s21 = smov (!%p152_p3), 125  }
   0x8   : > { %s816_s22 = smov (!%p152_p3), 122   ;;  %s817_s23 = smov (!%p152_p3), 127  }
   0x9   : > { %s818_s24 = smov (!%p152_p3), 124   ;;  %s819_s25 = smov (!%p152_p3), 123  }
   0xc   : > { %s988_s12 = smov (!%p178_p4, %s804_s12), 1  ;;  %v778_v15 = vld [vmem:[%s980_s1 + $0x4] ss:$20 sps:$4 sm:$0xff]   ;;  %v781_v16 = vld [vmem:[%s980_s1 + $0xc] ss:$20 sps:$4 sm:$0xff]   ;;  %v820_v17 = vmov 0  }
   0xd   : > { %s742_s16 = smul.u32 80, %s988_s12  ;;  %427 = vmatprep.mubr.bf16.mxu0 %v778_v15  ;;  %476 = vmatprep.mubr.bf16.mxu1 %v781_v16  ;;  %v315_v18 = vld [vmem:[%s981_s2 + $0x8] sm:$0xff]  ;;  %v314_v19 = vld [vmem:[%s981_s2] sm:$0xff]  ;;  %v316_v20 = vld [vmem:[%s981_s2 + $0x10] sm:$0xff]  ;;  %vm388_vm0 = vcmask 392192   ;;  %s666_s4 = sshll.u32 %s988_s12, 4 }
   0xe   : > { %775 = vset.pattern.permute.xlu1 %v820_v17  ;;  %774 = vset.pattern.permute.xlu0 %v820_v17  ;;  %v317_v21 = vld [vmem:[%s981_s2 + $0x18] sm:$0xff]  ;;  %v776_v46 = vld [vmem:[%s980_s1] ss:$20 sps:$4 sm:$0xff]   ;;  %v788_v55 = vld [vmem:[%s980_s1 + $0x10] ss:$20 sps:$4 sm:$0xff]   ;;  %s190_s7 = scalar_lea.vmem %s982_s3, %s666_s4  ;;  %vm558_vm1 = vcmask 125952  }
   0xf   : > { %s182_s19 = scalar_lea.vmem %s979_s0, %s742_s16  ;;  %v782_v47 = vld [vmem:[%s980_s1 + $0x2c] ss:$20 sps:$4 sm:$0xff]   ;;  %v779_v52 = vld [vmem:[%s980_s1 + $0x8] ss:$20 sps:$4 sm:$0xff]   ;;  %v787_v58 = vld [vmem:[%s980_s1 + $0x30] ss:$20 sps:$4 sm:$0xff]  }
  0x10   : > { %v200_v0 = vld [vmem:[%s182_s19 + $0x40] sm:$0xff]  ;;  %v201_v1 = vld [vmem:[%s182_s19 + $0x48] sm:$0xff]  ;;  %v194_v5 = vld [vmem:[%s182_s19 + $0x10] sm:$0xff] }
  0x11   : > { %v192_v2 = vld [vmem:[%s182_s19] sm:$0xff]  ;;  %v865_v3 = vpack.c.bf16 %v201_v1, %v200_v0  ;;  %v193_v4 = vld [vmem:[%s182_s19 + $0x8] sm:$0xff]  ;;  %v195_v6 = vld [vmem:[%s182_s19 + $0x18] sm:$0xff] }
  0x12   : > { %v867_v7 = vpack.c.bf16 %v193_v4, %v192_v2  ;;  %v196_v8 = vld [vmem:[%s182_s19 + $0x20] sm:$0xff]  ;;  %v197_v9 = vld [vmem:[%s182_s19 + $0x28] sm:$0xff]  ;;  %v870_v10 = vpack.c.bf16 %v195_v6, %v194_v5  ;;  %v198_v12 = vld [vmem:[%s182_s19 + $0x30] sm:$0xff] }
  0x13   : > { %235 = vrot.lane.b32.xlu1 %v865_v3, %s814_s20  ;;  %v874_v11 = vpack.c.bf16 %v197_v9, %v196_v8  ;;  %v199_v13 = vld [vmem:[%s182_s19 + $0x38] sm:$0xff]  ;;  %v785_v54 = vld [vmem:[%s980_s1 + $0x34] ss:$20 sps:$4 sm:$0xff]  }
  0x14   : > { %242 = vrot.lane.b32.xlu0 %v867_v7, %s815_s21  ;;  %v878_v14 = vpack.c.bf16 %v199_v13, %v198_v12  ;;  %v784_v53 = vld [vmem:[%s980_s1 + $0x28] ss:$20 sps:$4 sm:$0xff]   ;;  %v789_v59 = vld [vmem:[%s980_s1 + $0x38] ss:$20 sps:$4 sm:$0xff]  }
  0x17   : > { %289 = vrot.lane.b32.xlu1 %v870_v10, %s816_s22 }
  0x18   : > { %216 = vrot.lane.b32.xlu0 %v874_v11, %s817_s23 }
  0x1b   : > { %263 = vrot.lane.b32.xlu1 %v878_v14, %s818_s24 }
  0x1c   : > { %214 = vrot.lane.b32.xlu0 %v870_v10, %s817_s23 }
  0x1f   : > { %287 = vrot.lane.b32.xlu1 %v867_v7, %s816_s22 }
  0x20   : > { %233 = vrot.lane.b32.xlu0 %v878_v14, %s814_s20 }
  0x23   : > { %261 = vrot.lane.b32.xlu1 %v874_v11, %s818_s24 }
  0x24   : > { %212 = vrot.lane.b32.xlu0 %v867_v7, %s817_s23 }
  0x27   : > { %280 = vrot.lane.b32.xlu1 %v865_v3, %s819_s25 }
  0x28   : > { %231 = vrot.lane.b32.xlu0 %v874_v11, %s814_s20 }
  0x2b   : > { %229 = vrot.lane.b32.xlu1 %v870_v10, %s814_s20 }
  0x2c   : > { %259 = vrot.lane.b32.xlu0 %v870_v10, %s818_s24 }
  0x2f   : > { %257 = vrot.lane.b32.xlu1 %v867_v7, %s818_s24 }
  0x30   : > { %278 = vrot.lane.b32.xlu0 %v878_v14, %s819_s25 }
  0x33   : > { %276 = vrot.lane.b32.xlu1 %v874_v11, %s819_s25 }
  0x34   : > { %227 = vrot.lane.b32.xlu0 %v867_v7, %s814_s20 }
  0x37   : > { %220 = vrot.lane.b32.xlu1 %v865_v3, %s817_s23 }
  0x38   : > { %250 = vrot.lane.b32.xlu0 %v865_v3, %s815_s21 }
  0x3b   : > { %248 = vrot.lane.b32.xlu1 %v878_v14, %s815_s21 }
  0x3c   : > { %274 = vrot.lane.b32.xlu0 %v870_v10, %s819_s25 }
  0x3f   : > { %272 = vrot.lane.b32.xlu1 %v867_v7, %s819_s25 }
  0x40   : > { %218 = vrot.lane.b32.xlu0 %v878_v14, %s817_s23 }
  0x43   : > { %265 = vrot.lane.b32.xlu1 %v865_v3, %s818_s24 }
  0x44   : > { %246 = vrot.lane.b32.xlu0 %v874_v11, %s815_s21 }
  0x47   : > { %295 = vrot.lane.b32.xlu1 %v865_v3, %s816_s22 }
  0x48   : > { %244 = vrot.lane.b32.xlu0 %v870_v10, %s815_s21 }
  0x4b   : > { %291 = vrot.lane.b32.xlu1 %v874_v11, %s816_s22 }
  0x4c   : > { %293 = vrot.lane.b32.xlu0 %v878_v14, %s816_s22 }
  0x4f   : > { %325 = vperm.xlu1 %775, %v315_v18  }
  0x50   : > { %320 = vperm.xlu0 %774, %v314_v19  }
  0x53   : > { %330 = vperm.xlu1 %775, %v316_v20  }
  0x54   : > { %335 = vperm.xlu0 %774, %v317_v21  }
  0x85   : > { %v236_v22 = vpop.permute.xlu1 %235 }
  0x86   : > { %v243_v23 = vpop.permute.xlu0 %242 }
  0x87   : > { %671 = vmatprep.subr.bf16.mxu0 %v243_v23 }
  0x89   : > { %v290_v24 = vpop.permute.xlu1 %289 }
  0x8a   : > { %v217_v25 = vpop.permute.xlu0 %216  ;;  %699 = vmatprep.subr.bf16.mxu1 %v290_v24 }
  0x8b   : > { %672 = vmatpush3.bf16.msra.mxu0 %v217_v25 }
  0x8c   : > { %673 = vmatprep.subr.bf16.mxu0 %v236_v22 }
  0x8d   : > { %v264_v26 = vpop.permute.xlu1 %263 }
  0x8e   : > { %v215_v27 = vpop.permute.xlu0 %214  ;;  %700 = vmatpush3.bf16.msra.mxu1 %v264_v26 }
  0x8f   : > { %674 = vmatpush3.bf16.msra.mxu0 %v215_v27 }
  0x91   : > { %v288_v28 = vpop.permute.xlu1 %287 }
  0x92   : > { %v234_v29 = vpop.permute.xlu0 %233  ;;  %701 = vmatprep.subr.bf16.mxu1 %v288_v28 }
  0x93   : > { %675 = vmatprep.subr.bf16.mxu0 %v234_v29 }
  0x95   : > { %v262_v30 = vpop.permute.xlu1 %261 }
  0x96   : > { %v213_v31 = vpop.permute.xlu0 %212  ;;  %702 = vmatpush3.bf16.msra.mxu1 %v262_v30 }
  0x97   : > { %676 = vmatpush3.bf16.msra.mxu0 %v213_v31 }
  0x99   : > { %v281_v32 = vpop.permute.xlu1 %280 }
  0x9a   : > { %v232_v33 = vpop.permute.xlu0 %231  ;;  %703 = vmatprep.subr.bf16.mxu1 %v281_v32 }
  0x9b   : > { %677 = vmatprep.subr.bf16.mxu0 %v232_v33 }
  0x9c   : > { %678 = vmatpush3.bf16.msra.mxu0 %v865_v3 }
  0x9d   : > { %v230_v34 = vpop.permute.xlu1 %229 }
  0x9e   : > { %v260_v35 = vpop.permute.xlu0 %259  ;;  %679 = vmatprep.subr.bf16.mxu0 %v230_v34 }
  0x9f   : > { %704 = vmatpush3.bf16.msra.mxu1 %v260_v35 }
  0xa0   : > { %680 = vmatpush3.bf16.msra.mxu0 %v878_v14 }
  0xa1   : > { %v258_v36 = vpop.permute.xlu1 %257 }
  0xa2   : > { %v279_v37 = vpop.permute.xlu0 %278 }
  0xa3   : > { %705 = vmatprep.subr.bf16.mxu1 %v279_v37 }
  0xa4   : > { %706 = vmatpush3.bf16.msra.mxu1 %v258_v36 }
  0xa5   : > { %v277_v38 = vpop.permute.xlu1 %276 }
  0xa6   : > { %v228_v39 = vpop.permute.xlu0 %227  ;;  %707 = vmatprep.subr.bf16.mxu1 %v277_v38 }
  0xa7   : > { %681 = vmatprep.subr.bf16.mxu0 %v228_v39 }
  0xa8   : > { %682 = vmatpush3.bf16.msra.mxu0 %v874_v11 }
  0xa9   : > { %v221_v40 = vpop.permute.xlu1 %220 }
  0xaa   : > { %v251_v41 = vpop.permute.xlu0 %250  ;;  %683 = vmatprep.subr.bf16.mxu0 %v221_v40 }
  0xab   : > { %708 = vmatpush3.bf16.msra.mxu1 %v251_v41 }
  0xac   : > { %684 = vmatpush3.bf16.msra.mxu0 %v870_v10 }
  0xad   : > { %v249_v42 = vpop.permute.xlu1 %248 }
  0xae   : > { %v275_v43 = vpop.permute.xlu0 %274 }
  0xaf   : > { %709 = vmatprep.subr.bf16.mxu1 %v275_v43 }
  0xb0   : > { %710 = vmatpush3.bf16.msra.mxu1 %v249_v42 }
  0xb1   : > { %v273_v44 = vpop.permute.xlu1 %272 }
  0xb2   : > { %v219_v45 = vpop.permute.xlu0 %218  ;;  %711 = vmatprep.subr.bf16.mxu1 %v273_v44 }
  0xb3   : > { %685 = vmatprep.subr.bf16.mxu0 %v219_v45 }
  0xb4   : > { %686 = vmatpush3.bf16.msra.mxu0 %v867_v7 }
  0xb5   : > { %v266_v48 = vpop.permute.xlu1 %265 }
  0xb6   : > { %v247_v49 = vpop.permute.xlu0 %246 }
  0xb7   : > { %428 = vmatmul.mubr.bf16.vlgmr.msra.gmra.mxu0 %v776_v46  ;;  %712 = vmatpush3.bf16.msra.mxu1 %v247_v49 }
  0xb8   : > { %713 = vmatprep.subr.bf16.mxu1 %v266_v48  ;;  %435 = vmatprep.mubr.bf16.mxu0 %v782_v47 }
  0xb9   : > { %v296_v50 = vpop.permute.xlu1 %295 }
  0xba   : > { %v245_v51 = vpop.permute.xlu0 %244  ;;  %732 = vmatprep.subr.bf16.mxu0 %v296_v50 }
  0xbb   : > { %714 = vmatpush3.bf16.msra.mxu1 %v245_v51  ;;  %733 = vmatpush3.bf16.msra.mxu0 %v296_v50 }
  0xbd   : > { %v292_v57 = vpop.permute.xlu1 %291 }
  0xbe   : > { %477 = vmatmul.mubr.bf16.vlgmr.msra.gmra.mxu1 %v779_v52  ;;  %v294_v56 = vpop.permute.xlu0 %293 }
  0xbf   : > { %436 = vmatmul.mubr.bf16.gmra.mxu0 %v784_v53  ;;  %734 = vmatprep.subr.bf16.mxu0 %v294_v56 }
  0xc0   : > { %735 = vmatpush3.bf16.msra.mxu0 %v294_v56  ;;  %484 = vmatprep.mubr.bf16.mxu1 %v785_v54 }
  0xc1   : > { %736 = vmatprep.subr.bf16.mxu0 %v292_v57  ;;  %738 = vmatprep.mubr.msk.bf16.mxu0 %vm388_vm0, %v788_v55 }
  0xc4   : > { %737 = vmatpush3.bf16.msra.mxu0 %v292_v57 }
  0xc6   : > { %485 = vmatmul.mubr.bf16.gmra.mxu1 %v787_v58 }
  0xc7   : > { %739 = vmatmul.mubr.msk.bf16.vlgmr.msra.gmra.mxu0 %vm388_vm0, %v789_v59 }
  0xca   : > { %v326_v2 = vpop.permute.xlu1 %325 }
  0xcb   : > { %v321_v7 = vpop.permute.xlu0 %320 }
  0xce   : > { %v331_v15 = vpop.permute.xlu1 %330 }
  0xcf   : > { %v336_v26 = vpop.permute.xlu0 %335 }
 0x177   : > { %v687_v60 = vpop.f32.mrf.mxu0 }
 0x179   : > { %v688_v61 = vpop.f32.mrf.mxu0 }
 0x17a   : > { %v689_v5 = vadd.f32 %v688_v61, %v687_v60 }
 0x17b   : > { %v690_v62 = vpop.f32.mrf.mxu0 }
 0x17c   : > { %v430_v14 = vadd.f32 %v689_v5, %v321_v7 }
 0x17d   : > { %v691_v63 = vpop.f32.mrf.mxu0 }
 0x17e   : > { %v715_v0 = vpop.f32.mrf.mxu1  ;;  %v692_v13 = vadd.f32 %v691_v63, %v690_v62 }
 0x17f   : > { %v693_v1 = vpop.f32.mrf.mxu0 }
 0x180   : > { %v716_v3 = vpop.f32.mrf.mxu1  ;;  %v433_v25 = vadd.f32 %v692_v13, %v326_v2 }
 0x181   : > { %v694_v4 = vpop.f32.mrf.mxu0  ;;  %v717_v9 = vadd.f32 %v716_v3, %v715_v0 }
 0x182   : > { %v718_v6 = vpop.f32.mrf.mxu1  ;;  %v695_v11 = vadd.f32 %v694_v4, %v693_v1 }
 0x183   : > { %v696_v8 = vpop.f32.mrf.mxu0  ;;  %v479_v20 = vadd.f32 %v717_v9, %v430_v14 }
 0x184   : > { %v719_v10 = vpop.f32.mrf.mxu1  ;;  %v438_v22 = vadd.f32 %v695_v11, %v331_v15 }
 0x185   : > { %v697_v12 = vpop.f32.mrf.mxu0  ;;  %v720_v18 = vadd.f32 %v719_v10, %v718_v6 }
 0x186   : > { %v721_v16 = vpop.f32.mrf.mxu1  ;;  %v698_v21 = vadd.f32 %v697_v12, %v696_v8 }
 0x187   : > { %v740_v17 = vpop.f32.mrf.mxu0  ;;  %v482_v33 = vadd.f32 %v720_v18, %v433_v25 }
 0x188   : > { %v722_v19 = vpop.f32.mrf.mxu1  ;;  %v441_v34 = vadd.f32 %v698_v21, %v336_v26 }
 0x189   : > { %v723_v23 = vadd.f32 %v722_v19, %v721_v16  ;;  %v527_v24 = vpop.f32.mrf.mxu0 }
 0x18a   : > { %v528_v27 = vadd.f32 %v527_v24, %v479_v20  ;;  %v724_v28 = vpop.f32.mrf.mxu1 }
 0x18b   : > { %v487_v29 = vadd.f32 %v723_v23, %v438_v22  ;;  %v741_v30 = vpop.f32.mrf.mxu0 }
 0x18c   : > { %v667_v31 = vpack.c.bf16 %v528_v27, %v528_v27  ;;  %v725_v32 = vpop.f32.mrf.mxu1 }
 0x18d   : > { %v536_v35 = vadd.f32 %v740_v17, %v487_v29  ;;  %v726_v36 = vadd.f32 %v725_v32, %v724_v28  ;;  %v530_v37 = vpop.f32.mrf.mxu0 }
 0x18e   : > { %559 = vst.msk [vmem:[%s190_s7] sm:$0xf] %vm558_vm1, %v667_v31  ;;  %v531_v38 = vadd.f32 %v530_v37, %v482_v33 }
 0x18f   : > { %v669_v39 = vpack.c.bf16 %v536_v35, %v536_v35  ;;  %v490_v40 = vadd.f32 %v726_v36, %v441_v34 }
 0x190   : > { %v668_v41 = vpack.c.bf16 %v531_v38, %v531_v38 }
 0x191   : > { %561 = vst.msk [vmem:[%s190_s7 + $0x8] sm:$0xf] %vm558_vm1, %v669_v39  ;;  %v539_v42 = vadd.f32 %v741_v30, %v490_v40 }
 0x192   : > { %560 = vst.msk [vmem:[%s190_s7 + $0x4] sm:$0xf] %vm558_vm1, %v668_v41 }
 0x193   : > { %v670_v43 = vpack.c.bf16 %v539_v42, %v539_v42 }
 0x195   : > { %562 = vst.msk [vmem:[%s190_s7 + $0xc] sm:$0xf] %vm558_vm1, %v670_v43 }
 0x196 PF: > { %s13_s14 = sadd.s32 1, %s812_s14   ;;  %s983_s12 = smov %s808_s13 }
 0x197   : > { %p10_p5 = scmp.ge.s32.totalorder %s13_s14, 4   ;;  %s984_s13 = smov %s986_s15 }
 0x199   :  { %12 = sbr.rel (!%p10_p5) target bundleno = 2 (0x2), region = 62 }

// kernel: _lambda_.23
= control target key start
LH: loop header
LB: loop body
LE: loop exit
PB: predicated region body
PF: predicated region fallthrough
CT: control target
= control target key end

     0   :  { %s594_s12 = smov 0   ;;  %s596_s13 = smov 0   ;;  %s654_s0 = inlined_call_operand.vmem [shape: bf16[2,32,18], index: 0, kind: input, shape index: {}]   ;;  %s655_s1 = inlined_call_operand.vmem [shape: bf16[32,64], index: 1, kind: input, shape index: {}]   ;;  %s656_s2 = inlined_call_operand.vmem [shape: f32[32,1], index: 2, kind: input, shape index: {}]   ;;  %s657_s3 = inlined_call_operand.vmem [shape: bf16[2,32,17], index: 3, kind: output, shape index: {}]  }
   0x1   :  { %s598_s14 = smov 0  }
   0x2 LB: > { %s25_s15 = sadd.s32 1, %s566_s13  ;;  %p454_p0 = scmp.ge.s32.totalorder %s570_s14, 1  ;;  %s570_s14 = sphi %s598_s14, %s13_s14   ;;  %s566_s13 = sphi %s596_s13, %s659_s13   ;;  %s562_s12 = sphi %s594_s12, %s658_s12  }
   0x3   : > { %p27_p1 = scmp.ge.s32.totalorder %s25_s15, 2  ;;  %p151_p2 = scmp.lt.s32.totalorder %s570_s14, 3 }
   0x5   : > { %s661_s15 = smov (%p27_p1, %s25_s15), 0  ;;  %p152_p3 = pnand %p454_p0, %p151_p2 }
   0x6   : > { %p178_p4 = scmp.lt.s32.totalorder (!%p152_p3), %s562_s12, 1  ;;  %s572_s20 = smov (!%p152_p3), 127  }
   0x7   : > { %155 = sbr.rel (%p152_p3) target bundleno = 402 (0x192), region = 32 }
   0xc   : > { %s663_s12 = smov (!%p178_p4, %s562_s12), 1  ;;  %v530_v56 = vld [vmem:[%s655_s1] sm:$0xff]   ;;  %vm296_vm0 = vcmask 523264   ;;  %v573_v58 = vmov 0   ;;  %v264_v59 = vld [vmem:[%s656_s2 + $0x10] sm:$0xff]  ;;  %v263_v60 = vld [vmem:[%s656_s2 + $0x8] sm:$0xff] }
   0xd   : > { %s469_s16 = sshll.u32 %s663_s12, 4  ;;  %498 = vmatprep.mubr.msk.bf16.mxu0 %vm296_vm0, %v530_v56  ;;  %v262_v57 = vld [vmem:[%s656_s2] sm:$0xff]  ;;  %528 = vset.pattern.permute.xlu1 %v573_v58  ;;  %v265_v61 = vld [vmem:[%s656_s2 + $0x18] sm:$0xff]  ;;  %vm368_vm1 = vcmask 134144  }
   0xe   : > { %s182_s19 = scalar_lea.vmem %s654_s0, %s469_s16  ;;  %268 = vperm.xlu1 %528, %v262_v57   ;;  %529 = vset.pattern.permute.xlu0 %v573_v58  ;;  %s190_s8 = scalar_lea.vmem %s657_s3, %s469_s16 }
   0xf   : > { %v483_v0 = vld [vmem:[%s182_s19 + $0x8] sm:$0xff]   ;;  %v476_v1 = vld [vmem:[%s182_s19] sm:$0xff]  }
  0x10   : > { %v481_v2 = vunpack.c.l.bf16 %v483_v0  ;;  %v482_v3 = vunpack.c.h.bf16 %v483_v0  ;;  %v477_v4 = vunpack.c.l.bf16 %v476_v1  ;;  %v478_v5 = vunpack.c.h.bf16 %v476_v1  ;;  %v531_v0 = vld [vmem:[%s655_s1 + $0x8] sm:$0xff]  }
  0x12   : > { %v202_v6 = vmin.f32 %v481_v2, 20.0  ;;  %v203_v7 = vmin.f32 %v482_v3, 20.0  ;;  %v200_v8 = vmin.f32 %v477_v4, 20.0  ;;  %v201_v9 = vmin.f32 %v478_v5, 20.0  ;;  %273 = vperm.xlu1 %528, %v263_v60  }
  0x14   : > { %v208_v10 = vmul.f32 1.442695, %v202_v6  ;;  %v210_v11 = vmul.f32 1.442695, %v203_v7  ;;  %v204_v12 = vmul.f32 1.442695, %v200_v8 }
  0x15   : > { %v206_v13 = vmul.f32 1.442695, %v201_v9 }
  0x16   : > { %532 = vpow2.f32 %v208_v10  ;;  %283 = vperm.xlu1 %528, %v265_v61  }
  0x17   : > { %534 = vpow2.f32 %v210_v11 }
  0x18   : > { %536 = vpow2.f32 %v204_v12 }
  0x19   : > { %538 = vpow2.f32 %v206_v13 }
  0x23   : > { %v533_v14 = vpop.eup %532 }
  0x24   : > { %v535_v15 = vpop.eup %534  ;;  %v214_v16 = vadd.f32 2.0, %v533_v14 }
  0x25   : > { %v537_v17 = vpop.eup %536  ;;  %v215_v18 = vadd.f32 2.0, %v535_v15 }
  0x26   : > { %v539_v19 = vpop.eup %538  ;;  %v218_v20 = vmul.f32 %v533_v14, %v214_v16  ;;  %v212_v21 = vadd.f32 2.0, %v537_v17 }
  0x27   : > { %v219_v22 = vmul.f32 %v535_v15, %v215_v18  ;;  %v213_v23 = vadd.f32 2.0, %v539_v19 }
  0x28   : > { %v222_v24 = vadd.f32 2.0, %v218_v20  ;;  %v216_v25 = vmul.f32 %v537_v17, %v212_v21  ;;  %v242_v37 = vmul.f32 %v481_v2, %v218_v20 }
  0x29   : > { %v223_v26 = vadd.f32 2.0, %v219_v22  ;;  %v217_v27 = vmul.f32 %v539_v19, %v213_v23  ;;  %v243_v40 = vmul.f32 %v482_v3, %v219_v22 }
  0x2a   : > { %540 = vrcp.f32 %v222_v24  ;;  %v220_v28 = vadd.f32 2.0, %v216_v25  ;;  %v240_v44 = vmul.f32 %v477_v4, %v216_v25 }
  0x2b   : > { %542 = vrcp.f32 %v223_v26  ;;  %v221_v29 = vadd.f32 2.0, %v217_v27  ;;  %v241_v47 = vmul.f32 %v478_v5, %v217_v27 }
  0x2c   : > { %544 = vrcp.f32 %v220_v28 }
  0x2d   : > { %546 = vrcp.f32 %v221_v29 }
  0x37   : > { %v541_v30 = vpop.eup %540 }
  0x38   : > { %v543_v31 = vpop.eup %542  ;;  %v230_v32 = vmul.f32 %v541_v30, %v222_v24 }
  0x39   : > { %v545_v33 = vpop.eup %544  ;;  %v231_v34 = vmul.f32 %v543_v31, %v223_v26 }
  0x3a   : > { %v547_v35 = vpop.eup %546  ;;  %v234_v36 = vsub.f32 2.0, %v230_v32  ;;  %v228_v38 = vmul.f32 %v545_v33, %v220_v28 }
  0x3b   : > { %v235_v39 = vsub.f32 2.0, %v231_v34  ;;  %v229_v41 = vmul.f32 %v547_v35, %v221_v29 }
  0x3c   : > { %v238_v42 = vmul.f32 %v541_v30, %v234_v36  ;;  %v232_v43 = vsub.f32 2.0, %v228_v38 }
  0x3d   : > { %v239_v45 = vmul.f32 %v543_v31, %v235_v39  ;;  %v233_v46 = vsub.f32 2.0, %v229_v41 }
  0x3e   : > { %v246_v48 = vmul.f32 %v242_v37, %v238_v42  ;;  %v236_v49 = vmul.f32 %v545_v33, %v232_v43 }
  0x3f   : > { %v247_v50 = vmul.f32 %v243_v40, %v239_v45  ;;  %v237_v51 = vmul.f32 %v547_v35, %v233_v46 }
  0x40   : > { %v244_v52 = vmul.f32 %v240_v44, %v236_v49 }
  0x41   : > { %v249_v53 = vpack.c.bf16 %v247_v50, %v246_v48  ;;  %v245_v54 = vmul.f32 %v241_v47, %v237_v51 }
  0x43   : > { %254 = vrot.lane.b32.xlu0 %v249_v53, %s572_s20  ;;  %v248_v55 = vpack.c.bf16 %v245_v54, %v244_v52 }
  0x47   : > { %252 = vrot.lane.b32.xlu0 %v248_v55, %s572_s20 }
  0x4b   : > { %278 = vperm.xlu0 %529, %v264_v59  }
  0x89   : > { %v269_v1 = vpop.permute.xlu1 %268 }
  0x8d   : > { %v274_v2 = vpop.permute.xlu1 %273 }
  0x91   : > { %v284_v9 = vpop.permute.xlu1 %283 }
  0xb5   : > { %v255_v62 = vpop.permute.xlu0 %254 }
  0xb6   : > { %490 = vmatprep.subr.bf16.mxu0 %v255_v62 }
  0xb7   : > { %491 = vmatpush3.bf16.msra.mxu0 %v255_v62 }
  0xb9   : > { %v253_v63 = vpop.permute.xlu0 %252 }
  0xba   : > { %492 = vmatprep.subr.bf16.mxu0 %v253_v63 }
  0xbb   : > { %493 = vmatpush3.bf16.msra.mxu0 %v253_v63 }
  0xbc   : > { %494 = vmatprep.subr.bf16.mxu0 %v249_v53 }
  0xbf   : > { %495 = vmatpush3.bf16.msra.mxu0 %v249_v53 }
  0xc0   : > { %496 = vmatprep.subr.bf16.mxu0 %v248_v55 }
  0xc3   : > { %497 = vmatpush3.bf16.msra.mxu0 %v248_v55 }
  0xc6   : > { %499 = vmatmul.mubr.msk.bf16.vlgmr.msra.gmra.mxu0 %vm296_vm0, %v531_v0  ;;  %v279_v3 = vpop.permute.xlu0 %278 }
 0x186   : > { %v500_v4 = vpop.f32.mrf.mxu0 }
 0x187   : > { %v346_v5 = vadd.f32 %v500_v4, %v279_v3 }
 0x188   : > { %v337_v6 = vpop.f32.mrf.mxu0 }
 0x189   : > { %v473_v7 = vpack.c.bf16 %v346_v5, %v346_v5  ;;  %v338_v8 = vadd.f32 %v337_v6, %v269_v1 }
 0x18a   : > { %v501_v10 = vpop.f32.mrf.mxu0 }
 0x18b   : > { %371 = vst.msk [vmem:[%s190_s8 + $0x8] sm:$0xf] %vm368_vm1, %v473_v7  ;;  %v471_v11 = vpack.c.bf16 %v338_v8, %v338_v8  ;;  %v349_v12 = vadd.f32 %v501_v10, %v284_v9 }
 0x18c   : > { %v340_v13 = vpop.f32.mrf.mxu0 }
 0x18d   : > { %369 = vst.msk [vmem:[%s190_s8] sm:$0xf] %vm368_vm1, %v471_v11  ;;  %v474_v14 = vpack.c.bf16 %v349_v12, %v349_v12  ;;  %v341_v15 = vadd.f32 %v340_v13, %v274_v2 }
 0x18f   : > { %372 = vst.msk [vmem:[%s190_s8 + $0xc] sm:$0xf] %vm368_vm1, %v474_v14  ;;  %v472_v16 = vpack.c.bf16 %v341_v15, %v341_v15 }
 0x191   : > { %370 = vst.msk [vmem:[%s190_s8 + $0x4] sm:$0xf] %vm368_vm1, %v472_v16 }
 0x192 PF: > { %s13_s14 = sadd.s32 1, %s570_s14   ;;  %s658_s12 = smov %s566_s13 }
 0x193   : > { %p10_p5 = scmp.ge.s32.totalorder %s13_s14, 4   ;;  %s659_s13 = smov %s661_s15 }
 0x195   :  { %12 = sbr.rel (!%p10_p5) target bundleno = 2 (0x2), region = 62 }

// kernel: _lambda_.25
= control target key start
LH: loop header
LB: loop body
LE: loop exit
PB: predicated region body
PF: predicated region fallthrough
CT: control target
= control target key end

     0   :  { %s508_s12 = smov 0   ;;  %s510_s13 = smov 0   ;;  %s557_s0 = inlined_call_operand.vmem [shape: bf16[2,16,34], index: 0, kind: input, shape index: {}]   ;;  %s558_s1 = inlined_call_operand.vmem [shape: bf16[16,48], index: 1, kind: input, shape index: {}]   ;;  %s559_s2 = inlined_call_operand.vmem [shape: f32[16,1], index: 2, kind: input, shape index: {}]   ;;  %s560_s3 = inlined_call_operand.vmem [shape: bf16[2,16,32], index: 3, kind: output, shape index: {}]  }
   0x1   :  { %s512_s14 = smov 0  }
   0x2 LB: > { %s25_s15 = sadd.s32 1, %s477_s13  ;;  %p388_p0 = scmp.ge.s32.totalorder %s481_s14, 1  ;;  %s481_s14 = sphi %s512_s14, %s13_s14   ;;  %s477_s13 = sphi %s510_s13, %s562_s13   ;;  %s473_s12 = sphi %s508_s12, %s561_s12  }
   0x3   : > { %p27_p1 = scmp.ge.s32.totalorder %s25_s15, 2  ;;  %p151_p2 = scmp.lt.s32.totalorder %s481_s14, 3 }
   0x5   : > { %s564_s15 = smov (%p27_p1, %s25_s15), 0  ;;  %p152_p3 = pnand %p388_p0, %p151_p2 }
   0x6   : > { %p178_p4 = scmp.lt.s32.totalorder (!%p152_p3), %s473_s12, 1  ;;  %s486_s22 = smov (!%p152_p3), 126  }
   0x7   : > { %155 = sbr.rel (%p152_p3) target bundleno = 392 (0x188), region = 32  ;;  %s487_s25 = smov (!%p152_p3), 127  }
   0xc   : > { %v483_v0 = vmov 0.0   ;;  %s566_s12 = smov (!%p178_p4, %s473_s12), 1  ;;  %vm484_vm0 = vmmov 0   ;;  %v485_v2 = vmov 0   ;;  %v208_v3 = vld [vmem:[%s559_s2] sm:$0xff]  ;;  %v209_v4 = vld [vmem:[%s559_s2 + $0x8] sm:$0xff] }
   0xd   : > { %408 = vmatprep.subr.bf16.mxu0 %v483_v0  ;;  %s400_s16 = sshll.u32 %s566_s12, 3  ;;  %414 = vmatprep.mubr.msk.bf16.mxu0 %vm484_vm0, %v483_v0  ;;  %v450_v7 = vld [vmem:[%s558_s1] sm:$0xff]   ;;  %vm225_vm1 = vcmask 392192   ;;  %vm304_vm2 = vcmask 257024  }
   0xe   : > { %s182_s19 = scalar_lea.vmem %s557_s0, %s400_s16  ;;  %447 = vset.pattern.permute.xlu1 %v485_v2  ;;  %448 = vset.pattern.permute.xlu0 %v485_v2  ;;  %s190_s30 = scalar_lea.vmem %s560_s3, %s400_s16 }
   0xf   : > { %v449_v1 = vld [vmem:[%s182_s19] sm:$0xff]   ;;  %212 = vperm.xlu1 %447, %v208_v3  }
  0x10   : > { %203 = vrot.lane.b32.xlu0 %v449_v1, %s486_s22 }
  0x13   : > { %217 = vperm.xlu1 %447, %v209_v4  }
  0x14   : > { %200 = vrot.lane.b32.xlu0 %v449_v1, %s487_s25 }
  0x82   : > { %v204_v5 = vpop.permute.xlu0 %203 }
  0x83   : > { %409 = vmatpush3.bf16.msra.mxu0 %v204_v5 }
  0x84   : > { %410 = vmatprep.subr.bf16.mxu0 %v483_v0 }
  0x86   : > { %v201_v6 = vpop.permute.xlu0 %200 }
  0x87   : > { %411 = vmatpush3.bf16.msra.mxu0 %v201_v6 }
  0x88   : > { %412 = vmatprep.subr.bf16.mxu0 %v483_v0 }
  0x8a   : > { %v213_v8 = vpop.permute.xlu1 %212 }
  0x8b   : > { %413 = vmatpush3.bf16.msra.mxu0 %v449_v1 }
  0x8e   : > { %415 = vmatmul.mubr.msk.bf16.vlgmr.msra.gmra.mxu0 %vm225_vm1, %v450_v7  ;;  %v218_v13 = vpop.permute.xlu1 %217 }
 0x14e   : > { %v263_v9 = vpop.f32.mrf.mxu0 }
 0x14f   : > { %v264_v10 = vadd.f32 %v263_v9, %v213_v8 }
 0x150   : > { %v416_v11 = vpop.f32.mrf.mxu0 }
 0x151   : > { %v270_v12 = vmin.f32 %v264_v10, 20.0 }
 0x152   : > { %v266_v14 = vpop.f32.mrf.mxu0 }
 0x153   : > { %v272_v15 = vmul.f32 1.442695, %v270_v12  ;;  %v267_v16 = vadd.f32 %v266_v14, %v218_v13 }
 0x154   : > { %v417_v17 = vpop.f32.mrf.mxu0 }
 0x155   : > { %451 = vpow2.f32 %v272_v15  ;;  %v271_v18 = vmin.f32 %v267_v16, 20.0 }
 0x157   : > { %v274_v19 = vmul.f32 1.442695, %v271_v18 }
 0x159   : > { %453 = vpow2.f32 %v274_v19 }
 0x162   : > { %v452_v20 = vpop.eup %451 }
 0x163   : > { %v276_v21 = vadd.f32 2.0, %v452_v20 }
 0x165   : > { %v278_v22 = vmul.f32 %v452_v20, %v276_v21 }
 0x166   : > { %v454_v23 = vpop.eup %453 }
 0x167   : > { %v280_v24 = vadd.f32 2.0, %v278_v22  ;;  %v277_v25 = vadd.f32 2.0, %v454_v23  ;;  %v290_v33 = vmul.f32 %v278_v22, %v264_v10 }
 0x169   : > { %455 = vrcp.f32 %v280_v24  ;;  %v279_v26 = vmul.f32 %v454_v23, %v277_v25 }
 0x16b   : > { %v281_v27 = vadd.f32 2.0, %v279_v26  ;;  %v291_v39 = vmul.f32 %v279_v26, %v267_v16 }
 0x16d   : > { %457 = vrcp.f32 %v281_v27 }
 0x176   : > { %v456_v28 = vpop.eup %455 }
 0x177   : > { %v284_v29 = vmul.f32 %v456_v28, %v280_v24 }
 0x179   : > { %v286_v30 = vsub.f32 2.0, %v284_v29 }
 0x17a   : > { %v458_v31 = vpop.eup %457 }
 0x17b   : > { %v288_v32 = vmul.f32 %v456_v28, %v286_v30  ;;  %v285_v34 = vmul.f32 %v458_v31, %v281_v27 }
 0x17d   : > { %v292_v35 = vmul.f32 %v290_v33, %v288_v32  ;;  %v287_v36 = vsub.f32 2.0, %v285_v34 }
 0x17f   : > { %v294_v37 = vmul.f32 0.5, %v292_v35  ;;  %v289_v38 = vmul.f32 %v458_v31, %v287_v36 }
 0x181   : > { %v402_v40 = vpack.c.bf16 %v294_v37, %v294_v37  ;;  %v293_v41 = vmul.f32 %v291_v39, %v289_v38 }
 0x183   : > { %305 = vst.msk [vmem:[%s190_s30] sm:$0xf] %vm304_vm2, %v402_v40  ;;  %v295_v42 = vmul.f32 0.5, %v293_v41 }
 0x185   : > { %v403_v43 = vpack.c.bf16 %v295_v42, %v295_v42 }
 0x187   : > { %306 = vst.msk [vmem:[%s190_s30 + $0x4] sm:$0xf] %vm304_vm2, %v403_v43 }
 0x188 PF: > { %s13_s14 = sadd.s32 1, %s481_s14   ;;  %s561_s12 = smov %s477_s13 }
 0x189   : > { %p10_p5 = scmp.ge.s32.totalorder %s13_s14, 4   ;;  %s562_s13 = smov %s564_s15 }
 0x18b   :  { %12 = sbr.rel (!%p10_p5) target bundleno = 2 (0x2), region = 62 }

// kernel: _lambda_.24
= control target key start
LH: loop header
LB: loop body
LE: loop exit
PB: predicated region body
PF: predicated region fallthrough
CT: control target
= control target key end

     0   :  { %s506_s12 = smov 0   ;;  %s508_s13 = smov 0   ;;  %s555_s0 = inlined_call_operand.vmem [shape: bf16[2,16,34], index: 0, kind: input, shape index: {}]   ;;  %s556_s1 = inlined_call_operand.vmem [shape: bf16[16,48], index: 1, kind: input, shape index: {}]   ;;  %s557_s2 = inlined_call_operand.vmem [shape: f32[16,1], index: 2, kind: input, shape index: {}]   ;;  %s558_s3 = inlined_call_operand.vmem [shape: bf16[2,16,32], index: 3, kind: output, shape index: {}]  }
   0x1   :  { %s510_s14 = smov 0  }
   0x2 LB: > { %s25_s15 = sadd.s32 1, %s475_s13  ;;  %p386_p0 = scmp.ge.s32.totalorder %s479_s14, 1  ;;  %s479_s14 = sphi %s510_s14, %s13_s14   ;;  %s475_s13 = sphi %s508_s13, %s560_s13   ;;  %s471_s12 = sphi %s506_s12, %s559_s12  }
   0x3   : > { %p27_p1 = scmp.ge.s32.totalorder %s25_s15, 2  ;;  %p151_p2 = scmp.lt.s32.totalorder %s479_s14, 3 }
   0x5   : > { %s562_s15 = smov (%p27_p1, %s25_s15), 0  ;;  %p152_p3 = pnand %p386_p0, %p151_p2 }
   0x6   : > { %p178_p4 = scmp.lt.s32.totalorder (!%p152_p3), %s471_s12, 1  ;;  %s484_s22 = smov (!%p152_p3), 126  }
   0x7   : > { %155 = sbr.rel (%p152_p3) target bundleno = 390 (0x186), region = 32  ;;  %s485_s25 = smov (!%p152_p3), 127  }
   0xc   : > { %v481_v0 = vmov 0.0   ;;  %s564_s12 = smov (!%p178_p4, %s471_s12), 1  ;;  %vm482_vm0 = vmmov 0   ;;  %v483_v2 = vmov 0   ;;  %v208_v3 = vld [vmem:[%s557_s2] sm:$0xff]  ;;  %v209_v4 = vld [vmem:[%s557_s2 + $0x8] sm:$0xff] }
   0xd   : > { %406 = vmatprep.subr.bf16.mxu0 %v481_v0  ;;  %s398_s16 = sshll.u32 %s564_s12, 3  ;;  %412 = vmatprep.mubr.msk.bf16.mxu0 %vm482_vm0, %v481_v0  ;;  %v448_v7 = vld [vmem:[%s556_s1] sm:$0xff]   ;;  %vm225_vm1 = vcmask 392192   ;;  %vm302_vm2 = vcmask 257024  }
   0xe   : > { %s182_s19 = scalar_lea.vmem %s555_s0, %s398_s16  ;;  %445 = vset.pattern.permute.xlu1 %v483_v2  ;;  %446 = vset.pattern.permute.xlu0 %v483_v2  ;;  %s190_s30 = scalar_lea.vmem %s558_s3, %s398_s16 }
   0xf   : > { %v447_v1 = vld [vmem:[%s182_s19] sm:$0xff]   ;;  %212 = vperm.xlu1 %445, %v208_v3  }
  0x10   : > { %203 = vrot.lane.b32.xlu0 %v447_v1, %s484_s22 }
  0x13   : > { %217 = vperm.xlu1 %445, %v209_v4  }
  0x14   : > { %200 = vrot.lane.b32.xlu0 %v447_v1, %s485_s25 }
  0x82   : > { %v204_v5 = vpop.permute.xlu0 %203 }
  0x83   : > { %407 = vmatpush3.bf16.msra.mxu0 %v204_v5 }
  0x84   : > { %408 = vmatprep.subr.bf16.mxu0 %v481_v0 }
  0x86   : > { %v201_v6 = vpop.permute.xlu0 %200 }
  0x87   : > { %409 = vmatpush3.bf16.msra.mxu0 %v201_v6 }
  0x88   : > { %410 = vmatprep.subr.bf16.mxu0 %v481_v0 }
  0x8a   : > { %v213_v8 = vpop.permute.xlu1 %212 }
  0x8b   : > { %411 = vmatpush3.bf16.msra.mxu0 %v447_v1 }
  0x8e   : > { %413 = vmatmul.mubr.msk.bf16.vlgmr.msra.gmra.mxu0 %vm225_vm1, %v448_v7  ;;  %v218_v13 = vpop.permute.xlu1 %217 }
 0x14e   : > { %v263_v9 = vpop.f32.mrf.mxu0 }
 0x14f   : > { %v264_v10 = vadd.f32 %v263_v9, %v213_v8 }
 0x150   : > { %v414_v11 = vpop.f32.mrf.mxu0 }
 0x151   : > { %v270_v12 = vmin.f32 %v264_v10, 20.0 }
 0x152   : > { %v266_v14 = vpop.f32.mrf.mxu0 }
 0x153   : > { %v272_v15 = vmul.f32 1.442695, %v270_v12  ;;  %v267_v16 = vadd.f32 %v266_v14, %v218_v13 }
 0x154   : > { %v415_v17 = vpop.f32.mrf.mxu0 }
 0x155   : > { %449 = vpow2.f32 %v272_v15  ;;  %v271_v18 = vmin.f32 %v267_v16, 20.0 }
 0x157   : > { %v274_v19 = vmul.f32 1.442695, %v271_v18 }
 0x159   : > { %451 = vpow2.f32 %v274_v19 }
 0x162   : > { %v450_v20 = vpop.eup %449 }
 0x163   : > { %v276_v21 = vadd.f32 2.0, %v450_v20 }
 0x165   : > { %v278_v22 = vmul.f32 %v450_v20, %v276_v21 }
 0x166   : > { %v452_v23 = vpop.eup %451 }
 0x167   : > { %v280_v24 = vadd.f32 2.0, %v278_v22  ;;  %v277_v25 = vadd.f32 2.0, %v452_v23  ;;  %v290_v33 = vmul.f32 %v278_v22, %v264_v10 }
 0x169   : > { %453 = vrcp.f32 %v280_v24  ;;  %v279_v26 = vmul.f32 %v452_v23, %v277_v25 }
 0x16b   : > { %v281_v27 = vadd.f32 2.0, %v279_v26  ;;  %v291_v39 = vmul.f32 %v279_v26, %v267_v16 }
 0x16d   : > { %455 = vrcp.f32 %v281_v27 }
 0x176   : > { %v454_v28 = vpop.eup %453 }
 0x177   : > { %v284_v29 = vmul.f32 %v454_v28, %v280_v24 }
 0x179   : > { %v286_v30 = vsub.f32 2.0, %v284_v29 }
 0x17a   : > { %v456_v31 = vpop.eup %455 }
 0x17b   : > { %v288_v32 = vmul.f32 %v454_v28, %v286_v30  ;;  %v285_v34 = vmul.f32 %v456_v31, %v281_v27 }
 0x17d   : > { %v292_v35 = vmul.f32 %v290_v33, %v288_v32  ;;  %v287_v36 = vsub.f32 2.0, %v285_v34 }
 0x17f   : > { %v400_v37 = vpack.c.bf16 %v292_v35, %v292_v35  ;;  %v289_v38 = vmul.f32 %v456_v31, %v287_v36 }
 0x181   : > { %303 = vst.msk [vmem:[%s190_s30] sm:$0xf] %vm302_vm2, %v400_v37  ;;  %v293_v40 = vmul.f32 %v291_v39, %v289_v38 }
 0x183   : > { %v401_v41 = vpack.c.bf16 %v293_v40, %v293_v40 }
 0x185   : > { %304 = vst.msk [vmem:[%s190_s30 + $0x4] sm:$0xf] %vm302_vm2, %v401_v41 }
 0x186 PF: > { %s13_s14 = sadd.s32 1, %s479_s14   ;;  %s559_s12 = smov %s475_s13 }
 0x187   : > { %p10_p5 = scmp.ge.s32.totalorder %s13_s14, 4   ;;  %s560_s13 = smov %s562_s15 }
 0x189   :  { %12 = sbr.rel (!%p10_p5) target bundleno = 2 (0x2), region = 62 }

// kernel: _lambda_.26
= control target key start
LH: loop header
LB: loop body
LE: loop exit
PB: predicated region body
PF: predicated region fallthrough
CT: control target
= control target key end

     0   :  { %s506_s12 = smov 0   ;;  %s508_s13 = smov 0   ;;  %s555_s0 = inlined_call_operand.vmem [shape: bf16[2,16,38], index: 0, kind: input, shape index: {}]   ;;  %s556_s1 = inlined_call_operand.vmem [shape: bf16[16,48], index: 1, kind: input, shape index: {}]   ;;  %s557_s2 = inlined_call_operand.vmem [shape: f32[16,1], index: 2, kind: input, shape index: {}]   ;;  %s558_s3 = inlined_call_operand.vmem [shape: bf16[2,16,32], index: 3, kind: output, shape index: {}]  }
   0x1   :  { %s510_s14 = smov 0  }
   0x2 LB: > { %s25_s15 = sadd.s32 1, %s475_s13  ;;  %p386_p0 = scmp.ge.s32.totalorder %s479_s14, 1  ;;  %s479_s14 = sphi %s510_s14, %s13_s14   ;;  %s475_s13 = sphi %s508_s13, %s560_s13   ;;  %s471_s12 = sphi %s506_s12, %s559_s12  }
   0x3   : > { %p27_p1 = scmp.ge.s32.totalorder %s25_s15, 2  ;;  %p151_p2 = scmp.lt.s32.totalorder %s479_s14, 3 }
   0x5   : > { %s562_s15 = smov (%p27_p1, %s25_s15), 0  ;;  %p152_p3 = pnand %p386_p0, %p151_p2 }
   0x6   : > { %p178_p4 = scmp.lt.s32.totalorder (!%p152_p3), %s471_s12, 1  ;;  %s484_s22 = smov (!%p152_p3), 122  }
   0x7   : > { %155 = sbr.rel (%p152_p3) target bundleno = 390 (0x186), region = 32  ;;  %s485_s25 = smov (!%p152_p3), 125  }
   0xc   : > { %v481_v0 = vmov 0.0   ;;  %s564_s12 = smov (!%p178_p4, %s471_s12), 1  ;;  %vm482_vm0 = vmmov 0   ;;  %v483_v2 = vmov 0   ;;  %v208_v3 = vld [vmem:[%s557_s2] sm:$0xff]  ;;  %v209_v4 = vld [vmem:[%s557_s2 + $0x8] sm:$0xff] }
   0xd   : > { %406 = vmatprep.subr.bf16.mxu0 %v481_v0  ;;  %s398_s16 = sshll.u32 %s564_s12, 3  ;;  %412 = vmatprep.mubr.msk.bf16.mxu0 %vm482_vm0, %v481_v0  ;;  %v448_v7 = vld [vmem:[%s556_s1] sm:$0xff]   ;;  %vm225_vm1 = vcmask 392192   ;;  %vm302_vm2 = vcmask 257024  }
   0xe   : > { %s182_s19 = scalar_lea.vmem %s555_s0, %s398_s16  ;;  %445 = vset.pattern.permute.xlu1 %v483_v2  ;;  %446 = vset.pattern.permute.xlu0 %v483_v2  ;;  %s190_s30 = scalar_lea.vmem %s558_s3, %s398_s16 }
   0xf   : > { %v447_v1 = vld [vmem:[%s182_s19] sm:$0xff]   ;;  %212 = vperm.xlu1 %445, %v208_v3  }
  0x10   : > { %203 = vrot.lane.b32.xlu0 %v447_v1, %s484_s22 }
  0x13   : > { %217 = vperm.xlu1 %445, %v209_v4  }
  0x14   : > { %200 = vrot.lane.b32.xlu0 %v447_v1, %s485_s25 }
  0x82   : > { %v204_v5 = vpop.permute.xlu0 %203 }
  0x83   : > { %407 = vmatpush3.bf16.msra.mxu0 %v204_v5 }
  0x84   : > { %408 = vmatprep.subr.bf16.mxu0 %v481_v0 }
  0x86   : > { %v201_v6 = vpop.permute.xlu0 %200 }
  0x87   : > { %409 = vmatpush3.bf16.msra.mxu0 %v201_v6 }
  0x88   : > { %410 = vmatprep.subr.bf16.mxu0 %v481_v0 }
  0x8a   : > { %v213_v8 = vpop.permute.xlu1 %212 }
  0x8b   : > { %411 = vmatpush3.bf16.msra.mxu0 %v447_v1 }
  0x8e   : > { %413 = vmatmul.mubr.msk.bf16.vlgmr.msra.gmra.mxu0 %vm225_vm1, %v448_v7  ;;  %v218_v13 = vpop.permute.xlu1 %217 }
 0x14e   : > { %v263_v9 = vpop.f32.mrf.mxu0 }
 0x14f   : > { %v264_v10 = vadd.f32 %v263_v9, %v213_v8 }
 0x150   : > { %v414_v11 = vpop.f32.mrf.mxu0 }
 0x151   : > { %v270_v12 = vmin.f32 %v264_v10, 20.0 }
 0x152   : > { %v266_v14 = vpop.f32.mrf.mxu0 }
 0x153   : > { %v272_v15 = vmul.f32 1.442695, %v270_v12  ;;  %v267_v16 = vadd.f32 %v266_v14, %v218_v13 }
 0x154   : > { %v415_v17 = vpop.f32.mrf.mxu0 }
 0x155   : > { %449 = vpow2.f32 %v272_v15  ;;  %v271_v18 = vmin.f32 %v267_v16, 20.0 }
 0x157   : > { %v274_v19 = vmul.f32 1.442695, %v271_v18 }
 0x159   : > { %451 = vpow2.f32 %v274_v19 }
 0x162   : > { %v450_v20 = vpop.eup %449 }
 0x163   : > { %v276_v21 = vadd.f32 2.0, %v450_v20 }
 0x165   : > { %v278_v22 = vmul.f32 %v450_v20, %v276_v21 }
 0x166   : > { %v452_v23 = vpop.eup %451 }
 0x167   : > { %v280_v24 = vadd.f32 2.0, %v278_v22  ;;  %v277_v25 = vadd.f32 2.0, %v452_v23  ;;  %v290_v33 = vmul.f32 %v278_v22, %v264_v10 }
 0x169   : > { %453 = vrcp.f32 %v280_v24  ;;  %v279_v26 = vmul.f32 %v452_v23, %v277_v25 }
 0x16b   : > { %v281_v27 = vadd.f32 2.0, %v279_v26  ;;  %v291_v39 = vmul.f32 %v279_v26, %v267_v16 }
 0x16d   : > { %455 = vrcp.f32 %v281_v27 }
 0x176   : > { %v454_v28 = vpop.eup %453 }
 0x177   : > { %v284_v29 = vmul.f32 %v454_v28, %v280_v24 }
 0x179   : > { %v286_v30 = vsub.f32 2.0, %v284_v29 }
 0x17a   : > { %v456_v31 = vpop.eup %455 }
 0x17b   : > { %v288_v32 = vmul.f32 %v454_v28, %v286_v30  ;;  %v285_v34 = vmul.f32 %v456_v31, %v281_v27 }
 0x17d   : > { %v292_v35 = vmul.f32 %v290_v33, %v288_v32  ;;  %v287_v36 = vsub.f32 2.0, %v285_v34 }
 0x17f   : > { %v400_v37 = vpack.c.bf16 %v292_v35, %v292_v35  ;;  %v289_v38 = vmul.f32 %v456_v31, %v287_v36 }
 0x181   : > { %303 = vst.msk [vmem:[%s190_s30] sm:$0xf] %vm302_vm2, %v400_v37  ;;  %v293_v40 = vmul.f32 %v291_v39, %v289_v38 }
 0x183   : > { %v401_v41 = vpack.c.bf16 %v293_v40, %v293_v40 }
 0x185   : > { %304 = vst.msk [vmem:[%s190_s30 + $0x4] sm:$0xf] %vm302_vm2, %v401_v41 }
 0x186 PF: > { %s13_s14 = sadd.s32 1, %s479_s14   ;;  %s559_s12 = smov %s475_s13 }
 0x187   : > { %p10_p5 = scmp.ge.s32.totalorder %s13_s14, 4   ;;  %s560_s13 = smov %s562_s15 }
 0x189   :  { %12 = sbr.rel (!%p10_p5) target bundleno = 2 (0x2), region = 62 }

// kernel: _lambda_.29
= control target key start
LH: loop header
LB: loop body
LE: loop exit
PB: predicated region body
PF: predicated region fallthrough
CT: control target
= control target key end

     0   :  { %s524_s12 = smov 0   ;;  %s526_s13 = smov 0   ;;  %s573_s0 = inlined_call_operand.vmem [shape: bf16[2,16,36], index: 0, kind: input, shape index: {}]   ;;  %s574_s1 = inlined_call_operand.vmem [shape: bf16[16,80], index: 1, kind: input, shape index: {}]   ;;  %s575_s2 = inlined_call_operand.vmem [shape: f32[16,1], index: 2, kind: input, shape index: {}]   ;;  %s576_s3 = inlined_call_operand.vmem [shape: bf16[2,16,32], index: 3, kind: output, shape index: {}]  }
   0x1   :  { %s528_s14 = smov 0  }
   0x2 LB: > { %s25_s15 = sadd.s32 1, %s491_s13  ;;  %p394_p0 = scmp.ge.s32.totalorder %s495_s14, 1  ;;  %s495_s14 = sphi %s528_s14, %s13_s14   ;;  %s491_s13 = sphi %s526_s13, %s578_s13   ;;  %s487_s12 = sphi %s524_s12, %s577_s12  }
   0x3   : > { %p27_p1 = scmp.ge.s32.totalorder %s25_s15, 2  ;;  %p151_p2 = scmp.lt.s32.totalorder %s495_s14, 3 }
   0x5   : > { %s580_s15 = smov (%p27_p1, %s25_s15), 0  ;;  %p152_p3 = pnand %p394_p0, %p151_p2 }
   0x6   : > { %p178_p4 = scmp.lt.s32.totalorder (!%p152_p3), %s487_s12, 1  ;;  %s498_s20 = smov (!%p152_p3), 124  }
   0x7   : > { %155 = sbr.rel (%p152_p3) target bundleno = 400 (0x190), region = 32  ;;  %s499_s21 = smov (!%p152_p3), 126  }
   0x8   : > { %s500_s22 = smov (!%p152_p3), 125   ;;  %s501_s23 = smov (!%p152_p3), 127  }
   0xc   : > { %v497_v0 = vmov 0.0   ;;  %s582_s12 = smov (!%p178_p4, %s487_s12), 1  ;;  %vm502_vm0 = vmmov 0   ;;  %v214_v2 = vld [vmem:[%s575_s2] sm:$0xff]  ;;  %v215_v3 = vld [vmem:[%s575_s2 + $0x8] sm:$0xff]  ;;  %v503_v4 = vmov 0  }
   0xd   : > { %416 = vmatprep.subr.bf16.mxu0 %v497_v0  ;;  %s406_s16 = sshll.u32 %s582_s12, 3  ;;  %426 = vmatprep.mubr.msk.bf16.mxu0 %vm502_vm0, %v497_v0  ;;  %v464_v9 = vld [vmem:[%s574_s1] sm:$0xff]   ;;  %vm231_vm1 = vcmask 654336   ;;  %vm310_vm2 = vcmask 257024  }
   0xe   : > { %s182_s19 = scalar_lea.vmem %s573_s0, %s406_s16  ;;  %461 = vset.pattern.permute.xlu0 %v503_v4  ;;  %462 = vset.pattern.permute.xlu1 %v503_v4  ;;  %s190_s5 = scalar_lea.vmem %s576_s3, %s406_s16 }
   0xf   : > { %v463_v1 = vld [vmem:[%s182_s19] sm:$0xff]  }
  0x10   : > { %209 = vrot.lane.b32.xlu0 %v463_v1, %s498_s20  ;;  %203 = vrot.lane.b32.xlu1 %v463_v1, %s499_s21 }
  0x14   : > { %206 = vrot.lane.b32.xlu0 %v463_v1, %s500_s22  ;;  %200 = vrot.lane.b32.xlu1 %v463_v1, %s501_s23 }
  0x18   : > { %218 = vperm.xlu0 %461, %v214_v2   ;;  %223 = vperm.xlu1 %462, %v215_v3  }
  0x82   : > { %v210_v5 = vpop.permute.xlu0 %209  ;;  %v204_v7 = vpop.permute.xlu1 %203 }
  0x83   : > { %417 = vmatpush3.bf16.msra.mxu0 %v210_v5 }
  0x84   : > { %418 = vmatprep.subr.bf16.mxu0 %v497_v0 }
  0x86   : > { %v207_v6 = vpop.permute.xlu0 %206  ;;  %v201_v8 = vpop.permute.xlu1 %200 }
  0x87   : > { %419 = vmatpush3.bf16.msra.mxu0 %v207_v6 }
  0x88   : > { %420 = vmatprep.subr.bf16.mxu0 %v497_v0 }
  0x8b   : > { %421 = vmatpush3.bf16.msra.mxu0 %v204_v7 }
  0x8c   : > { %422 = vmatprep.subr.bf16.mxu0 %v497_v0 }
  0x8f   : > { %423 = vmatpush3.bf16.msra.mxu0 %v201_v8 }
  0x90   : > { %424 = vmatprep.subr.bf16.mxu0 %v497_v0 }
  0x93   : > { %425 = vmatpush3.bf16.msra.mxu0 %v463_v1  ;;  %v219_v10 = vpop.permute.xlu0 %218  ;;  %v224_v14 = vpop.permute.xlu1 %223 }
  0x96   : > { %427 = vmatmul.mubr.msk.bf16.vlgmr.msra.gmra.mxu0 %vm231_vm1, %v464_v9 }
 0x156   : > { %v269_v11 = vpop.f32.mrf.mxu0 }
 0x157   : > { %v270_v12 = vadd.f32 %v269_v11, %v219_v10 }
 0x158   : > { %v428_v13 = vpop.f32.mrf.mxu0 }
 0x159   : > { %v276_v15 = vmin.f32 %v270_v12, 20.0 }
 0x15a   : > { %v272_v16 = vpop.f32.mrf.mxu0 }
 0x15b   : > { %v278_v17 = vmul.f32 1.442695, %v276_v15  ;;  %v273_v18 = vadd.f32 %v272_v16, %v224_v14 }
 0x15c   : > { %v429_v19 = vpop.f32.mrf.mxu0 }
 0x15d   : > { %465 = vpow2.f32 %v278_v17  ;;  %v277_v20 = vmin.f32 %v273_v18, 20.0 }
 0x15f   : > { %v280_v21 = vmul.f32 1.442695, %v277_v20 }
 0x161   : > { %467 = vpow2.f32 %v280_v21 }
 0x16a   : > { %v466_v22 = vpop.eup %465 }
 0x16b   : > { %v282_v23 = vadd.f32 2.0, %v466_v22 }
 0x16d   : > { %v284_v24 = vmul.f32 %v466_v22, %v282_v23 }
 0x16e   : > { %v468_v25 = vpop.eup %467 }
 0x16f   : > { %v286_v26 = vadd.f32 2.0, %v284_v24  ;;  %v283_v27 = vadd.f32 2.0, %v468_v25  ;;  %v296_v35 = vmul.f32 %v284_v24, %v270_v12 }
 0x171   : > { %469 = vrcp.f32 %v286_v26  ;;  %v285_v28 = vmul.f32 %v468_v25, %v283_v27 }
 0x173   : > { %v287_v29 = vadd.f32 2.0, %v285_v28  ;;  %v297_v41 = vmul.f32 %v285_v28, %v273_v18 }
 0x175   : > { %471 = vrcp.f32 %v287_v29 }
 0x17e   : > { %v470_v30 = vpop.eup %469 }
 0x17f   : > { %v290_v31 = vmul.f32 %v470_v30, %v286_v26 }
 0x181   : > { %v292_v32 = vsub.f32 2.0, %v290_v31 }
 0x182   : > { %v472_v33 = vpop.eup %471 }
 0x183   : > { %v294_v34 = vmul.f32 %v470_v30, %v292_v32  ;;  %v291_v36 = vmul.f32 %v472_v33, %v287_v29 }
 0x185   : > { %v298_v37 = vmul.f32 %v296_v35, %v294_v34  ;;  %v293_v38 = vsub.f32 2.0, %v291_v36 }
 0x187   : > { %v300_v39 = vmul.f32 0.5, %v298_v37  ;;  %v295_v40 = vmul.f32 %v472_v33, %v293_v38 }
 0x189   : > { %v408_v42 = vpack.c.bf16 %v300_v39, %v300_v39  ;;  %v299_v43 = vmul.f32 %v297_v41, %v295_v40 }
 0x18b   : > { %311 = vst.msk [vmem:[%s190_s5] sm:$0xf] %vm310_vm2, %v408_v42  ;;  %v301_v44 = vmul.f32 0.5, %v299_v43 }
 0x18d   : > { %v409_v45 = vpack.c.bf16 %v301_v44, %v301_v44 }
 0x18f   : > { %312 = vst.msk [vmem:[%s190_s5 + $0x4] sm:$0xf] %vm310_vm2, %v409_v45 }
 0x190 PF: > { %s13_s14 = sadd.s32 1, %s495_s14   ;;  %s577_s12 = smov %s491_s13 }
 0x191   : > { %p10_p5 = scmp.ge.s32.totalorder %s13_s14, 4   ;;  %s578_s13 = smov %s580_s15 }
 0x193   :  { %12 = sbr.rel (!%p10_p5) target bundleno = 2 (0x2), region = 62 }

// kernel: _lambda_.28
= control target key start
LH: loop header
LB: loop body
LE: loop exit
PB: predicated region body
PF: predicated region fallthrough
CT: control target
= control target key end

     0   :  { %s554_s12 = smov 0   ;;  %s556_s13 = smov 0   ;;  %s609_s0 = inlined_call_operand.vmem [shape: bf16[2,16,36], index: 0, kind: input, shape index: {}]   ;;  %s610_s1 = inlined_call_operand.vmem [shape: bf16[16,80], index: 1, kind: input, shape index: {}]   ;;  %s611_s2 = inlined_call_operand.vmem [shape: f32[16,1], index: 2, kind: input, shape index: {}]   ;;  %s612_s3 = inlined_call_operand.vmem [shape: bf16[2,16,32], index: 3, kind: output, shape index: {}]  }
   0x1   :  { %s558_s14 = smov 0  }
   0x2 LB: > { %s25_s15 = sadd.s32 1, %s521_s13  ;;  %p414_p0 = scmp.ge.s32.totalorder %s525_s14, 1  ;;  %s525_s14 = sphi %s558_s14, %s13_s14   ;;  %s521_s13 = sphi %s556_s13, %s614_s13   ;;  %s517_s12 = sphi %s554_s12, %s613_s12  }
   0x3   : > { %p27_p1 = scmp.ge.s32.totalorder %s25_s15, 2  ;;  %p151_p2 = scmp.lt.s32.totalorder %s525_s14, 3 }
   0x5   : > { %s616_s15 = smov (%p27_p1, %s25_s15), 0  ;;  %p152_p3 = pnand %p414_p0, %p151_p2 }
   0x6   : > { %p178_p4 = scmp.lt.s32.totalorder (!%p152_p3), %s517_s12, 1  ;;  %s528_s20 = smov (!%p152_p3), 124  }
   0x7   : > { %155 = sbr.rel (%p152_p3) target bundleno = 449 (0x1c1), region = 32  ;;  %s529_s21 = smov (!%p152_p3), 126  }
   0x8   : > { %s530_s22 = smov (!%p152_p3), 125   ;;  %s531_s23 = smov (!%p152_p3), 127  }
   0xc   : > { %v527_v0 = vmov 0.0   ;;  %s618_s12 = smov (!%p178_p4, %s517_s12), 1  ;;  %vm532_vm0 = vmmov 0   ;;  %v236_v29 = vld [vmem:[%s611_s2] sm:$0xff]  ;;  %v237_v30 = vld [vmem:[%s611_s2 + $0x8] sm:$0xff]  ;;  %v533_v31 = vmov 0  }
   0xd   : > { %439 = vmatprep.subr.bf16.mxu0 %v527_v0  ;;  %s425_s16 = sshll.u32 %s618_s12, 3  ;;  %449 = vmatprep.mubr.msk.bf16.mxu0 %vm532_vm0, %v527_v0  ;;  %v486_v36 = vld [vmem:[%s610_s1] sm:$0xff]   ;;  %vm253_vm1 = vcmask 654336   ;;  %vm330_vm2 = vcmask 257024  }
   0xe   : > { %s182_s19 = scalar_lea.vmem %s609_s0, %s425_s16  ;;  %484 = vset.pattern.permute.xlu0 %v533_v31  ;;  %485 = vset.pattern.permute.xlu1 %v533_v31  ;;  %s190_s5 = scalar_lea.vmem %s612_s3, %s425_s16 }
   0xf   : > { %v430_v1 = vld [vmem:[%s182_s19] sm:$0xff]  }
  0x10   : > { %v431_v2 = vunpack.c.l.bf16 %v430_v1  ;;  %v432_v3 = vunpack.c.h.bf16 %v430_v1 }
  0x12   : > { %v196_v4 = vmin.f32 %v431_v2, 20.0  ;;  %v197_v5 = vmin.f32 %v432_v3, 20.0 }
  0x14   : > { %v198_v6 = vmul.f32 1.442695, %v196_v4  ;;  %v200_v7 = vmul.f32 1.442695, %v197_v5 }
  0x16   : > { %487 = vpow2.f32 %v198_v6 }
  0x17   : > { %489 = vpow2.f32 %v200_v7 }
  0x23   : > { %v488_v8 = vpop.eup %487 }
  0x24   : > { %v490_v9 = vpop.eup %489  ;;  %v202_v10 = vadd.f32 2.0, %v488_v8 }
  0x25   : > { %v203_v11 = vadd.f32 2.0, %v490_v9 }
  0x26   : > { %v204_v12 = vmul.f32 %v488_v8, %v202_v10 }
  0x27   : > { %v205_v13 = vmul.f32 %v490_v9, %v203_v11 }
  0x28   : > { %v206_v14 = vadd.f32 2.0, %v204_v12  ;;  %v216_v21 = vmul.f32 %v431_v2, %v204_v12 }
  0x29   : > { %v207_v15 = vadd.f32 2.0, %v205_v13  ;;  %v217_v23 = vmul.f32 %v432_v3, %v205_v13 }
  0x2a   : > { %491 = vrcp.f32 %v206_v14 }
  0x2b   : > { %493 = vrcp.f32 %v207_v15 }
  0x37   : > { %v492_v16 = vpop.eup %491 }
  0x38   : > { %v494_v17 = vpop.eup %493  ;;  %v210_v18 = vmul.f32 %v492_v16, %v206_v14 }
  0x39   : > { %v211_v19 = vmul.f32 %v494_v17, %v207_v15 }
  0x3a   : > { %v212_v20 = vsub.f32 2.0, %v210_v18 }
  0x3b   : > { %v213_v22 = vsub.f32 2.0, %v211_v19 }
  0x3c   : > { %v214_v24 = vmul.f32 %v492_v16, %v212_v20 }
  0x3d   : > { %v215_v25 = vmul.f32 %v494_v17, %v213_v22 }
  0x3e   : > { %v218_v26 = vmul.f32 %v216_v21, %v214_v24 }
  0x3f   : > { %v219_v27 = vmul.f32 %v217_v23, %v215_v25 }
  0x41   : > { %v220_v28 = vpack.c.bf16 %v219_v27, %v218_v26 }
  0x43   : > { %231 = vrot.lane.b32.xlu0 %v220_v28, %s528_s20  ;;  %225 = vrot.lane.b32.xlu1 %v220_v28, %s529_s21 }
  0x47   : > { %228 = vrot.lane.b32.xlu0 %v220_v28, %s530_s22  ;;  %222 = vrot.lane.b32.xlu1 %v220_v28, %s531_s23 }
  0x4b   : > { %240 = vperm.xlu0 %484, %v236_v29   ;;  %245 = vperm.xlu1 %485, %v237_v30  }
  0xb5   : > { %v232_v32 = vpop.permute.xlu0 %231  ;;  %v226_v34 = vpop.permute.xlu1 %225 }
  0xb6   : > { %440 = vmatpush3.bf16.msra.mxu0 %v232_v32 }
  0xb7   : > { %441 = vmatprep.subr.bf16.mxu0 %v527_v0 }
  0xb9   : > { %v229_v33 = vpop.permute.xlu0 %228  ;;  %v223_v35 = vpop.permute.xlu1 %222 }
  0xba   : > { %442 = vmatpush3.bf16.msra.mxu0 %v229_v33 }
  0xbb   : > { %443 = vmatprep.subr.bf16.mxu0 %v527_v0 }
  0xbe   : > { %444 = vmatpush3.bf16.msra.mxu0 %v226_v34 }
  0xbf   : > { %445 = vmatprep.subr.bf16.mxu0 %v527_v0 }
  0xc2   : > { %446 = vmatpush3.bf16.msra.mxu0 %v223_v35 }
  0xc3   : > { %447 = vmatprep.subr.bf16.mxu0 %v527_v0 }
  0xc6   : > { %448 = vmatpush3.bf16.msra.mxu0 %v220_v28  ;;  %v241_v37 = vpop.permute.xlu0 %240  ;;  %v246_v41 = vpop.permute.xlu1 %245 }
  0xc9   : > { %450 = vmatmul.mubr.msk.bf16.vlgmr.msra.gmra.mxu0 %vm253_vm1, %v486_v36 }
 0x189   : > { %v291_v38 = vpop.f32.mrf.mxu0 }
 0x18a   : > { %v292_v39 = vadd.f32 %v291_v38, %v241_v37 }
 0x18b   : > { %v451_v40 = vpop.f32.mrf.mxu0 }
 0x18c   : > { %v298_v42 = vmin.f32 %v292_v39, 20.0 }
 0x18d   : > { %v294_v43 = vpop.f32.mrf.mxu0 }
 0x18e   : > { %v300_v44 = vmul.f32 1.442695, %v298_v42  ;;  %v295_v45 = vadd.f32 %v294_v43, %v246_v41 }
 0x18f   : > { %v452_v46 = vpop.f32.mrf.mxu0 }
 0x190   : > { %495 = vpow2.f32 %v300_v44  ;;  %v299_v47 = vmin.f32 %v295_v45, 20.0 }
 0x192   : > { %v302_v48 = vmul.f32 1.442695, %v299_v47 }
 0x194   : > { %497 = vpow2.f32 %v302_v48 }
 0x19d   : > { %v496_v49 = vpop.eup %495 }
 0x19e   : > { %v304_v50 = vadd.f32 2.0, %v496_v49 }
 0x1a0   : > { %v306_v51 = vmul.f32 %v496_v49, %v304_v50 }
 0x1a1   : > { %v498_v52 = vpop.eup %497 }
 0x1a2   : > { %v308_v53 = vadd.f32 2.0, %v306_v51  ;;  %v305_v54 = vadd.f32 2.0, %v498_v52  ;;  %v318_v62 = vmul.f32 %v306_v51, %v292_v39 }
 0x1a4   : > { %499 = vrcp.f32 %v308_v53  ;;  %v307_v55 = vmul.f32 %v498_v52, %v305_v54 }
 0x1a6   : > { %v309_v56 = vadd.f32 2.0, %v307_v55  ;;  %v319_v4 = vmul.f32 %v307_v55, %v295_v45 }
 0x1a8   : > { %501 = vrcp.f32 %v309_v56 }
 0x1b1   : > { %v500_v57 = vpop.eup %499 }
 0x1b2   : > { %v312_v58 = vmul.f32 %v500_v57, %v308_v53 }
 0x1b4   : > { %v314_v59 = vsub.f32 2.0, %v312_v58 }
 0x1b5   : > { %v502_v60 = vpop.eup %501 }
 0x1b6   : > { %v316_v61 = vmul.f32 %v500_v57, %v314_v59  ;;  %v313_v63 = vmul.f32 %v502_v60, %v309_v56 }
 0x1b8   : > { %v320_v0 = vmul.f32 %v318_v62, %v316_v61  ;;  %v315_v1 = vsub.f32 2.0, %v313_v63 }
 0x1ba   : > { %v427_v2 = vpack.c.bf16 %v320_v0, %v320_v0  ;;  %v317_v3 = vmul.f32 %v502_v60, %v315_v1 }
 0x1bc   : > { %331 = vst.msk [vmem:[%s190_s5] sm:$0xf] %vm330_vm2, %v427_v2  ;;  %v321_v5 = vmul.f32 %v319_v4, %v317_v3 }
 0x1be   : > { %v428_v6 = vpack.c.bf16 %v321_v5, %v321_v5 }
 0x1c0   : > { %332 = vst.msk [vmem:[%s190_s5 + $0x4] sm:$0xf] %vm330_vm2, %v428_v6 }
 0x1c1 PF: > { %s13_s14 = sadd.s32 1, %s525_s14   ;;  %s613_s12 = smov %s521_s13 }
 0x1c2   : > { %p10_p5 = scmp.ge.s32.totalorder %s13_s14, 4   ;;  %s614_s13 = smov %s616_s15 }
 0x1c4   :  { %12 = sbr.rel (!%p10_p5) target bundleno = 2 (0x2), region = 62 }

// kernel: _lambda_.32
= control target key start
LH: loop header
LB: loop body
LE: loop exit
PB: predicated region body
PF: predicated region fallthrough
CT: control target
= control target key end

     0   :  { %s485_s9 = smov 0   ;;  %s487_s10 = smov 0   ;;  %s526_s0 = inlined_call_operand.vmem [shape: bf16[2,16,32], index: 0, kind: input, shape index: {}]   ;;  %s527_s1 = inlined_call_operand.vmem [shape: bf16[2,16,32], index: 1, kind: input, shape index: {}]   ;;  %s528_s2 = inlined_call_operand.vmem [shape: bf16[2,16,32], index: 2, kind: output, shape index: {}]  }
   0x1   :  { %s489_s11 = smov 0  }
   0x2 LB: > { %s24_s12 = sadd.s32 1, %s464_s10  ;;  %p382_p0 = scmp.ge.s32.totalorder %s468_s11, 1  ;;  %s468_s11 = sphi %s489_s11, %s12_s11   ;;  %s464_s10 = sphi %s487_s10, %s530_s10   ;;  %s460_s9 = sphi %s485_s9, %s529_s9  }
   0x3   : > { %p26_p1 = scmp.ge.s32.totalorder %s24_s12, 2  ;;  %p146_p2 = scmp.lt.s32.totalorder %s468_s11, 3 }
   0x5   : > { %s532_s12 = smov (%p26_p1, %s24_s12), 0  ;;  %p147_p3 = pnand %p382_p0, %p146_p2 }
   0x6   : > { %p182_p4 = scmp.lt.s32.totalorder (!%p147_p3), %s460_s9, 1 }
   0x7   : > { %150 = sbr.rel (%p147_p3) target bundleno = 74 (0x4a), region = 28 }
   0xc   : > { %s534_s9 = smov (!%p182_p4, %s460_s9), 1  ;;  %vm274_vm0 = vcmask 257024  }
   0xd   : > { %s503_s13 = sshll.u32 %s534_s9, 3 }
   0xe   : > { %s189_s16 = scalar_lea.vmem %s526_s0, %s503_s13  ;;  %s197_s19 = scalar_lea.vmem %s527_s1, %s503_s13 }
   0xf   : > { %v399_v0 = vld [vmem:[%s189_s16] sm:$0xff]   ;;  %s205_s22 = scalar_lea.vmem %s528_s2, %s503_s13 }
  0x10   : > { %v403_v1 = vld [vmem:[%s197_s19] sm:$0xff]   ;;  %v400_v2 = vunpack.c.l.bf16 %v399_v0  ;;  %v401_v3 = vunpack.c.h.bf16 %v399_v0 }
  0x11   : > { %v404_v4 = vunpack.c.l.bf16 %v403_v1  ;;  %v405_v5 = vunpack.c.h.bf16 %v403_v1 }
  0x12   : > { %v210_v6 = vmin.f32 %v400_v2, 20.0  ;;  %v211_v7 = vmin.f32 %v401_v3, 20.0 }
  0x13   : > { %v238_v8 = vmin.f32 %v404_v4, 20.0  ;;  %v239_v9 = vmin.f32 %v405_v5, 20.0 }
  0x14   : > { %v212_v10 = vmul.f32 1.442695, %v210_v6  ;;  %v214_v11 = vmul.f32 1.442695, %v211_v7 }
  0x15   : > { %v240_v12 = vmul.f32 1.442695, %v238_v8  ;;  %v242_v13 = vmul.f32 1.442695, %v239_v9 }
  0x16   : > { %430 = vpow2.f32 %v212_v10 }
  0x17   : > { %432 = vpow2.f32 %v214_v11 }
  0x18   : > { %434 = vpow2.f32 %v240_v12 }
  0x19   : > { %436 = vpow2.f32 %v242_v13 }
  0x23   : > { %v431_v14 = vpop.eup %430 }
  0x24   : > { %v433_v15 = vpop.eup %432  ;;  %v216_v16 = vadd.f32 2.0, %v431_v14 }
  0x25   : > { %v435_v17 = vpop.eup %434  ;;  %v217_v18 = vadd.f32 2.0, %v433_v15 }
  0x26   : > { %v437_v19 = vpop.eup %436  ;;  %v218_v20 = vmul.f32 %v431_v14, %v216_v16  ;;  %v244_v21 = vadd.f32 2.0, %v435_v17 }
  0x27   : > { %v219_v22 = vmul.f32 %v433_v15, %v217_v18  ;;  %v245_v23 = vadd.f32 2.0, %v437_v19 }
  0x28   : > { %v220_v24 = vadd.f32 2.0, %v218_v20  ;;  %v246_v25 = vmul.f32 %v435_v17, %v244_v21  ;;  %v230_v37 = vmul.f32 %v400_v2, %v218_v20 }
  0x29   : > { %v221_v26 = vadd.f32 2.0, %v219_v22  ;;  %v247_v27 = vmul.f32 %v437_v19, %v245_v23  ;;  %v231_v40 = vmul.f32 %v401_v3, %v219_v22 }
  0x2a   : > { %438 = vrcp.f32 %v220_v24  ;;  %v248_v28 = vadd.f32 2.0, %v246_v25  ;;  %v258_v44 = vmul.f32 %v404_v4, %v246_v25 }
  0x2b   : > { %440 = vrcp.f32 %v221_v26  ;;  %v249_v29 = vadd.f32 2.0, %v247_v27  ;;  %v259_v47 = vmul.f32 %v405_v5, %v247_v27 }
  0x2c   : > { %442 = vrcp.f32 %v248_v28 }
  0x2d   : > { %444 = vrcp.f32 %v249_v29 }
  0x37   : > { %v439_v30 = vpop.eup %438 }
  0x38   : > { %v441_v31 = vpop.eup %440  ;;  %v224_v32 = vmul.f32 %v439_v30, %v220_v24 }
  0x39   : > { %v443_v33 = vpop.eup %442  ;;  %v225_v34 = vmul.f32 %v441_v31, %v221_v26 }
  0x3a   : > { %v445_v35 = vpop.eup %444  ;;  %v226_v36 = vsub.f32 2.0, %v224_v32  ;;  %v252_v38 = vmul.f32 %v443_v33, %v248_v28 }
  0x3b   : > { %v227_v39 = vsub.f32 2.0, %v225_v34  ;;  %v253_v41 = vmul.f32 %v445_v35, %v249_v29 }
  0x3c   : > { %v228_v42 = vmul.f32 %v439_v30, %v226_v36  ;;  %v254_v43 = vsub.f32 2.0, %v252_v38 }
  0x3d   : > { %v229_v45 = vmul.f32 %v441_v31, %v227_v39  ;;  %v255_v46 = vsub.f32 2.0, %v253_v41 }
  0x3e   : > { %v232_v48 = vmul.f32 %v230_v37, %v228_v42  ;;  %v256_v49 = vmul.f32 %v443_v33, %v254_v43 }
  0x3f   : > { %v233_v50 = vmul.f32 %v231_v40, %v229_v45  ;;  %v257_v51 = vmul.f32 %v445_v35, %v255_v46 }
  0x40   : > { %v260_v52 = vmul.f32 %v258_v44, %v256_v49 }
  0x41   : > { %v261_v53 = vmul.f32 %v259_v47, %v257_v51 }
  0x42   : > { %v262_v54 = vadd.f32 %v260_v52, %v232_v48 }
  0x43   : > { %v263_v55 = vadd.f32 %v261_v53, %v233_v50 }
  0x44   : > { %v264_v56 = vmul.f32 0.5, %v262_v54 }
  0x45   : > { %v265_v57 = vmul.f32 0.5, %v263_v55 }
  0x46   : > { %v396_v58 = vpack.c.bf16 %v264_v56, %v264_v56 }
  0x47   : > { %v397_v59 = vpack.c.bf16 %v265_v57, %v265_v57 }
  0x48   : > { %275 = vst.msk [vmem:[%s205_s22] sm:$0xf] %vm274_vm0, %v396_v58 }
  0x49   : > { %276 = vst.msk [vmem:[%s205_s22 + $0x4] sm:$0xf] %vm274_vm0, %v397_v59 }
  0x4a PF: > { %s12_s11 = sadd.s32 1, %s468_s11   ;;  %s529_s9 = smov %s464_s10 }
  0x4b   : > { %p9_p5 = scmp.ge.s32.totalorder %s12_s11, 4   ;;  %s530_s10 = smov %s532_s12 }
  0x4d   :  { %11 = sbr.rel (!%p9_p5) target bundleno = 2 (0x2), region = 61 }

// kernel: _lambda_.30
= control target key start
LH: loop header
LB: loop body
LE: loop exit
PB: predicated region body
PF: predicated region fallthrough
CT: control target
= control target key end

     0   :  { %s554_s12 = smov 0   ;;  %s556_s13 = smov 0   ;;  %s609_s0 = inlined_call_operand.vmem [shape: bf16[2,16,44], index: 0, kind: input, shape index: {}]   ;;  %s610_s1 = inlined_call_operand.vmem [shape: bf16[16,80], index: 1, kind: input, shape index: {}]   ;;  %s611_s2 = inlined_call_operand.vmem [shape: f32[16,1], index: 2, kind: input, shape index: {}]   ;;  %s612_s3 = inlined_call_operand.vmem [shape: bf16[2,16,32], index: 3, kind: output, shape index: {}]  }
   0x1   :  { %s558_s14 = smov 0  }
   0x2 LB: > { %s25_s15 = sadd.s32 1, %s521_s13  ;;  %p414_p0 = scmp.ge.s32.totalorder %s525_s14, 1  ;;  %s525_s14 = sphi %s558_s14, %s13_s14   ;;  %s521_s13 = sphi %s556_s13, %s614_s13   ;;  %s517_s12 = sphi %s554_s12, %s613_s12  }
   0x3   : > { %p27_p1 = scmp.ge.s32.totalorder %s25_s15, 2  ;;  %p151_p2 = scmp.lt.s32.totalorder %s525_s14, 3 }
   0x5   : > { %s616_s15 = smov (%p27_p1, %s25_s15), 0  ;;  %p152_p3 = pnand %p414_p0, %p151_p2 }
   0x6   : > { %p178_p4 = scmp.lt.s32.totalorder (!%p152_p3), %s517_s12, 1  ;;  %s528_s20 = smov (!%p152_p3), 116  }
   0x7   : > { %155 = sbr.rel (%p152_p3) target bundleno = 449 (0x1c1), region = 32  ;;  %s529_s21 = smov (!%p152_p3), 122  }
   0x8   : > { %s530_s22 = smov (!%p152_p3), 119   ;;  %s531_s23 = smov (!%p152_p3), 125  }
   0xc   : > { %v527_v0 = vmov 0.0   ;;  %s618_s12 = smov (!%p178_p4, %s517_s12), 1  ;;  %vm532_vm0 = vmmov 0   ;;  %v236_v29 = vld [vmem:[%s611_s2] sm:$0xff]  ;;  %v237_v30 = vld [vmem:[%s611_s2 + $0x8] sm:$0xff]  ;;  %v533_v31 = vmov 0  }
   0xd   : > { %439 = vmatprep.subr.bf16.mxu0 %v527_v0  ;;  %s425_s16 = sshll.u32 %s618_s12, 3  ;;  %449 = vmatprep.mubr.msk.bf16.mxu0 %vm532_vm0, %v527_v0  ;;  %v486_v36 = vld [vmem:[%s610_s1] sm:$0xff]   ;;  %vm253_vm1 = vcmask 654336   ;;  %vm330_vm2 = vcmask 257024  }
   0xe   : > { %s182_s19 = scalar_lea.vmem %s609_s0, %s425_s16  ;;  %484 = vset.pattern.permute.xlu0 %v533_v31  ;;  %485 = vset.pattern.permute.xlu1 %v533_v31  ;;  %s190_s5 = scalar_lea.vmem %s612_s3, %s425_s16 }
   0xf   : > { %v430_v1 = vld [vmem:[%s182_s19] sm:$0xff]  }
  0x10   : > { %v431_v2 = vunpack.c.l.bf16 %v430_v1  ;;  %v432_v3 = vunpack.c.h.bf16 %v430_v1 }
  0x12   : > { %v196_v4 = vmin.f32 %v431_v2, 20.0  ;;  %v197_v5 = vmin.f32 %v432_v3, 20.0 }
  0x14   : > { %v198_v6 = vmul.f32 1.442695, %v196_v4  ;;  %v200_v7 = vmul.f32 1.442695, %v197_v5 }
  0x16   : > { %487 = vpow2.f32 %v198_v6 }
  0x17   : > { %489 = vpow2.f32 %v200_v7 }
  0x23   : > { %v488_v8 = vpop.eup %487 }
  0x24   : > { %v490_v9 = vpop.eup %489  ;;  %v202_v10 = vadd.f32 2.0, %v488_v8 }
  0x25   : > { %v203_v11 = vadd.f32 2.0, %v490_v9 }
  0x26   : > { %v204_v12 = vmul.f32 %v488_v8, %v202_v10 }
  0x27   : > { %v205_v13 = vmul.f32 %v490_v9, %v203_v11 }
  0x28   : > { %v206_v14 = vadd.f32 2.0, %v204_v12  ;;  %v216_v21 = vmul.f32 %v431_v2, %v204_v12 }
  0x29   : > { %v207_v15 = vadd.f32 2.0, %v205_v13  ;;  %v217_v23 = vmul.f32 %v432_v3, %v205_v13 }
  0x2a   : > { %491 = vrcp.f32 %v206_v14 }
  0x2b   : > { %493 = vrcp.f32 %v207_v15 }
  0x37   : > { %v492_v16 = vpop.eup %491 }
  0x38   : > { %v494_v17 = vpop.eup %493  ;;  %v210_v18 = vmul.f32 %v492_v16, %v206_v14 }
  0x39   : > { %v211_v19 = vmul.f32 %v494_v17, %v207_v15 }
  0x3a   : > { %v212_v20 = vsub.f32 2.0, %v210_v18 }
  0x3b   : > { %v213_v22 = vsub.f32 2.0, %v211_v19 }
  0x3c   : > { %v214_v24 = vmul.f32 %v492_v16, %v212_v20 }
  0x3d   : > { %v215_v25 = vmul.f32 %v494_v17, %v213_v22 }
  0x3e   : > { %v218_v26 = vmul.f32 %v216_v21, %v214_v24 }
  0x3f   : > { %v219_v27 = vmul.f32 %v217_v23, %v215_v25 }
  0x41   : > { %v220_v28 = vpack.c.bf16 %v219_v27, %v218_v26 }
  0x43   : > { %231 = vrot.lane.b32.xlu0 %v220_v28, %s528_s20  ;;  %225 = vrot.lane.b32.xlu1 %v220_v28, %s529_s21 }
  0x47   : > { %228 = vrot.lane.b32.xlu0 %v220_v28, %s530_s22  ;;  %222 = vrot.lane.b32.xlu1 %v220_v28, %s531_s23 }
  0x4b   : > { %240 = vperm.xlu0 %484, %v236_v29   ;;  %245 = vperm.xlu1 %485, %v237_v30  }
  0xb5   : > { %v232_v32 = vpop.permute.xlu0 %231  ;;  %v226_v34 = vpop.permute.xlu1 %225 }
  0xb6   : > { %440 = vmatpush3.bf16.msra.mxu0 %v232_v32 }
  0xb7   : > { %441 = vmatprep.subr.bf16.mxu0 %v527_v0 }
  0xb9   : > { %v229_v33 = vpop.permute.xlu0 %228  ;;  %v223_v35 = vpop.permute.xlu1 %222 }
  0xba   : > { %442 = vmatpush3.bf16.msra.mxu0 %v229_v33 }
  0xbb   : > { %443 = vmatprep.subr.bf16.mxu0 %v527_v0 }
  0xbe   : > { %444 = vmatpush3.bf16.msra.mxu0 %v226_v34 }
  0xbf   : > { %445 = vmatprep.subr.bf16.mxu0 %v527_v0 }
  0xc2   : > { %446 = vmatpush3.bf16.msra.mxu0 %v223_v35 }
  0xc3   : > { %447 = vmatprep.subr.bf16.mxu0 %v527_v0 }
  0xc6   : > { %448 = vmatpush3.bf16.msra.mxu0 %v220_v28  ;;  %v241_v37 = vpop.permute.xlu0 %240  ;;  %v246_v41 = vpop.permute.xlu1 %245 }
  0xc9   : > { %450 = vmatmul.mubr.msk.bf16.vlgmr.msra.gmra.mxu0 %vm253_vm1, %v486_v36 }
 0x189   : > { %v291_v38 = vpop.f32.mrf.mxu0 }
 0x18a   : > { %v292_v39 = vadd.f32 %v291_v38, %v241_v37 }
 0x18b   : > { %v451_v40 = vpop.f32.mrf.mxu0 }
 0x18c   : > { %v298_v42 = vmin.f32 %v292_v39, 20.0 }
 0x18d   : > { %v294_v43 = vpop.f32.mrf.mxu0 }
 0x18e   : > { %v300_v44 = vmul.f32 1.442695, %v298_v42  ;;  %v295_v45 = vadd.f32 %v294_v43, %v246_v41 }
 0x18f   : > { %v452_v46 = vpop.f32.mrf.mxu0 }
 0x190   : > { %495 = vpow2.f32 %v300_v44  ;;  %v299_v47 = vmin.f32 %v295_v45, 20.0 }
 0x192   : > { %v302_v48 = vmul.f32 1.442695, %v299_v47 }
 0x194   : > { %497 = vpow2.f32 %v302_v48 }
 0x19d   : > { %v496_v49 = vpop.eup %495 }
 0x19e   : > { %v304_v50 = vadd.f32 2.0, %v496_v49 }
 0x1a0   : > { %v306_v51 = vmul.f32 %v496_v49, %v304_v50 }
 0x1a1   : > { %v498_v52 = vpop.eup %497 }
 0x1a2   : > { %v308_v53 = vadd.f32 2.0, %v306_v51  ;;  %v305_v54 = vadd.f32 2.0, %v498_v52  ;;  %v318_v62 = vmul.f32 %v306_v51, %v292_v39 }
 0x1a4   : > { %499 = vrcp.f32 %v308_v53  ;;  %v307_v55 = vmul.f32 %v498_v52, %v305_v54 }
 0x1a6   : > { %v309_v56 = vadd.f32 2.0, %v307_v55  ;;  %v319_v4 = vmul.f32 %v307_v55, %v295_v45 }
 0x1a8   : > { %501 = vrcp.f32 %v309_v56 }
 0x1b1   : > { %v500_v57 = vpop.eup %499 }
 0x1b2   : > { %v312_v58 = vmul.f32 %v500_v57, %v308_v53 }
 0x1b4   : > { %v314_v59 = vsub.f32 2.0, %v312_v58 }
 0x1b5   : > { %v502_v60 = vpop.eup %501 }
 0x1b6   : > { %v316_v61 = vmul.f32 %v500_v57, %v314_v59  ;;  %v313_v63 = vmul.f32 %v502_v60, %v309_v56 }
 0x1b8   : > { %v320_v0 = vmul.f32 %v318_v62, %v316_v61  ;;  %v315_v1 = vsub.f32 2.0, %v313_v63 }
 0x1ba   : > { %v427_v2 = vpack.c.bf16 %v320_v0, %v320_v0  ;;  %v317_v3 = vmul.f32 %v502_v60, %v315_v1 }
 0x1bc   : > { %331 = vst.msk [vmem:[%s190_s5] sm:$0xf] %vm330_vm2, %v427_v2  ;;  %v321_v5 = vmul.f32 %v319_v4, %v317_v3 }
 0x1be   : > { %v428_v6 = vpack.c.bf16 %v321_v5, %v321_v5 }
 0x1c0   : > { %332 = vst.msk [vmem:[%s190_s5 + $0x4] sm:$0xf] %vm330_vm2, %v428_v6 }
 0x1c1 PF: > { %s13_s14 = sadd.s32 1, %s525_s14   ;;  %s613_s12 = smov %s521_s13 }
 0x1c2   : > { %p10_p5 = scmp.ge.s32.totalorder %s13_s14, 4   ;;  %s614_s13 = smov %s616_s15 }
 0x1c4   :  { %12 = sbr.rel (!%p10_p5) target bundleno = 2 (0x2), region = 62 }

// kernel: tile.18
= control target key start
LH: loop header
LB: loop body
LE: loop exit
PB: predicated region body
PF: predicated region fallthrough
CT: control target
= control target key end

     0   :  { %s22_s0 = inlined_call_operand.vmem [shape: f32[8], index: 0, kind: input, shape index: {}]   ;;  %s23_s1 = inlined_call_operand.vmem [shape: f32[2,8], index: 1, kind: output, shape index: {}]  }
   0x1   :  { %v4_v0 = vld [vmem:[%s22_s0] ss:$0 sm:$0xff] }
   0x2   :  { %5 = vst [vmem:[%s23_s1] sm:$0x3] %v4_v0 }

// kernel: tile.1
= control target key start
LH: loop header
LB: loop body
LE: loop exit
PB: predicated region body
PF: predicated region fallthrough
CT: control target
= control target key end

     0   :  { %s67_s8 = smov 125   ;;  %vm8_vm0 = vcmask 7168   ;;  %s68_s11 = smov 126   ;;  %s118_s0 = inlined_call_operand.vmem [shape: f32[2,8], index: 0, kind: input, shape index: {}]   ;;  %s119_s1 = inlined_call_operand.vmem [shape: f32[16,1], index: 1, kind: output, shape index: {}]  }
   0x1   :  { %v5_v0 = vld [vmem:[%s118_s0] sm:$0x3]  ;;  %s66_s0 = smov 127   ;;  %s69_s12 = smov 124  }
   0x2   :  { %6 = vst [vmem:[#allocation0] sm:$0x3] %v5_v0  ;;  %s70_s13 = smov 123   ;;  %s71_s14 = smov 122  }
   0x3   :  { %s72_s15 = smov 121  }
   0x9   :  { %v10_v1 = vld [vmem:[#allocation0] sm:$0x3]  }
   0xa   :  { %v22_v2 = vld [vmem:[#allocation0] sm:$0x3]   ;;  %11 = vrot.lane.b32.xlu0 %v10_v1, %s66_s0 }
   0xb   :  { %23 = vrot.lane.b32.xlu1 %v22_v2, %s67_s8  ;;  %v16_v3 = vld [vmem:[#allocation0] sm:$0x3]  }
   0xc   :  { %v28_v4 = vld [vmem:[#allocation0] sm:$0x3]  }
   0xd   :  { %v7_v5 = vld [vmem:[#allocation0] sm:$0x3]  }
   0xe   :  { %9 = vst.msk [vmem:[%s119_s1] ss:$8 sm:$0x3] %vm8_vm0, %v7_v5   ;;  %17 = vrot.lane.b32.xlu0 %v16_v3, %s68_s11  ;;  %v34_v6 = vld [vmem:[#allocation0] sm:$0x3]  }
   0xf   :  { %29 = vrot.lane.b32.xlu1 %v28_v4, %s69_s12  ;;  %v40_v7 = vld [vmem:[#allocation0] sm:$0x3]  }
  0x10   :  { %v46_v8 = vld [vmem:[#allocation0] sm:$0x3]  }
  0x12   :  { %35 = vrot.lane.b32.xlu0 %v34_v6, %s70_s13 }
  0x13   :  { %41 = vrot.lane.b32.xlu1 %v40_v7, %s71_s14 }
  0x16   :  { %47 = vrot.lane.b32.xlu0 %v46_v8, %s72_s15 }
  0x7c   :  { %v12_v9 = vpop.permute.xlu0 %11  }
  0x7d   :  { %v24_v10 = vpop.permute.xlu1 %23   ;;  %52 = vst.msk [vmem:[%s119_s1 + $0x1] ss:$8 sm:$0x3] %vm8_vm0, %v12_v9  }
  0x7e   :  { %54 = vst.msk [vmem:[%s119_s1 + $0x3] ss:$8 sm:$0x3] %vm8_vm0, %v24_v10  }
  0x80   :  { %v18_v11 = vpop.permute.xlu0 %17  }
  0x81   :  { %v30_v12 = vpop.permute.xlu1 %29   ;;  %53 = vst.msk [vmem:[%s119_s1 + $0x2] ss:$8 sm:$0x3] %vm8_vm0, %v18_v11  }
  0x82   :  { %55 = vst.msk [vmem:[%s119_s1 + $0x4] ss:$8 sm:$0x3] %vm8_vm0, %v30_v12  }
  0x84   :  { %v36_v13 = vpop.permute.xlu0 %35  }
  0x85   :  { %v42_v14 = vpop.permute.xlu1 %41   ;;  %56 = vst.msk [vmem:[%s119_s1 + $0x5] ss:$8 sm:$0x3] %vm8_vm0, %v36_v13  }
  0x86   :  { %57 = vst.msk [vmem:[%s119_s1 + $0x6] ss:$8 sm:$0x3] %vm8_vm0, %v42_v14  }
  0x88   :  { %v48_v15 = vpop.permute.xlu0 %47  }
  0x89   :  { %58 = vst.msk [vmem:[%s119_s1 + $0x7] ss:$8 sm:$0x3] %vm8_vm0, %v48_v15  }

// kernel: _lambda_.33
= control target key start
LH: loop header
LB: loop body
LE: loop exit
PB: predicated region body
PF: predicated region fallthrough
CT: control target
= control target key end

     0   :  { %s498_s12 = smov 0   ;;  %s500_s13 = smov 0   ;;  %s547_s0 = inlined_call_operand.vmem [shape: bf16[2,16,34], index: 0, kind: input, shape index: {}]   ;;  %s548_s1 = inlined_call_operand.vmem [shape: bf16[16,32], index: 1, kind: input, shape index: {}]   ;;  %s549_s2 = inlined_call_operand.vmem [shape: f32[16,1], index: 2, kind: input, shape index: {}]   ;;  %s550_s3 = inlined_call_operand.vmem [shape: bf16[2,16,33], index: 3, kind: output, shape index: {}]  }
   0x1   :  { %s502_s14 = smov 0  }
   0x2 LB: > { %s25_s15 = sadd.s32 1, %s468_s13  ;;  %p381_p0 = scmp.ge.s32.totalorder %s472_s14, 1  ;;  %s472_s14 = sphi %s502_s14, %s13_s14   ;;  %s468_s13 = sphi %s500_s13, %s552_s13   ;;  %s464_s12 = sphi %s498_s12, %s551_s12  }
   0x3   : > { %p27_p1 = scmp.ge.s32.totalorder %s25_s15, 2  ;;  %p151_p2 = scmp.lt.s32.totalorder %s472_s14, 3 }
   0x5   : > { %s554_s15 = smov (%p27_p1, %s25_s15), 0  ;;  %p152_p3 = pnand %p381_p0, %p151_p2 }
   0x6   : > { %p178_p4 = scmp.lt.s32.totalorder (!%p152_p3), %s464_s12, 1  ;;  %s477_s22 = smov (!%p152_p3), 127  }
   0x7   : > { %155 = sbr.rel (%p152_p3) target bundleno = 391 (0x187), region = 32 }
   0xc   : > { %v474_v0 = vmov 0.0   ;;  %s556_s12 = smov (!%p178_p4, %s464_s12), 1  ;;  %vm475_vm0 = vmmov 0   ;;  %v228_v26 = vld [vmem:[%s549_s2 + $0x8] sm:$0xff]  ;;  %v476_v28 = vmov 0   ;;  %v227_v31 = vld [vmem:[%s549_s2] sm:$0xff] }
   0xd   : > { %403 = vmatprep.subr.bf16.mxu0 %v474_v0  ;;  %s392_s16 = sshll.u32 %s556_s12, 3  ;;  %407 = vmatprep.mubr.msk.bf16.mxu0 %vm475_vm0, %v474_v0  ;;  %v441_v33 = vld [vmem:[%s548_s1] sm:$0xff]   ;;  %vm244_vm1 = vcmask 261120   ;;  %vm297_vm2 = vcmask 265216  }
   0xe   : > { %s182_s19 = scalar_lea.vmem %s547_s0, %s392_s16  ;;  %439 = vset.pattern.permute.xlu0 %v476_v28  ;;  %440 = vset.pattern.permute.xlu1 %v476_v28  ;;  %s190_s29 = scalar_lea.vmem %s550_s3, %s392_s16 }
   0xf   : > { %v397_v1 = vld [vmem:[%s182_s19] sm:$0xff]   ;;  %236 = vperm.xlu1 %440, %v228_v26  }
  0x10   : > { %v398_v2 = vunpack.c.l.bf16 %v397_v1  ;;  %v399_v3 = vunpack.c.h.bf16 %v397_v1 }
  0x12   : > { %v196_v4 = vmin.f32 %v398_v2, 20.0  ;;  %v197_v5 = vmin.f32 %v399_v3, 20.0 }
  0x14   : > { %v198_v6 = vmul.f32 1.442695, %v196_v4  ;;  %v200_v7 = vmul.f32 1.442695, %v197_v5 }
  0x16   : > { %442 = vpow2.f32 %v198_v6 }
  0x17   : > { %444 = vpow2.f32 %v200_v7 }
  0x23   : > { %v443_v8 = vpop.eup %442 }
  0x24   : > { %v445_v9 = vpop.eup %444  ;;  %v202_v10 = vadd.f32 2.0, %v443_v8 }
  0x25   : > { %v203_v11 = vadd.f32 2.0, %v445_v9 }
  0x26   : > { %v204_v12 = vmul.f32 %v443_v8, %v202_v10 }
  0x27   : > { %v205_v13 = vmul.f32 %v445_v9, %v203_v11 }
  0x28   : > { %v206_v14 = vadd.f32 2.0, %v204_v12  ;;  %v216_v21 = vmul.f32 %v398_v2, %v204_v12 }
  0x29   : > { %v207_v15 = vadd.f32 2.0, %v205_v13  ;;  %v217_v23 = vmul.f32 %v399_v3, %v205_v13 }
  0x2a   : > { %446 = vrcp.f32 %v206_v14 }
  0x2b   : > { %448 = vrcp.f32 %v207_v15 }
  0x37   : > { %v447_v16 = vpop.eup %446 }
  0x38   : > { %v449_v17 = vpop.eup %448  ;;  %v210_v18 = vmul.f32 %v447_v16, %v206_v14 }
  0x39   : > { %v211_v19 = vmul.f32 %v449_v17, %v207_v15 }
  0x3a   : > { %v212_v20 = vsub.f32 2.0, %v210_v18 }
  0x3b   : > { %v213_v22 = vsub.f32 2.0, %v211_v19 }
  0x3c   : > { %v214_v24 = vmul.f32 %v447_v16, %v212_v20 }
  0x3d   : > { %v215_v25 = vmul.f32 %v449_v17, %v213_v22 }
  0x3e   : > { %v218_v27 = vmul.f32 %v216_v21, %v214_v24 }
  0x3f   : > { %v219_v29 = vmul.f32 %v217_v23, %v215_v25 }
  0x41   : > { %v220_v30 = vpack.c.bf16 %v219_v29, %v218_v27 }
  0x43   : > { %222 = vrot.lane.b32.xlu0 %v220_v30, %s477_s22 }
  0x47   : > { %231 = vperm.xlu0 %439, %v227_v31  }
  0x8a   : > { %v237_v38 = vpop.permute.xlu1 %236 }
  0xb5   : > { %v223_v32 = vpop.permute.xlu0 %222 }
  0xb6   : > { %404 = vmatpush3.bf16.msra.mxu0 %v223_v32 }
  0xb7   : > { %405 = vmatprep.subr.bf16.mxu0 %v474_v0 }
  0xba   : > { %406 = vmatpush3.bf16.msra.mxu0 %v220_v30 }
  0xbd   : > { %408 = vmatmul.mubr.msk.bf16.vlgmr.msra.gmra.mxu0 %vm244_vm1, %v441_v33 }
  0xc2   : > { %v232_v34 = vpop.permute.xlu0 %231 }
 0x17d   : > { %v282_v35 = vpop.f32.mrf.mxu0 }
 0x17e   : > { %v283_v36 = vadd.f32 %v282_v35, %v232_v34 }
 0x17f   : > { %v409_v37 = vpop.f32.mrf.mxu0 }
 0x180   : > { %v394_v39 = vpack.c.bf16 %v283_v36, %v283_v36 }
 0x181   : > { %v285_v40 = vpop.f32.mrf.mxu0 }
 0x182   : > { %298 = vst.msk [vmem:[%s190_s29] sm:$0xf] %vm297_vm2, %v394_v39  ;;  %v286_v41 = vadd.f32 %v285_v40, %v237_v38 }
 0x183   : > { %v410_v42 = vpop.f32.mrf.mxu0 }
 0x184   : > { %v395_v43 = vpack.c.bf16 %v286_v41, %v286_v41 }
 0x186   : > { %299 = vst.msk [vmem:[%s190_s29 + $0x4] sm:$0xf] %vm297_vm2, %v395_v43 }
 0x187 PF: > { %s13_s14 = sadd.s32 1, %s472_s14   ;;  %s551_s12 = smov %s468_s13 }
 0x188   : > { %p10_p5 = scmp.ge.s32.totalorder %s13_s14, 4   ;;  %s552_s13 = smov %s554_s15 }
 0x18a   :  { %12 = sbr.rel (!%p10_p5) target bundleno = 2 (0x2), region = 62 }

// kernel: _lambda_.34
= control target key start
LH: loop header
LB: loop body
LE: loop exit
PB: predicated region body
PF: predicated region fallthrough
CT: control target
= control target key end

     0   :  { %s447_s12 = smov 0   ;;  %s449_s13 = smov 0   ;;  %s493_s0 = inlined_call_operand.vmem [shape: bf16[2,8,66], index: 0, kind: input, shape index: {}]   ;;  %s494_s1 = inlined_call_operand.vmem [shape: bf16[8,24], index: 1, kind: input, shape index: {}]   ;;  %s495_s2 = inlined_call_operand.vmem [shape: f32[8,1], index: 2, kind: input, shape index: {}]   ;;  %s496_s3 = inlined_call_operand.vmem [shape: bf16[2,8,64], index: 3, kind: output, shape index: {}]  }
   0x1   :  { %s451_s14 = smov 0  }
   0x2 LB: > { %s25_s15 = sadd.s32 1, %s416_s13  ;;  %p344_p0 = scmp.ge.s32.totalorder %s420_s14, 1  ;;  %s420_s14 = sphi %s451_s14, %s13_s14   ;;  %s416_s13 = sphi %s449_s13, %s498_s13   ;;  %s412_s12 = sphi %s447_s12, %s497_s12  }
   0x3   : > { %p27_p1 = scmp.ge.s32.totalorder %s25_s15, 2  ;;  %p150_p2 = scmp.lt.s32.totalorder %s420_s14, 3 }
   0x5   : > { %s500_s15 = smov (%p27_p1, %s25_s15), 0  ;;  %p151_p3 = pnand %p344_p0, %p150_p2 }
   0x6   : > { %p175_p4 = scmp.lt.s32.totalorder (!%p151_p3), %s412_s12, 1  ;;  %s425_s22 = smov (!%p151_p3), 126  }
   0x7   : > { %154 = sbr.rel (%p151_p3) target bundleno = 385 (0x181), region = 32  ;;  %s426_s23 = smov (!%p151_p3), 127  }
   0xc   : > { %v422_v0 = vmov 0.0   ;;  %s502_s12 = smov (!%p175_p4, %s412_s12), 1  ;;  %vm423_vm0 = vmmov 0   ;;  %v201_v1 = vld [vmem:[%s495_s2] sm:$0xff]  ;;  %v424_v2 = vmov 0   ;;  %vm195_vm1 = vcmask 1043456  }
   0xd   : > { %354 = vmatprep.subr.bf16.mxu0 %v422_v0  ;;  %358 = vmatprep.mubr.msk.bf16.mxu0 %vm423_vm0, %v422_v0  ;;  %s345_s16 = sshll.u32 %s502_s12, 2  ;;  %v200_v9 = vld [vmem:[%s494_s1] sm:$0xf]  ;;  %vm207_vm2 = vcmask 195584   ;;  %vm267_vm3 = vcmask 519168  }
   0xe   : > { %s178_s21 = scalar_lea.vmem %s493_s0, %s345_s16  ;;  %391 = vset.pattern.permute.xlu1 %v424_v2  ;;  %392 = vset.pattern.permute.xlu0 %v424_v2  ;;  %s185_s28 = scalar_lea.vmem %s496_s3, %s345_s16 }
   0xf   : > { %v187_v3 = vld [vmem:[%s178_s21] sm:$0xf]  ;;  %204 = vperm.xlu1 %391, %v201_v1  }
  0x10   : > { %v347_v4 = vcombine.low %v187_v3, %v187_v3 }
  0x12   : > { %193 = vrot.lane.b32.xlu0 %v347_v4, %s425_s22 }
  0x16   : > { %191 = vrot.lane.b32.xlu0 %v347_v4, %s426_s23 }
  0x84   : > { %v194_v5 = vpop.permute.xlu0 %193 }
  0x85   : > { %v212_v6 = vsel %vm195_vm1, %v194_v5, 0 }
  0x86   : > { %355 = vmatpush3.bf16.msra.mxu0 %v212_v6 }
  0x87   : > { %356 = vmatprep.subr.bf16.mxu0 %v422_v0 }
  0x88   : > { %v192_v7 = vpop.permute.xlu0 %191 }
  0x89   : > { %v198_v8 = vsel %vm195_vm1, %v187_v3, %v192_v7 }
  0x8a   : > { %357 = vmatpush3.bf16.msra.mxu0 %v198_v8  ;;  %v205_v10 = vpop.permute.xlu1 %204 }
  0x8d   : > { %359 = vmatmul.mubr.msk.bf16.vlgmr.msra.gmra.mxu0 %vm207_vm2, %v200_v9 }
 0x14d   : > { %v248_v11 = vpop.f32.mrf.mxu0 }
 0x14e   : > { %v249_v12 = vadd.f32 %v248_v11, %v205_v10 }
 0x14f   : > { %v360_v13 = vpop.f32.mrf.mxu0 }
 0x150   : > { %v254_v14 = vmin.f32 %v249_v12, 20.0 }
 0x151   : > { %v251_v15 = vpop.f32.mrf.mxu0 }
 0x152   : > { %v255_v16 = vmul.f32 1.442695, %v254_v14 }
 0x153   : > { %v361_v17 = vpop.f32.mrf.mxu0 }
 0x154   : > { %394 = vpow2.f32 %v255_v16 }
 0x161   : > { %v395_v18 = vpop.eup %394 }
 0x162   : > { %v257_v19 = vadd.f32 2.0, %v395_v18 }
 0x164   : > { %v258_v20 = vmul.f32 %v395_v18, %v257_v19 }
 0x166   : > { %v259_v21 = vadd.f32 2.0, %v258_v20  ;;  %v264_v26 = vmul.f32 %v258_v20, %v249_v12 }
 0x168   : > { %396 = vrcp.f32 %v259_v21 }
 0x175   : > { %v397_v22 = vpop.eup %396 }
 0x176   : > { %v261_v23 = vmul.f32 %v397_v22, %v259_v21 }
 0x178   : > { %v262_v24 = vsub.f32 2.0, %v261_v23 }
 0x17a   : > { %v263_v25 = vmul.f32 %v397_v22, %v262_v24 }
 0x17c   : > { %v265_v27 = vmul.f32 %v264_v26, %v263_v25 }
 0x17e   : > { %v266_v28 = vpack.c.bf16 %v265_v27, %v265_v27 }
 0x180   : > { %268 = vst.msk [vmem:[%s185_s28] sm:$0xf] %vm267_vm3, %v266_v28 }
 0x181 PF: > { %s13_s14 = sadd.s32 1, %s420_s14   ;;  %s497_s12 = smov %s416_s13 }
 0x182   : > { %p10_p5 = scmp.ge.s32.totalorder %s13_s14, 4   ;;  %s498_s13 = smov %s500_s15 }
 0x184   :  { %12 = sbr.rel (!%p10_p5) target bundleno = 2 (0x2), region = 62 }

// kernel: _lambda_.35
= control target key start
LH: loop header
LB: loop body
LE: loop exit
PB: predicated region body
PF: predicated region fallthrough
CT: control target
= control target key end

     0   :  { %s448_s12 = smov 0   ;;  %s450_s13 = smov 0   ;;  %s494_s0 = inlined_call_operand.vmem [shape: bf16[2,8,66], index: 0, kind: input, shape index: {}]   ;;  %s495_s1 = inlined_call_operand.vmem [shape: bf16[8,24], index: 1, kind: input, shape index: {}]   ;;  %s496_s2 = inlined_call_operand.vmem [shape: f32[8,1], index: 2, kind: input, shape index: {}]   ;;  %s497_s3 = inlined_call_operand.vmem [shape: bf16[2,8,64], index: 3, kind: output, shape index: {}]  }
   0x1   :  { %s452_s14 = smov 0  }
   0x2 LB: > { %s25_s15 = sadd.s32 1, %s417_s13  ;;  %p345_p0 = scmp.ge.s32.totalorder %s421_s14, 1  ;;  %s421_s14 = sphi %s452_s14, %s13_s14   ;;  %s417_s13 = sphi %s450_s13, %s499_s13   ;;  %s413_s12 = sphi %s448_s12, %s498_s12  }
   0x3   : > { %p27_p1 = scmp.ge.s32.totalorder %s25_s15, 2  ;;  %p150_p2 = scmp.lt.s32.totalorder %s421_s14, 3 }
   0x5   : > { %s501_s15 = smov (%p27_p1, %s25_s15), 0  ;;  %p151_p3 = pnand %p345_p0, %p150_p2 }
   0x6   : > { %p175_p4 = scmp.lt.s32.totalorder (!%p151_p3), %s413_s12, 1  ;;  %s426_s22 = smov (!%p151_p3), 126  }
   0x7   : > { %154 = sbr.rel (%p151_p3) target bundleno = 387 (0x183), region = 32  ;;  %s427_s23 = smov (!%p151_p3), 127  }
   0xc   : > { %v423_v0 = vmov 0.0   ;;  %s503_s12 = smov (!%p175_p4, %s413_s12), 1  ;;  %vm424_vm0 = vmmov 0   ;;  %v201_v1 = vld [vmem:[%s496_s2] sm:$0xff]  ;;  %v425_v2 = vmov 0   ;;  %vm195_vm1 = vcmask 1043456  }
   0xd   : > { %355 = vmatprep.subr.bf16.mxu0 %v423_v0  ;;  %359 = vmatprep.mubr.msk.bf16.mxu0 %vm424_vm0, %v423_v0  ;;  %s346_s16 = sshll.u32 %s503_s12, 2  ;;  %v200_v9 = vld [vmem:[%s495_s1] sm:$0xf]  ;;  %vm207_vm2 = vcmask 195584   ;;  %vm268_vm3 = vcmask 519168  }
   0xe   : > { %s178_s21 = scalar_lea.vmem %s494_s0, %s346_s16  ;;  %392 = vset.pattern.permute.xlu1 %v425_v2  ;;  %393 = vset.pattern.permute.xlu0 %v425_v2  ;;  %s185_s28 = scalar_lea.vmem %s497_s3, %s346_s16 }
   0xf   : > { %v187_v3 = vld [vmem:[%s178_s21] sm:$0xf]  ;;  %204 = vperm.xlu1 %392, %v201_v1  }
  0x10   : > { %v348_v4 = vcombine.low %v187_v3, %v187_v3 }
  0x12   : > { %193 = vrot.lane.b32.xlu0 %v348_v4, %s426_s22 }
  0x16   : > { %191 = vrot.lane.b32.xlu0 %v348_v4, %s427_s23 }
  0x84   : > { %v194_v5 = vpop.permute.xlu0 %193 }
  0x85   : > { %v212_v6 = vsel %vm195_vm1, %v194_v5, 0 }
  0x86   : > { %356 = vmatpush3.bf16.msra.mxu0 %v212_v6 }
  0x87   : > { %357 = vmatprep.subr.bf16.mxu0 %v423_v0 }
  0x88   : > { %v192_v7 = vpop.permute.xlu0 %191 }
  0x89   : > { %v198_v8 = vsel %vm195_vm1, %v187_v3, %v192_v7 }
  0x8a   : > { %358 = vmatpush3.bf16.msra.mxu0 %v198_v8  ;;  %v205_v10 = vpop.permute.xlu1 %204 }
  0x8d   : > { %360 = vmatmul.mubr.msk.bf16.vlgmr.msra.gmra.mxu0 %vm207_vm2, %v200_v9 }
 0x14d   : > { %v248_v11 = vpop.f32.mrf.mxu0 }
 0x14e   : > { %v249_v12 = vadd.f32 %v248_v11, %v205_v10 }
 0x14f   : > { %v361_v13 = vpop.f32.mrf.mxu0 }
 0x150   : > { %v254_v14 = vmin.f32 %v249_v12, 20.0 }
 0x151   : > { %v251_v15 = vpop.f32.mrf.mxu0 }
 0x152   : > { %v255_v16 = vmul.f32 1.442695, %v254_v14 }
 0x153   : > { %v362_v17 = vpop.f32.mrf.mxu0 }
 0x154   : > { %395 = vpow2.f32 %v255_v16 }
 0x161   : > { %v396_v18 = vpop.eup %395 }
 0x162   : > { %v257_v19 = vadd.f32 2.0, %v396_v18 }
 0x164   : > { %v258_v20 = vmul.f32 %v396_v18, %v257_v19 }
 0x166   : > { %v259_v21 = vadd.f32 2.0, %v258_v20  ;;  %v264_v26 = vmul.f32 %v258_v20, %v249_v12 }
 0x168   : > { %397 = vrcp.f32 %v259_v21 }
 0x175   : > { %v398_v22 = vpop.eup %397 }
 0x176   : > { %v261_v23 = vmul.f32 %v398_v22, %v259_v21 }
 0x178   : > { %v262_v24 = vsub.f32 2.0, %v261_v23 }
 0x17a   : > { %v263_v25 = vmul.f32 %v398_v22, %v262_v24 }
 0x17c   : > { %v265_v27 = vmul.f32 %v264_v26, %v263_v25 }
 0x17e   : > { %v266_v28 = vmul.f32 0.5, %v265_v27 }
 0x180   : > { %v267_v29 = vpack.c.bf16 %v266_v28, %v266_v28 }
 0x182   : > { %269 = vst.msk [vmem:[%s185_s28] sm:$0xf] %vm268_vm3, %v267_v29 }
 0x183 PF: > { %s13_s14 = sadd.s32 1, %s421_s14   ;;  %s498_s12 = smov %s417_s13 }
 0x184   : > { %p10_p5 = scmp.ge.s32.totalorder %s13_s14, 4   ;;  %s499_s13 = smov %s501_s15 }
 0x186   :  { %12 = sbr.rel (!%p10_p5) target bundleno = 2 (0x2), region = 62 }

// kernel: _lambda_.36
= control target key start
LH: loop header
LB: loop body
LE: loop exit
PB: predicated region body
PF: predicated region fallthrough
CT: control target
= control target key end

     0   :  { %s447_s12 = smov 0   ;;  %s449_s13 = smov 0   ;;  %s493_s0 = inlined_call_operand.vmem [shape: bf16[2,8,70], index: 0, kind: input, shape index: {}]   ;;  %s494_s1 = inlined_call_operand.vmem [shape: bf16[8,24], index: 1, kind: input, shape index: {}]   ;;  %s495_s2 = inlined_call_operand.vmem [shape: f32[8,1], index: 2, kind: input, shape index: {}]   ;;  %s496_s3 = inlined_call_operand.vmem [shape: bf16[2,8,64], index: 3, kind: output, shape index: {}]  }
   0x1   :  { %s451_s14 = smov 0  }
   0x2 LB: > { %s25_s15 = sadd.s32 1, %s416_s13  ;;  %p344_p0 = scmp.ge.s32.totalorder %s420_s14, 1  ;;  %s420_s14 = sphi %s451_s14, %s13_s14   ;;  %s416_s13 = sphi %s449_s13, %s498_s13   ;;  %s412_s12 = sphi %s447_s12, %s497_s12  }
   0x3   : > { %p27_p1 = scmp.ge.s32.totalorder %s25_s15, 2  ;;  %p150_p2 = scmp.lt.s32.totalorder %s420_s14, 3 }
   0x5   : > { %s500_s15 = smov (%p27_p1, %s25_s15), 0  ;;  %p151_p3 = pnand %p344_p0, %p150_p2 }
   0x6   : > { %p175_p4 = scmp.lt.s32.totalorder (!%p151_p3), %s412_s12, 1  ;;  %s425_s22 = smov (!%p151_p3), 122  }
   0x7   : > { %154 = sbr.rel (%p151_p3) target bundleno = 385 (0x181), region = 32  ;;  %s426_s23 = smov (!%p151_p3), 125  }
   0xc   : > { %v422_v0 = vmov 0.0   ;;  %s502_s12 = smov (!%p175_p4, %s412_s12), 1  ;;  %vm423_vm0 = vmmov 0   ;;  %v201_v1 = vld [vmem:[%s495_s2] sm:$0xff]  ;;  %v424_v2 = vmov 0   ;;  %vm195_vm1 = vcmask 1043456  }
   0xd   : > { %354 = vmatprep.subr.bf16.mxu0 %v422_v0  ;;  %358 = vmatprep.mubr.msk.bf16.mxu0 %vm423_vm0, %v422_v0  ;;  %s345_s16 = sshll.u32 %s502_s12, 2  ;;  %v200_v9 = vld [vmem:[%s494_s1] sm:$0xf]  ;;  %vm207_vm2 = vcmask 195584   ;;  %vm267_vm3 = vcmask 519168  }
   0xe   : > { %s178_s21 = scalar_lea.vmem %s493_s0, %s345_s16  ;;  %391 = vset.pattern.permute.xlu1 %v424_v2  ;;  %392 = vset.pattern.permute.xlu0 %v424_v2  ;;  %s185_s28 = scalar_lea.vmem %s496_s3, %s345_s16 }
   0xf   : > { %v187_v3 = vld [vmem:[%s178_s21] sm:$0xf]  ;;  %204 = vperm.xlu1 %391, %v201_v1  }
  0x10   : > { %v347_v4 = vcombine.low %v187_v3, %v187_v3 }
  0x12   : > { %193 = vrot.lane.b32.xlu0 %v347_v4, %s425_s22 }
  0x16   : > { %191 = vrot.lane.b32.xlu0 %v347_v4, %s426_s23 }
  0x84   : > { %v194_v5 = vpop.permute.xlu0 %193 }
  0x85   : > { %v212_v6 = vsel %vm195_vm1, %v194_v5, 0 }
  0x86   : > { %355 = vmatpush3.bf16.msra.mxu0 %v212_v6 }
  0x87   : > { %356 = vmatprep.subr.bf16.mxu0 %v422_v0 }
  0x88   : > { %v192_v7 = vpop.permute.xlu0 %191 }
  0x89   : > { %v198_v8 = vsel %vm195_vm1, %v187_v3, %v192_v7 }
  0x8a   : > { %357 = vmatpush3.bf16.msra.mxu0 %v198_v8  ;;  %v205_v10 = vpop.permute.xlu1 %204 }
  0x8d   : > { %359 = vmatmul.mubr.msk.bf16.vlgmr.msra.gmra.mxu0 %vm207_vm2, %v200_v9 }
 0x14d   : > { %v248_v11 = vpop.f32.mrf.mxu0 }
 0x14e   : > { %v249_v12 = vadd.f32 %v248_v11, %v205_v10 }
 0x14f   : > { %v360_v13 = vpop.f32.mrf.mxu0 }
 0x150   : > { %v254_v14 = vmin.f32 %v249_v12, 20.0 }
 0x151   : > { %v251_v15 = vpop.f32.mrf.mxu0 }
 0x152   : > { %v255_v16 = vmul.f32 1.442695, %v254_v14 }
 0x153   : > { %v361_v17 = vpop.f32.mrf.mxu0 }
 0x154   : > { %394 = vpow2.f32 %v255_v16 }
 0x161   : > { %v395_v18 = vpop.eup %394 }
 0x162   : > { %v257_v19 = vadd.f32 2.0, %v395_v18 }
 0x164   : > { %v258_v20 = vmul.f32 %v395_v18, %v257_v19 }
 0x166   : > { %v259_v21 = vadd.f32 2.0, %v258_v20  ;;  %v264_v26 = vmul.f32 %v258_v20, %v249_v12 }
 0x168   : > { %396 = vrcp.f32 %v259_v21 }
 0x175   : > { %v397_v22 = vpop.eup %396 }
 0x176   : > { %v261_v23 = vmul.f32 %v397_v22, %v259_v21 }
 0x178   : > { %v262_v24 = vsub.f32 2.0, %v261_v23 }
 0x17a   : > { %v263_v25 = vmul.f32 %v397_v22, %v262_v24 }
 0x17c   : > { %v265_v27 = vmul.f32 %v264_v26, %v263_v25 }
 0x17e   : > { %v266_v28 = vpack.c.bf16 %v265_v27, %v265_v27 }
 0x180   : > { %268 = vst.msk [vmem:[%s185_s28] sm:$0xf] %vm267_vm3, %v266_v28 }
 0x181 PF: > { %s13_s14 = sadd.s32 1, %s420_s14   ;;  %s497_s12 = smov %s416_s13 }
 0x182   : > { %p10_p5 = scmp.ge.s32.totalorder %s13_s14, 4   ;;  %s498_s13 = smov %s500_s15 }
 0x184   :  { %12 = sbr.rel (!%p10_p5) target bundleno = 2 (0x2), region = 62 }

// kernel: _lambda_.39
= control target key start
LH: loop header
LB: loop body
LE: loop exit
PB: predicated region body
PF: predicated region fallthrough
CT: control target
= control target key end

     0   :  { %s462_s12 = smov 0   ;;  %s464_s13 = smov 0   ;;  %s508_s0 = inlined_call_operand.vmem [shape: bf16[2,8,68], index: 0, kind: input, shape index: {}]   ;;  %s509_s1 = inlined_call_operand.vmem [shape: bf16[8,40], index: 1, kind: input, shape index: {}]   ;;  %s510_s2 = inlined_call_operand.vmem [shape: f32[8,1], index: 2, kind: input, shape index: {}]   ;;  %s511_s3 = inlined_call_operand.vmem [shape: bf16[2,8,64], index: 3, kind: output, shape index: {}]  }
   0x1   :  { %s466_s14 = smov 0  }
   0x2 LB: > { %s25_s15 = sadd.s32 1, %s429_s13  ;;  %p353_p0 = scmp.ge.s32.totalorder %s433_s14, 1  ;;  %s433_s14 = sphi %s466_s14, %s13_s14   ;;  %s429_s13 = sphi %s464_s13, %s513_s13   ;;  %s425_s12 = sphi %s462_s12, %s512_s12  }
   0x3   : > { %p27_p1 = scmp.ge.s32.totalorder %s25_s15, 2  ;;  %p150_p2 = scmp.lt.s32.totalorder %s433_s14, 3 }
   0x5   : > { %s515_s15 = smov (%p27_p1, %s25_s15), 0  ;;  %p151_p3 = pnand %p353_p0, %p150_p2 }
   0x6   : > { %p175_p4 = scmp.lt.s32.totalorder (!%p151_p3), %s425_s12, 1  ;;  %s437_s20 = smov (!%p151_p3), 124  }
   0x7   : > { %154 = sbr.rel (%p151_p3) target bundleno = 391 (0x187), region = 32  ;;  %s438_s21 = smov (!%p151_p3), 125  }
   0x8   : > { %s440_s22 = smov (!%p151_p3), 126   ;;  %s441_s23 = smov (!%p151_p3), 127  }
   0xc   : > { %v435_v0 = vmov 0.0   ;;  %s517_s12 = smov (!%p175_p4, %s425_s12), 1  ;;  %vm436_vm0 = vmmov 0   ;;  %v439_v3 = vmov 0   ;;  %v209_v4 = vld [vmem:[%s510_s2] sm:$0xff]  ;;  %vm199_vm1 = vcmask 1043456  }
   0xd   : > { %364 = vmatprep.subr.bf16.mxu0 %v435_v0  ;;  %s354_s16 = sshll.u32 %s517_s12, 2  ;;  %370 = vmatprep.mubr.msk.bf16.mxu0 %vm436_vm0, %v435_v0  ;;  %v208_v12 = vld [vmem:[%s509_s1] sm:$0xf]  ;;  %vm215_vm2 = vcmask 326656   ;;  %vm276_vm3 = vcmask 519168  }
   0xe   : > { %s178_s19 = scalar_lea.vmem %s508_s0, %s354_s16  ;;  %405 = vset.pattern.permute.xlu0 %v439_v3  ;;  %s185_s30 = scalar_lea.vmem %s511_s3, %s354_s16 }
   0xf   : > { %v187_v1 = vld [vmem:[%s178_s19] sm:$0xf] }
  0x10   : > { %v356_v2 = vcombine.low %v187_v1, %v187_v1 }
  0x12   : > { %197 = vrot.lane.b32.xlu0 %v356_v2, %s437_s20  ;;  %195 = vrot.lane.b32.xlu1 %v356_v2, %s438_s21 }
  0x16   : > { %193 = vrot.lane.b32.xlu0 %v356_v2, %s440_s22  ;;  %191 = vrot.lane.b32.xlu1 %v356_v2, %s441_s23 }
  0x1a   : > { %212 = vperm.xlu0 %405, %v209_v4  }
  0x84   : > { %v198_v5 = vpop.permute.xlu0 %197  ;;  %v196_v6 = vpop.permute.xlu1 %195 }
  0x85   : > { %v220_v7 = vsel %vm199_vm1, %v198_v5, 0 }
  0x86   : > { %365 = vmatpush3.bf16.msra.mxu0 %v220_v7 }
  0x87   : > { %366 = vmatprep.subr.bf16.mxu0 %v435_v0 }
  0x88   : > { %v194_v8 = vpop.permute.xlu0 %193  ;;  %v192_v9 = vpop.permute.xlu1 %191 }
  0x89   : > { %v206_v10 = vsel %vm199_vm1, %v194_v8, %v196_v6  ;;  %v202_v11 = vsel %vm199_vm1, %v187_v1, %v192_v9 }
  0x8a   : > { %367 = vmatpush3.bf16.msra.mxu0 %v206_v10 }
  0x8b   : > { %368 = vmatprep.subr.bf16.mxu0 %v435_v0 }
  0x8e   : > { %369 = vmatpush3.bf16.msra.mxu0 %v202_v11 }
  0x91   : > { %371 = vmatmul.mubr.msk.bf16.vlgmr.msra.gmra.mxu0 %vm215_vm2, %v208_v12 }
  0x95   : > { %v213_v13 = vpop.permute.xlu0 %212 }
 0x151   : > { %v256_v14 = vpop.f32.mrf.mxu0 }
 0x152   : > { %v257_v15 = vadd.f32 %v256_v14, %v213_v13 }
 0x153   : > { %v372_v16 = vpop.f32.mrf.mxu0 }
 0x154   : > { %v262_v17 = vmin.f32 %v257_v15, 20.0 }
 0x155   : > { %v259_v18 = vpop.f32.mrf.mxu0 }
 0x156   : > { %v263_v19 = vmul.f32 1.442695, %v262_v17 }
 0x157   : > { %v373_v20 = vpop.f32.mrf.mxu0 }
 0x158   : > { %407 = vpow2.f32 %v263_v19 }
 0x165   : > { %v408_v21 = vpop.eup %407 }
 0x166   : > { %v265_v22 = vadd.f32 2.0, %v408_v21 }
 0x168   : > { %v266_v23 = vmul.f32 %v408_v21, %v265_v22 }
 0x16a   : > { %v267_v24 = vadd.f32 2.0, %v266_v23  ;;  %v272_v29 = vmul.f32 %v266_v23, %v257_v15 }
 0x16c   : > { %409 = vrcp.f32 %v267_v24 }
 0x179   : > { %v410_v25 = vpop.eup %409 }
 0x17a   : > { %v269_v26 = vmul.f32 %v410_v25, %v267_v24 }
 0x17c   : > { %v270_v27 = vsub.f32 2.0, %v269_v26 }
 0x17e   : > { %v271_v28 = vmul.f32 %v410_v25, %v270_v27 }
 0x180   : > { %v273_v30 = vmul.f32 %v272_v29, %v271_v28 }
 0x182   : > { %v274_v31 = vmul.f32 0.5, %v273_v30 }
 0x184   : > { %v275_v32 = vpack.c.bf16 %v274_v31, %v274_v31 }
 0x186   : > { %277 = vst.msk [vmem:[%s185_s30] sm:$0xf] %vm276_vm3, %v275_v32 }
 0x187 PF: > { %s13_s14 = sadd.s32 1, %s433_s14   ;;  %s512_s12 = smov %s429_s13 }
 0x188   : > { %p10_p5 = scmp.ge.s32.totalorder %s13_s14, 4   ;;  %s513_s13 = smov %s515_s15 }
 0x18a   :  { %12 = sbr.rel (!%p10_p5) target bundleno = 2 (0x2), region = 62 }

// kernel: _lambda_.38
= control target key start
LH: loop header
LB: loop body
LE: loop exit
PB: predicated region body
PF: predicated region fallthrough
CT: control target
= control target key end

     0   :  { %s476_s12 = smov 0   ;;  %s478_s13 = smov 0   ;;  %s522_s0 = inlined_call_operand.vmem [shape: bf16[2,8,68], index: 0, kind: input, shape index: {}]   ;;  %s523_s1 = inlined_call_operand.vmem [shape: bf16[8,40], index: 1, kind: input, shape index: {}]   ;;  %s524_s2 = inlined_call_operand.vmem [shape: f32[8,1], index: 2, kind: input, shape index: {}]   ;;  %s525_s3 = inlined_call_operand.vmem [shape: bf16[2,8,64], index: 3, kind: output, shape index: {}]  }
   0x1   :  { %s480_s14 = smov 0  }
   0x2 LB: > { %s25_s15 = sadd.s32 1, %s443_s13  ;;  %p365_p0 = scmp.ge.s32.totalorder %s447_s14, 1  ;;  %s447_s14 = sphi %s480_s14, %s13_s14   ;;  %s443_s13 = sphi %s478_s13, %s527_s13   ;;  %s439_s12 = sphi %s476_s12, %s526_s12  }
   0x3   : > { %p27_p1 = scmp.ge.s32.totalorder %s25_s15, 2  ;;  %p150_p2 = scmp.lt.s32.totalorder %s447_s14, 3 }
   0x5   : > { %s529_s15 = smov (%p27_p1, %s25_s15), 0  ;;  %p151_p3 = pnand %p365_p0, %p150_p2 }
   0x6   : > { %p175_p4 = scmp.lt.s32.totalorder (!%p151_p3), %s439_s12, 1  ;;  %s451_s20 = smov (!%p151_p3), 124  }
   0x7   : > { %154 = sbr.rel (%p151_p3) target bundleno = 437 (0x1b5), region = 32  ;;  %s453_s21 = smov (!%p151_p3), 125  }
   0x8   : > { %s454_s22 = smov (!%p151_p3), 126   ;;  %s455_s25 = smov (!%p151_p3), 127  }
   0xc   : > { %s531_s12 = smov (!%p175_p4, %s439_s12), 1  ;;  %v449_v8 = vmov 0.0   ;;  %vm450_vm0 = vmmov 0   ;;  %v452_v17 = vmov 0   ;;  %v222_v18 = vld [vmem:[%s524_s2] sm:$0xff]  ;;  %vm212_vm1 = vcmask 1043456  }
   0xd   : > { %s366_s16 = sshll.u32 %s531_s12, 2  ;;  %375 = vmatprep.subr.bf16.mxu0 %v449_v8  ;;  %381 = vmatprep.mubr.msk.bf16.mxu0 %vm450_vm0, %v449_v8  ;;  %v221_v26 = vld [vmem:[%s523_s1] sm:$0xf]  ;;  %vm228_vm2 = vcmask 326656   ;;  %vm288_vm3 = vcmask 519168  }
   0xe   : > { %s178_s19 = scalar_lea.vmem %s522_s0, %s366_s16  ;;  %416 = vset.pattern.permute.xlu0 %v452_v17  ;;  %s185_s30 = scalar_lea.vmem %s525_s3, %s366_s16 }
   0xf   : > { %v187_v0 = vld [vmem:[%s178_s19] sm:$0xf] }
  0x10   : > { %v188_v1 = vunpack.c.l.bf16 %v187_v0 }
  0x12   : > { %v189_v2 = vmin.f32 %v188_v1, 20.0 }
  0x14   : > { %v190_v3 = vmul.f32 1.442695, %v189_v2 }
  0x16   : > { %417 = vpow2.f32 %v190_v3 }
  0x23   : > { %v418_v4 = vpop.eup %417 }
  0x24   : > { %v192_v5 = vadd.f32 2.0, %v418_v4 }
  0x26   : > { %v193_v6 = vmul.f32 %v418_v4, %v192_v5 }
  0x28   : > { %v194_v7 = vadd.f32 2.0, %v193_v6  ;;  %v199_v12 = vmul.f32 %v193_v6, %v188_v1 }
  0x2a   : > { %419 = vrcp.f32 %v194_v7 }
  0x37   : > { %v420_v9 = vpop.eup %419 }
  0x38   : > { %v196_v10 = vmul.f32 %v420_v9, %v194_v7 }
  0x3a   : > { %v197_v11 = vsub.f32 2.0, %v196_v10 }
  0x3c   : > { %v198_v13 = vmul.f32 %v420_v9, %v197_v11 }
  0x3e   : > { %v200_v14 = vmul.f32 %v199_v12, %v198_v13 }
  0x40   : > { %v201_v15 = vpack.c.bf16 %v200_v14, %v200_v14 }
  0x42   : > { %210 = vrot.lane.b32.xlu0 %v201_v15, %s451_s20  ;;  %v203_v16 = vrot.slane %v201_v15, 4 }
  0x44   : > { %208 = vrot.lane.b32.xlu1 %v203_v16, %s453_s21 }
  0x46   : > { %206 = vrot.lane.b32.xlu0 %v201_v15, %s454_s22 }
  0x48   : > { %204 = vrot.lane.b32.xlu1 %v203_v16, %s455_s25 }
  0x4a   : > { %225 = vperm.xlu0 %416, %v222_v18  }
  0xb4   : > { %v211_v19 = vpop.permute.xlu0 %210 }
  0xb5   : > { %v233_v20 = vsel %vm212_vm1, %v211_v19, 0 }
  0xb6   : > { %376 = vmatpush3.bf16.msra.mxu0 %v233_v20  ;;  %v209_v21 = vpop.permute.xlu1 %208 }
  0xb7   : > { %377 = vmatprep.subr.bf16.mxu0 %v449_v8 }
  0xb8   : > { %v207_v22 = vpop.permute.xlu0 %206 }
  0xb9   : > { %v219_v23 = vsel %vm212_vm1, %v207_v22, %v209_v21 }
  0xba   : > { %378 = vmatpush3.bf16.msra.mxu0 %v219_v23  ;;  %v205_v24 = vpop.permute.xlu1 %204 }
  0xbb   : > { %379 = vmatprep.subr.bf16.mxu0 %v449_v8  ;;  %v215_v25 = vsel %vm212_vm1, %v201_v15, %v205_v24 }
  0xbe   : > { %380 = vmatpush3.bf16.msra.mxu0 %v215_v25 }
  0xc1   : > { %382 = vmatmul.mubr.msk.bf16.vlgmr.msra.gmra.mxu0 %vm228_vm2, %v221_v26 }
  0xc5   : > { %v226_v27 = vpop.permute.xlu0 %225 }
 0x181   : > { %v269_v28 = vpop.f32.mrf.mxu0 }
 0x182   : > { %v270_v29 = vadd.f32 %v269_v28, %v226_v27 }
 0x183   : > { %v383_v30 = vpop.f32.mrf.mxu0 }
 0x184   : > { %v275_v31 = vmin.f32 %v270_v29, 20.0 }
 0x185   : > { %v272_v32 = vpop.f32.mrf.mxu0 }
 0x186   : > { %v276_v33 = vmul.f32 1.442695, %v275_v31 }
 0x187   : > { %v384_v34 = vpop.f32.mrf.mxu0 }
 0x188   : > { %421 = vpow2.f32 %v276_v33 }
 0x195   : > { %v422_v35 = vpop.eup %421 }
 0x196   : > { %v278_v36 = vadd.f32 2.0, %v422_v35 }
 0x198   : > { %v279_v37 = vmul.f32 %v422_v35, %v278_v36 }
 0x19a   : > { %v280_v38 = vadd.f32 2.0, %v279_v37  ;;  %v285_v43 = vmul.f32 %v279_v37, %v270_v29 }
 0x19c   : > { %423 = vrcp.f32 %v280_v38 }
 0x1a9   : > { %v424_v39 = vpop.eup %423 }
 0x1aa   : > { %v282_v40 = vmul.f32 %v424_v39, %v280_v38 }
 0x1ac   : > { %v283_v41 = vsub.f32 2.0, %v282_v40 }
 0x1ae   : > { %v284_v42 = vmul.f32 %v424_v39, %v283_v41 }
 0x1b0   : > { %v286_v44 = vmul.f32 %v285_v43, %v284_v42 }
 0x1b2   : > { %v287_v45 = vpack.c.bf16 %v286_v44, %v286_v44 }
 0x1b4   : > { %289 = vst.msk [vmem:[%s185_s30] sm:$0xf] %vm288_vm3, %v287_v45 }
 0x1b5 PF: > { %s13_s14 = sadd.s32 1, %s447_s14   ;;  %s526_s12 = smov %s443_s13 }
 0x1b6   : > { %p10_p5 = scmp.ge.s32.totalorder %s13_s14, 4   ;;  %s527_s13 = smov %s529_s15 }
 0x1b8   :  { %12 = sbr.rel (!%p10_p5) target bundleno = 2 (0x2), region = 62 }

// kernel: _lambda_.40
= control target key start
LH: loop header
LB: loop body
LE: loop exit
PB: predicated region body
PF: predicated region fallthrough
CT: control target
= control target key end

     0   :  { %s476_s12 = smov 0   ;;  %s478_s13 = smov 0   ;;  %s522_s0 = inlined_call_operand.vmem [shape: bf16[2,8,76], index: 0, kind: input, shape index: {}]   ;;  %s523_s1 = inlined_call_operand.vmem [shape: bf16[8,40], index: 1, kind: input, shape index: {}]   ;;  %s524_s2 = inlined_call_operand.vmem [shape: f32[8,1], index: 2, kind: input, shape index: {}]   ;;  %s525_s3 = inlined_call_operand.vmem [shape: bf16[2,8,64], index: 3, kind: output, shape index: {}]  }
   0x1   :  { %s480_s14 = smov 0  }
   0x2 LB: > { %s25_s15 = sadd.s32 1, %s443_s13  ;;  %p365_p0 = scmp.ge.s32.totalorder %s447_s14, 1  ;;  %s447_s14 = sphi %s480_s14, %s13_s14   ;;  %s443_s13 = sphi %s478_s13, %s527_s13   ;;  %s439_s12 = sphi %s476_s12, %s526_s12  }
   0x3   : > { %p27_p1 = scmp.ge.s32.totalorder %s25_s15, 2  ;;  %p150_p2 = scmp.lt.s32.totalorder %s447_s14, 3 }
   0x5   : > { %s529_s15 = smov (%p27_p1, %s25_s15), 0  ;;  %p151_p3 = pnand %p365_p0, %p150_p2 }
   0x6   : > { %p175_p4 = scmp.lt.s32.totalorder (!%p151_p3), %s439_s12, 1  ;;  %s451_s20 = smov (!%p151_p3), 116  }
   0x7   : > { %154 = sbr.rel (%p151_p3) target bundleno = 437 (0x1b5), region = 32  ;;  %s453_s21 = smov (!%p151_p3), 119  }
   0x8   : > { %s454_s22 = smov (!%p151_p3), 122   ;;  %s455_s25 = smov (!%p151_p3), 125  }
   0xc   : > { %s531_s12 = smov (!%p175_p4, %s439_s12), 1  ;;  %v449_v8 = vmov 0.0   ;;  %vm450_vm0 = vmmov 0   ;;  %v452_v17 = vmov 0   ;;  %v222_v18 = vld [vmem:[%s524_s2] sm:$0xff]  ;;  %vm212_vm1 = vcmask 1043456  }
   0xd   : > { %s366_s16 = sshll.u32 %s531_s12, 2  ;;  %375 = vmatprep.subr.bf16.mxu0 %v449_v8  ;;  %381 = vmatprep.mubr.msk.bf16.mxu0 %vm450_vm0, %v449_v8  ;;  %v221_v26 = vld [vmem:[%s523_s1] sm:$0xf]  ;;  %vm228_vm2 = vcmask 326656   ;;  %vm288_vm3 = vcmask 519168  }
   0xe   : > { %s178_s19 = scalar_lea.vmem %s522_s0, %s366_s16  ;;  %416 = vset.pattern.permute.xlu0 %v452_v17  ;;  %s185_s30 = scalar_lea.vmem %s525_s3, %s366_s16 }
   0xf   : > { %v187_v0 = vld [vmem:[%s178_s19] sm:$0xf] }
  0x10   : > { %v188_v1 = vunpack.c.l.bf16 %v187_v0 }
  0x12   : > { %v189_v2 = vmin.f32 %v188_v1, 20.0 }
  0x14   : > { %v190_v3 = vmul.f32 1.442695, %v189_v2 }
  0x16   : > { %417 = vpow2.f32 %v190_v3 }
  0x23   : > { %v418_v4 = vpop.eup %417 }
  0x24   : > { %v192_v5 = vadd.f32 2.0, %v418_v4 }
  0x26   : > { %v193_v6 = vmul.f32 %v418_v4, %v192_v5 }
  0x28   : > { %v194_v7 = vadd.f32 2.0, %v193_v6  ;;  %v199_v12 = vmul.f32 %v193_v6, %v188_v1 }
  0x2a   : > { %419 = vrcp.f32 %v194_v7 }
  0x37   : > { %v420_v9 = vpop.eup %419 }
  0x38   : > { %v196_v10 = vmul.f32 %v420_v9, %v194_v7 }
  0x3a   : > { %v197_v11 = vsub.f32 2.0, %v196_v10 }
  0x3c   : > { %v198_v13 = vmul.f32 %v420_v9, %v197_v11 }
  0x3e   : > { %v200_v14 = vmul.f32 %v199_v12, %v198_v13 }
  0x40   : > { %v201_v15 = vpack.c.bf16 %v200_v14, %v200_v14 }
  0x42   : > { %210 = vrot.lane.b32.xlu0 %v201_v15, %s451_s20  ;;  %v203_v16 = vrot.slane %v201_v15, 4 }
  0x44   : > { %208 = vrot.lane.b32.xlu1 %v203_v16, %s453_s21 }
  0x46   : > { %206 = vrot.lane.b32.xlu0 %v201_v15, %s454_s22 }
  0x48   : > { %204 = vrot.lane.b32.xlu1 %v203_v16, %s455_s25 }
  0x4a   : > { %225 = vperm.xlu0 %416, %v222_v18  }
  0xb4   : > { %v211_v19 = vpop.permute.xlu0 %210 }
  0xb5   : > { %v233_v20 = vsel %vm212_vm1, %v211_v19, 0 }
  0xb6   : > { %376 = vmatpush3.bf16.msra.mxu0 %v233_v20  ;;  %v209_v21 = vpop.permute.xlu1 %208 }
  0xb7   : > { %377 = vmatprep.subr.bf16.mxu0 %v449_v8 }
  0xb8   : > { %v207_v22 = vpop.permute.xlu0 %206 }
  0xb9   : > { %v219_v23 = vsel %vm212_vm1, %v207_v22, %v209_v21 }
  0xba   : > { %378 = vmatpush3.bf16.msra.mxu0 %v219_v23  ;;  %v205_v24 = vpop.permute.xlu1 %204 }
  0xbb   : > { %379 = vmatprep.subr.bf16.mxu0 %v449_v8  ;;  %v215_v25 = vsel %vm212_vm1, %v201_v15, %v205_v24 }
  0xbe   : > { %380 = vmatpush3.bf16.msra.mxu0 %v215_v25 }
  0xc1   : > { %382 = vmatmul.mubr.msk.bf16.vlgmr.msra.gmra.mxu0 %vm228_vm2, %v221_v26 }
  0xc5   : > { %v226_v27 = vpop.permute.xlu0 %225 }
 0x181   : > { %v269_v28 = vpop.f32.mrf.mxu0 }
 0x182   : > { %v270_v29 = vadd.f32 %v269_v28, %v226_v27 }
 0x183   : > { %v383_v30 = vpop.f32.mrf.mxu0 }
 0x184   : > { %v275_v31 = vmin.f32 %v270_v29, 20.0 }
 0x185   : > { %v272_v32 = vpop.f32.mrf.mxu0 }
 0x186   : > { %v276_v33 = vmul.f32 1.442695, %v275_v31 }
 0x187   : > { %v384_v34 = vpop.f32.mrf.mxu0 }
 0x188   : > { %421 = vpow2.f32 %v276_v33 }
 0x195   : > { %v422_v35 = vpop.eup %421 }
 0x196   : > { %v278_v36 = vadd.f32 2.0, %v422_v35 }
 0x198   : > { %v279_v37 = vmul.f32 %v422_v35, %v278_v36 }
 0x19a   : > { %v280_v38 = vadd.f32 2.0, %v279_v37  ;;  %v285_v43 = vmul.f32 %v279_v37, %v270_v29 }
 0x19c   : > { %423 = vrcp.f32 %v280_v38 }
 0x1a9   : > { %v424_v39 = vpop.eup %423 }
 0x1aa   : > { %v282_v40 = vmul.f32 %v424_v39, %v280_v38 }
 0x1ac   : > { %v283_v41 = vsub.f32 2.0, %v282_v40 }
 0x1ae   : > { %v284_v42 = vmul.f32 %v424_v39, %v283_v41 }
 0x1b0   : > { %v286_v44 = vmul.f32 %v285_v43, %v284_v42 }
 0x1b2   : > { %v287_v45 = vpack.c.bf16 %v286_v44, %v286_v44 }
 0x1b4   : > { %289 = vst.msk [vmem:[%s185_s30] sm:$0xf] %vm288_vm3, %v287_v45 }
 0x1b5 PF: > { %s13_s14 = sadd.s32 1, %s447_s14   ;;  %s526_s12 = smov %s443_s13 }
 0x1b6   : > { %p10_p5 = scmp.ge.s32.totalorder %s13_s14, 4   ;;  %s527_s13 = smov %s529_s15 }
 0x1b8   :  { %12 = sbr.rel (!%p10_p5) target bundleno = 2 (0x2), region = 62 }

// kernel: _lambda_.42
= control target key start
LH: loop header
LB: loop body
LE: loop exit
PB: predicated region body
PF: predicated region fallthrough
CT: control target
= control target key end

     0   :  { %s401_s9 = smov 0   ;;  %s403_s10 = smov 0   ;;  %s442_s0 = inlined_call_operand.vmem [shape: bf16[2,8,64], index: 0, kind: input, shape index: {}]   ;;  %s443_s1 = inlined_call_operand.vmem [shape: bf16[2,8,64], index: 1, kind: input, shape index: {}]   ;;  %s444_s2 = inlined_call_operand.vmem [shape: bf16[2,8,64], index: 2, kind: output, shape index: {}]  }
   0x1   :  { %s405_s11 = smov 0  }
   0x2 LB: > { %s24_s12 = sadd.s32 1, %s380_s10  ;;  %p324_p0 = scmp.ge.s32.totalorder %s384_s11, 1  ;;  %s384_s11 = sphi %s405_s11, %s12_s11   ;;  %s380_s10 = sphi %s403_s10, %s446_s10   ;;  %s376_s9 = sphi %s401_s9, %s445_s9  }
   0x3   : > { %p26_p1 = scmp.ge.s32.totalorder %s24_s12, 2  ;;  %p144_p2 = scmp.lt.s32.totalorder %s384_s11, 3 }
   0x5   : > { %s448_s12 = smov (%p26_p1, %s24_s12), 0  ;;  %p145_p3 = pnand %p324_p0, %p144_p2 }
   0x6   : > { %p177_p4 = scmp.lt.s32.totalorder (!%p145_p3), %s376_s9, 1 }
   0x7   : > { %148 = sbr.rel (%p145_p3) target bundleno = 72 (0x48), region = 28 }
   0xc   : > { %s450_s9 = smov (!%p177_p4, %s376_s9), 1  ;;  %vm229_vm0 = vcmask 519168  }
   0xd   : > { %s419_s13 = sshll.u32 %s450_s9, 2 }
   0xe   : > { %s183_s16 = scalar_lea.vmem %s442_s0, %s419_s13  ;;  %s190_s19 = scalar_lea.vmem %s443_s1, %s419_s13 }
   0xf   : > { %v198_v0 = vld [vmem:[%s183_s16] sm:$0xf]  ;;  %s197_s22 = scalar_lea.vmem %s444_s2, %s419_s13 }
  0x10   : > { %v212_v1 = vld [vmem:[%s190_s19] sm:$0xf]  ;;  %v199_v2 = vunpack.c.l.bf16 %v198_v0 }
  0x11   : > { %v213_v3 = vunpack.c.l.bf16 %v212_v1 }
  0x12   : > { %v200_v4 = vmin.f32 %v199_v2, 20.0 }
  0x13   : > { %v214_v5 = vmin.f32 %v213_v3, 20.0 }
  0x14   : > { %v201_v6 = vmul.f32 1.442695, %v200_v4 }
  0x15   : > { %v215_v7 = vmul.f32 1.442695, %v214_v5 }
  0x16   : > { %354 = vpow2.f32 %v201_v6 }
  0x17   : > { %356 = vpow2.f32 %v215_v7 }
  0x23   : > { %v355_v8 = vpop.eup %354 }
  0x24   : > { %v357_v9 = vpop.eup %356  ;;  %v203_v10 = vadd.f32 2.0, %v355_v8 }
  0x25   : > { %v217_v11 = vadd.f32 2.0, %v357_v9 }
  0x26   : > { %v204_v12 = vmul.f32 %v355_v8, %v203_v10 }
  0x27   : > { %v218_v13 = vmul.f32 %v357_v9, %v217_v11 }
  0x28   : > { %v205_v14 = vadd.f32 2.0, %v204_v12  ;;  %v210_v21 = vmul.f32 %v204_v12, %v199_v2 }
  0x29   : > { %v219_v15 = vadd.f32 2.0, %v218_v13  ;;  %v224_v23 = vmul.f32 %v218_v13, %v213_v3 }
  0x2a   : > { %358 = vrcp.f32 %v205_v14 }
  0x2b   : > { %360 = vrcp.f32 %v219_v15 }
  0x37   : > { %v359_v16 = vpop.eup %358 }
  0x38   : > { %v361_v17 = vpop.eup %360  ;;  %v207_v18 = vmul.f32 %v359_v16, %v205_v14 }
  0x39   : > { %v221_v19 = vmul.f32 %v361_v17, %v219_v15 }
  0x3a   : > { %v208_v20 = vsub.f32 2.0, %v207_v18 }
  0x3b   : > { %v222_v22 = vsub.f32 2.0, %v221_v19 }
  0x3c   : > { %v209_v24 = vmul.f32 %v359_v16, %v208_v20 }
  0x3d   : > { %v223_v25 = vmul.f32 %v361_v17, %v222_v22 }
  0x3e   : > { %v211_v26 = vmul.f32 %v210_v21, %v209_v24 }
  0x3f   : > { %v225_v27 = vmul.f32 %v224_v23, %v223_v25 }
  0x41   : > { %v226_v28 = vadd.f32 %v225_v27, %v211_v26 }
  0x43   : > { %v227_v29 = vmul.f32 0.5, %v226_v28 }
  0x45   : > { %v228_v30 = vpack.c.bf16 %v227_v29, %v227_v29 }
  0x47   : > { %230 = vst.msk [vmem:[%s197_s22] sm:$0xf] %vm229_vm0, %v228_v30 }
  0x48 PF: > { %s12_s11 = sadd.s32 1, %s384_s11   ;;  %s445_s9 = smov %s380_s10 }
  0x49   : > { %p9_p5 = scmp.ge.s32.totalorder %s12_s11, 4   ;;  %s446_s10 = smov %s448_s12 }
  0x4b   :  { %11 = sbr.rel (!%p9_p5) target bundleno = 2 (0x2), region = 61 }

// kernel: _lambda_.43
= control target key start
LH: loop header
LB: loop body
LE: loop exit
PB: predicated region body
PF: predicated region fallthrough
CT: control target
= control target key end

     0   :  { %s669_s0 = inlined_call_operand.vmem [shape: bf16[2,8,70], index: 0, kind: input, shape index: {}]   ;;  %s670_s1 = inlined_call_operand.vmem [shape: bf16[1,56], index: 1, kind: input, shape index: {}]   ;;  %s671_s2 = inlined_call_operand.<no memory space> [shape: f32[1,1], index: 2, kind: input, shape index: {}]   ;;  %s672_s3 = inlined_call_operand.hbm [shape: f32[2,1,64], index: 3, kind: output, shape index: {}]  }
   0x1   :  { %v8_v0 = vstv %s671_s2 }
   0x2   :  { %9 = vst [vmem:[#allocation2] sm:$0x1] %v8_v0 }
   0x3   :  { %10 = vsyncpa [#allocation4], 0 }
   0x4   :  { %12 = vsyncpa [#allocation4 + $0x1], 0  ;;  %s557_s14 = smov 0   ;;  %s559_s15 = smov 0  }
   0x5   :  { %s561_s16 = smov 0   ;;  %s563_s17 = smov 0  }
   0x6   :  { %s565_s18 = smov 0   ;;  %s567_s19 = smov 0  }
   0x7 LB: > { %s350_s2 = sadd.s32 4294967295, %s522_s19   ;;  %s351_s20 = sadd.s32 4294967294, %s522_s19   ;;  %s522_s19 = sphi %s567_s19, %s18_s19   ;;  %s518_s18 = sphi %s565_s18, %s679_s18   ;;  %s514_s17 = sphi %s563_s17, %s678_s17   ;;  %s510_s16 = sphi %s561_s16, %s677_s16   ;;  %s506_s15 = sphi %s559_s15, %s676_s15   ;;  %s502_s14 = sphi %s557_s14, %s675_s14  }
   0x8   : > { %s30_s21 = sadd.s32 1, %s518_s18  ;;  %s107_s22 = sadd.s32 1, %s510_s16 }
   0x9   : > { %p32_p0 = scmp.ge.s32.totalorder %s30_s21, 2  ;;  %p117_p1 = scmp.ne.s32.totalorder %s510_s16, %s506_s15 }
   0xa   : > { %p118_p2 = scmp.eq.s32.totalorder %s350_s2, 1  ;;  %p123_p3 = scmp.ne.s32.totalorder %s506_s15, %s502_s14 }
   0xb   : > { %s681_s21 = smov (%p32_p0, %s30_s21), 0  ;;  %p124_p5 = scmp.eq.s32.totalorder %s351_s20, 1 }
   0xc   : > { %p597_p4 = por %p118_p2, %p117_p1  ;;  %s102_s24 = ssub.s32 %s518_s18, %s681_s21 }
   0xd   : > { %p354_p6 = scmp.ge.s32.totalorder %s522_s19, 1  ;;  %p105_p7 = scmp.eq.s32.totalorder %s102_s24, 0 }
   0xe   : > { %p604_p8 = por %p124_p5, %p123_p3  ;;  %p155_p9 = scmp.lt.s32.totalorder %s522_s19, 3 }
   0xf   : > { %s610_s26 = scalar_select %p105_p7, %s510_s16, %s107_s22  }
  0x10   : > { %p156_p10 = pnand %p354_p6, %p155_p9 }
  0x11   : > { %p177_p11 = scmp.lt.s32.totalorder (!%p156_p10), %s514_s17, 1  ;;  %s525_s5 = smov (!%p156_p10), 122  }
  0x12   : > { %159 = sbr.rel (%p156_p10) target bundleno = 383 (0x17f), region = 32  ;;  %s526_s6 = smov (!%p156_p10), 123  }
  0x13   : > { %s528_s7 = smov (!%p156_p10), 124   ;;  %s529_s8 = smov (!%p156_p10), 126  }
  0x14   : > { %s531_s9 = smov (!%p156_p10), 125   ;;  %s532_s10 = smov (!%p156_p10), 127  }
  0x15   : > { %s175_s13 = sand.u32 (!%p156_p10), 1, %s506_s15   ;;  %s358_s2 = sshll.u32 (!%p156_p10), %s514_s17, 4 }
  0x16   : > { %s176_s20 = scalar_lea.vmem (!%p156_p10), [#allocation3], %s175_s13  ;;  %s273_s29 = scalar_lea.sflag (!%p156_p10), [#allocation4], %s175_s13 }
  0x17   : > { %v524_v1 = vmov 0.0   ;;  %s178_s27 = scalar_select %p177_p11, %s514_s17, 1  ;;  %vm527_vm0 = vmmov 0   ;;  %v530_v4 = vmov 0   ;;  %v212_v5 = vld [vmem:[#allocation2] sm:$0x1]  ;;  %v218_v17 = vlaneseq }
  0x18   : > { %366 = vmatprep.subr.bf16.mxu0 %v524_v1  ;;  %374 = vmatprep.mubr.msk.bf16.mxu0 %vm527_vm0, %v524_v1  ;;  %vm198_vm1 = vcmask 1043456   ;;  %v211_v16 = vld [vmem:[%s670_s1] sm:$0x1]  ;;  %vm222_vm2 = vcmask 457728   ;;  %s286_s22 = sshll.u32 %s176_s20, 4  ;;  %vm270_vm3 = vcmask 516096   ;;  %s287_s22 = int_to_ptr.vmem [resolvable:$true] %s286_s22 }
  0x19   : > { %s355_s28 = sshll.u32 %s178_s27, 2  ;;  %442 = vset.pattern.permute.xlu0 %v530_v4  ;;  %v219_v18 = vshrl.u32 %v218_v17, 7  ;;  %s446_s30 = scalar_lea.vmem %s287_s22, 16 }
  0x1a   : > { %s180_s4 = scalar_lea.vmem %s669_s0, %s355_s28  ;;  %s629_s28 = scalar_lea.hbm %s672_s3, %s358_s2 }
  0x1b   : > { %v182_v2 = vld [vmem:[%s180_s4] sm:$0xf]  ;;  %v220_v19 = vsub.s32 0, %v219_v18  ;;  %p447_p12 = scmp.ne.s32.totalorder %s287_s22, %s446_s30  ;;  %s533_s4 = smov [#allocation3]  }
  0x1c   : > { %v356_v3 = vcombine.low %v182_v2, %v182_v2 }
  0x1d   : > { %p448_p13 = pnand %p447_p12, %p597_p4 }
  0x1e   : > { %196 = vrot.lane.b32.xlu0 %v356_v3, %s525_s5  ;;  %194 = vrot.lane.b32.xlu1 %v356_v3, %s526_s6  ;;  %s450_s5 = sshll.u32 %s533_s4, 4  ;;  %s451_s5 = int_to_ptr.vmem [resolvable:$false] %s450_s5 }
  0x1f   : > { %p449_p0 = pneg %p448_p13  ;;  %s452_s17 = scalar_lea.vmem %s451_s5, 32 }
  0x20   : > { %p453_p1 = scmp.lt.s32.totalorder %s287_s22, %s451_s5  ;;  %p454_p2 = scmp.lt.s32.totalorder %s452_s17, %s446_s30 }
  0x22   : > { %192 = vrot.lane.b32.xlu0 %v356_v3, %s528_s7  ;;  %188 = vrot.lane.b32.xlu1 %v356_v3, %s529_s8  ;;  %p455_p3 = por %p454_p2, %p453_p1 }
  0x24   : > { %p456_p5 = pnand %p455_p3, %p449_p0 }
  0x26   : > { %190 = vrot.lane.b32.xlu0 %v356_v3, %s531_s9  ;;  %186 = vrot.lane.b32.xlu1 %v356_v3, %s532_s10 }
  0x2a   : > { %215 = vperm.xlu0 %442, %v212_v5  }
  0x90   : > { %v197_v6 = vpop.permute.xlu0 %196  ;;  %v195_v7 = vpop.permute.xlu1 %194 }
  0x91   : > { %v227_v8 = vsel %vm198_vm1, %v197_v6, 0 }
  0x92   : > { %367 = vmatpush3.bf16.msra.mxu0 %v227_v8 }
  0x93   : > { %368 = vmatprep.subr.bf16.mxu0 %v524_v1 }
  0x94   : > { %v193_v9 = vpop.permute.xlu0 %192  ;;  %v189_v10 = vpop.permute.xlu1 %188 }
  0x95   : > { %v209_v11 = vsel %vm198_vm1, %v193_v9, %v195_v7 }
  0x96   : > { %369 = vmatpush3.bf16.msra.mxu0 %v209_v11 }
  0x97   : > { %370 = vmatprep.subr.bf16.mxu0 %v524_v1 }
  0x98   : > { %v191_v12 = vpop.permute.xlu0 %190  ;;  %v187_v13 = vpop.permute.xlu1 %186 }
  0x99   : > { %v205_v14 = vsel %vm198_vm1, %v189_v10, %v191_v12  ;;  %v201_v15 = vsel %vm198_vm1, %v182_v2, %v187_v13 }
  0x9a   : > { %371 = vmatpush3.bf16.msra.mxu0 %v205_v14 }
  0x9b   : > { %372 = vmatprep.subr.bf16.mxu0 %v524_v1 }
  0x9e   : > { %373 = vmatpush3.bf16.msra.mxu0 %v201_v15 }
  0xa1   : > { %375 = vmatmul.mubr.msk.bf16.vlgmr.msra.gmra.mxu0 %vm222_vm2, %v211_v16 }
  0xa5   : > { %v216_v20 = vpop.permute.xlu0 %215 }
  0xa6   : > { %v221_v21 = vrot.slane %v216_v20, %v220_v19 }
 0x161   : > { %v263_v22 = vpop.f32.mrf.mxu0 }
 0x162   : > { %v264_v23 = vadd.f32 %v263_v22, %v221_v21 }
 0x163   : > { %v376_v24 = vpop.f32.mrf.mxu0 }
 0x164   : > { %444 = vtanh.f32 %v264_v23 }
 0x165   : > { %v266_v25 = vpop.f32.mrf.mxu0 }
 0x167   : > { %v377_v26 = vpop.f32.mrf.mxu0 }
 0x171   : > { %v445_v27 = vpop.eup %444 }
 0x172   : > { %271 = vst.msk [vmem:[%s176_s20] sm:$0x1] %vm270_vm3, %v445_v27 }
 0x173   : > { %459 = shalt.err (!%p456_p5)
}
 0x174   : > { %s460_s6 = scalar_lea.hbm %s629_s28, 16  ;;  %s464_s9 = scalar_lea.hbm %s672_s3, 32 }
 0x175   : > { %p461_p6 = scmp.ne.s32.totalorder %s629_s28, %s460_s6  ;;  %p465_p10 = scmp.lt.s32.totalorder %s629_s28, %s672_s3 }
 0x176   : > { %p466_p11 = scmp.lt.s32.totalorder %s464_s9, %s460_s6 }
 0x177   : > { %p462_p7 = pnand %p461_p6, %p597_p4 }
 0x178   : > { %p467_p12 = por %p466_p11, %p465_p10 }
 0x179   : > { %p463_p9 = pneg %p462_p7 }
 0x17b   : > { %p468_p13 = pnand %p467_p12, %p463_p9 }
 0x17d   : > { %471 = shalt.err (!%p468_p13)
}
 0x17e   : > { %378 = dma.vmem_to_hbm [thread:$0]  (%p597_p4), %s287_s22, 16, %s629_s28, %s273_s29  }
 0x17f PF: > { %p384_p0 = scmp.ge.s32.totalorder %s522_s19, 2  ;;  %s298_s12 = sand.u32 1, %s502_s14  }
 0x180   : > { %s299_s13 = scalar_lea.sflag [#allocation4], %s298_s12 }
 0x181   : > { %p381_p1 = pnand %p384_p0, %p604_p8 }
 0x183   : > { %p382_p2 = pneg %p381_p1 }
 0x185   : > { %497 = dma.done.wait (%p382_p2), %s299_s13, 16  }
 0x186   : > { %499 = vsyncadd (%p382_p2), %s299_s13, 4294967280  ;;  %s18_s19 = sadd.s32 1, %s522_s19   ;;  %s675_s14 = smov %s506_s15 }
 0x187   : > { %p15_p3 = scmp.ge.s32.totalorder %s18_s19, 4   ;;  %s676_s15 = smov %s510_s16 }
 0x188   : > { %s677_s16 = smov %s610_s26  ;;  %s678_s17 = smov %s518_s18 }
 0x189   : > { %s679_s18 = smov %s681_s21  ;;  %17 = sbr.rel (!%p15_p3) target bundleno = 7 (0x7), region = 67 }
 0x18e   :  { %303 = vsyncpa [#allocation4], 1 }
 0x18f   :  { %305 = vsyncpa [#allocation4 + $0x1], 1 }

</bundles_post_ra>
